<compile_context>
chip_gen: v7x
topology: tpu7x:2x2x1
jax: 0.10.0
libtpu: 0.0.40
codegen_flags: <defaults>
</compile_context>

<pallas_src>
import jax
import jax.numpy as jnp
from jax.experimental import pallas as pl
from jax.experimental.pallas import tpu as pltpu


def _largest_divisor(n, cap):
    for d in range(min(n, cap), 0, -1):
        if n % d == 0:
            return d
    return 1


# Explicit exp-based gates so the Pallas kernels and the XLA reference below share the
# exact same primitive set (exp + div) -> tight numerical comparison.
def _sigmoid(x):
    return 1.0 / (1.0 + jnp.exp(-x))


def _tanh(x):
    return 2.0 / (1.0 + jnp.exp(-2.0 * x)) - 1.0


def _mosaic_params(block_bytes, scratch_bytes):
    # x2: default double-buffered pipeline for every block; + headroom for internal scratch.
    # TODO(synk): on v7x mark grid-invariant blocks pipeline_mode=pl.Buffered(1).
    need = 2 * block_bytes + scratch_bytes + (4 << 20)
    return pltpu.CompilerParams(
        dimension_semantics=("arbitrary",),          # serial recurrence over time blocks
        vmem_limit_bytes=int(max(32 << 20, min(need, 100 << 20))))


# ---------------------------------------------------------------------------
# Encoder kernel: grid over encoder TIME BLOCKS; f32 hidden state carried in VMEM
# scratch. Per block: one hoisted bf16 input matmul, then an unrolled recurrence
# (only gh = h @ W_hh stays serial).
# ---------------------------------------------------------------------------
def _encoder_kernel(x_ref, w_ih_ref, w_hh_ref, b_ih_ref, b_hh_ref,
                    enc_out_ref, h_scratch):
    @pl.when(pl.program_id(0) == 0)
    def _():
        h_scratch[...] = jnp.zeros_like(h_scratch)

    B, TT, E = x_ref.shape
    H = h_scratch.shape[-1]

    # Hoisted non-recurrent input matmul for the whole block: bf16 x bf16 on the MXU.
    gx_all = (jnp.dot(x_ref[...].reshape(B * TT, E), w_ih_ref[...],
                      preferred_element_type=jnp.float32)
              + b_ih_ref[...]).reshape(B, TT, 3 * H)

    w_hh = w_hh_ref[...]                                       # bf16, fed to MXU directly
    b_hh = jnp.broadcast_to(b_hh_ref[...], (B, 3 * H))         # hoisted bias broadcast

    h = h_scratch[...]                                         # [B, H] f32 state
    # TODO(synk): switch to lax.fori_loop(..., unroll=True) for large TT.
    for i in range(TT):
        gx = gx_all[:, i, :]
        gh = jnp.dot(h.astype(jnp.bfloat16), w_hh,
                     preferred_element_type=jnp.float32) + b_hh
        r = _sigmoid(gx[:, :H] + gh[:, :H])
        z = _sigmoid(gx[:, H:2 * H] + gh[:, H:2 * H])
        n = _tanh(gx[:, 2 * H:] + r * gh[:, 2 * H:])
        h = (1.0 - z) * n + z * h
        enc_out_ref[:, i, :] = h.astype(jnp.bfloat16)          # batch-major, lane-dense H
    h_scratch[...] = h


def encoder_pallas(x_bte, params, time_block):
    B, T, E = x_bte.shape
    H = params["enc_w_hh"].shape[0]
    TT = time_block
    assert T % TT == 0
    block_bytes = (B * TT * E * 2 + E * 3 * H * 2 + H * 3 * H * 2
                   + 2 * 3 * H * 4 + B * TT * H * 2)
    return pl.pallas_call(
        _encoder_kernel,
        out_shape=jax.ShapeDtypeStruct((B, T, H), jnp.bfloat16),   # bf16 enc_out
        grid_spec=pltpu.PrefetchScalarGridSpec(
            num_scalar_prefetch=0,
            grid=(T // TT,),
            in_specs=[pl.BlockSpec((B, TT, E), lambda t: (0, t, 0)),
                      pl.BlockSpec((E, 3 * H), lambda t: (0, 0)),
                      pl.BlockSpec((H, 3 * H), lambda t: (0, 0)),
                      pl.BlockSpec((1, 3 * H), lambda t: (0, 0)),
                      pl.BlockSpec((1, 3 * H), lambda t: (0, 0))],
            out_specs=pl.BlockSpec((B, TT, H), lambda t: (0, t, 0)),
            scratch_shapes=[pltpu.VMEM((B, H), jnp.float32)],
        ),
        compiler_params=_mosaic_params(block_bytes, B * H * 4),
    )(x_bte, params["enc_w_ih"], params["enc_w_hh"],
      params["enc_b_ih"], params["enc_b_hh"])


# ---------------------------------------------------------------------------
# Decoder kernel (the "decoding_helper"): grid over decode-step BLOCKS.
# f32 hidden state + int32 greedy-token index live in VMEM scratch.
# TODO(synk): v7x 2-TC split — add a leading "parallel" batch-half grid axis.
# ---------------------------------------------------------------------------
def _decoder_kernel(enc_out_ref, emb_ref,
                    w_ih_e_ref, w_ih_c_ref, w_hh_ref, b_ih_ref, b_hh_ref,
                    w_out_ref, b_out_ref,
                    out_ref, mask_ref, h_scratch, prev_idx_scratch):
    B, H = h_scratch.shape
    TDt, Vp = out_ref.shape[1], out_ref.shape[2]
    T_enc = enc_out_ref.shape[1]

    @pl.when(pl.program_id(0) == 0)
    def _():
        # decoder initial hidden = encoder hidden at the last encoder time step
        h_scratch[...] = enc_out_ref[:, T_enc - 1, :].astype(jnp.float32)
        prev_idx_scratch[...] = jnp.zeros_like(prev_idx_scratch)   # <sos> token = 0

    enc_bf = enc_out_ref[...]                         # [B, T_enc, H] bf16 (MXU operand)
    enc_f32 = enc_bf.astype(jnp.float32)              # hoisted once per block (VPU scores)
    emb_w = emb_ref[...]                              # [Vp, E] bf16
    w_ih_e = w_ih_e_ref[...]                          # bf16, fed to MXU directly
    w_ih_c = w_ih_c_ref[...]
    w_hh = w_hh_ref[...]
    w_out = w_out_ref[...]
    b_ih = jnp.broadcast_to(b_ih_ref[...], (B, 3 * H))    # hoisted bias broadcasts
    b_hh = jnp.broadcast_to(b_hh_ref[...], (B, 3 * H))
    b_out = jnp.broadcast_to(b_out_ref[...], (B, Vp))
    iota_v = jax.lax.broadcasted_iota(jnp.int32, (B, Vp), 1)

    h = h_scratch[...]                                # [B, H] f32
    idx = prev_idx_scratch[...]                       # [B, 1] int32 greedy token
    # TODO(synk): switch to lax.fori_loop(..., unroll=True) for large TDt.
    for i in range(TDt):
        # --- dot-product attention: scores = VPU multiply + XLU lane reduce ---
        scores = jnp.sum(enc_f32 * h[:, None, :], axis=-1)          # [B, T_enc]
        m = jnp.max(scores, axis=-1, keepdims=True)
        p = jnp.exp(scores - m)
        l = jnp.sum(p, axis=-1, keepdims=True)
        # NOTE: pl.reciprocal(l, approx=True) is the production choice (free EUP slot);
        # exact divide kept here so the precision-matched reference check is deterministic.
        attn = p / l                                                 # [B, T_enc]
        mask_ref[:, i, :] = attn                                     # batch-major, lane-dense
        # ctx stays on the MXU (lane-dense H output), bf16 operands.
        ctx = jnp.einsum("bst,bth->bsh", attn[:, None, :].astype(jnp.bfloat16),
                         enc_bf, preferred_element_type=jnp.float32)[:, 0, :]   # [B, H]

        # --- embed previous greedy token (one-hot bf16 rides the MXU) ---
        # TODO(synk): at realistic vocab replace with an SMEM-index DMA row gather.
        one_hot = (iota_v == idx).astype(jnp.bfloat16)               # [B, Vp]
        emb = jnp.dot(one_hot, emb_w, preferred_element_type=jnp.float32)   # [B, E]

        # --- GRU on [emb ; ctx] (concat expressed as split weight matmuls) ---
        gx = (jnp.dot(emb.astype(jnp.bfloat16), w_ih_e, preferred_element_type=jnp.float32)
              + jnp.dot(ctx.astype(jnp.bfloat16), w_ih_c, preferred_element_type=jnp.float32)
              + b_ih)
        gh = jnp.dot(h.astype(jnp.bfloat16), w_hh,
                     preferred_element_type=jnp.float32) + b_hh
        r = _sigmoid(gx[:, :H] + gh[:, :H])
        z = _sigmoid(gx[:, H:2 * H] + gh[:, H:2 * H])
        n = _tanh(gx[:, 2 * H:] + r * gh[:, 2 * H:])
        h = (1.0 - z) * n + z * h

        # --- vocab projection (padded to lane width) + greedy argmax ---
        # TODO(synk): tile the vocab axis (w_out blocks of ~1-4k lanes) for realistic V.
        logits = jnp.dot(h.astype(jnp.bfloat16), w_out,
                         preferred_element_type=jnp.float32) + b_out        # [B, Vp]
        out_ref[:, i, :] = logits
        mx = jnp.max(logits, axis=-1, keepdims=True)
        idx = jnp.min(jnp.where(logits >= mx, iota_v, Vp), axis=-1, keepdims=True)

    h_scratch[...] = h
    prev_idx_scratch[...] = idx


def decoder_pallas(enc_out_b, emb_p, w_ih_e, w_ih_c, w_hh, b_ih, b_hh,
                   w_out_p, b_out_p, t_dec, time_block):
    B, T_enc, H = enc_out_b.shape
    Vp, E = emb_p.shape
    TDt = time_block
    assert t_dec % TDt == 0
    block_bytes = (B * T_enc * H * 2 + Vp * E * 2 + E * 3 * H * 2 + 2 * H * 3 * H * 2
                   + 2 * 3 * H * 4 + H * Vp * 2 + Vp * 4
                   + B * TDt * Vp * 4 + B * TDt * T_enc * 4)
    scratch_bytes = B * H * 4 + B * 4
    return pl.pallas_call(
        _decoder_kernel,
        out_shape=(jax.ShapeDtypeStruct((B, t_dec, Vp), jnp.float32),
                   jax.ShapeDtypeStruct((B, t_dec, T_enc), jnp.float32)),
        grid_spec=pltpu.PrefetchScalarGridSpec(
            num_scalar_prefetch=0,
            grid=(t_dec // TDt,),
            in_specs=[pl.BlockSpec((B, T_enc, H), lambda t: (0, 0, 0)),
                      pl.BlockSpec((Vp, E), lambda t: (0, 0)),
                      pl.BlockSpec((E, 3 * H), lambda t: (0, 0)),
                      pl.BlockSpec((H, 3 * H), lambda t: (0, 0)),
                      pl.BlockSpec((H, 3 * H), lambda t: (0, 0)),
                      pl.BlockSpec((1, 3 * H), lambda t: (0, 0)),
                      pl.BlockSpec((1, 3 * H), lambda t: (0, 0)),
                      pl.BlockSpec((H, Vp), lambda t: (0, 0)),
                      pl.BlockSpec((1, Vp), lambda t: (0, 0))],
            out_specs=(pl.BlockSpec((B, TDt, Vp), lambda t: (0, t, 0)),
                       pl.BlockSpec((B, TDt, T_enc), lambda t: (0, t, 0))),
            scratch_shapes=[pltpu.VMEM((B, H), jnp.float32),
                            pltpu.VMEM((B, 1), jnp.int32)],
        ),
        compiler_params=_mosaic_params(block_bytes, scratch_bytes),
    )(enc_out_b, emb_p, w_ih_e, w_ih_c, w_hh, b_ih, b_hh, w_out_p, b_out_p)


# ---------------------------------------------------------------------------
# Seq2Seq.forward equivalent
# ---------------------------------------------------------------------------
def seq2seq_forward(source, params, t_dec):
    B, T_enc = source.shape
    V, E = params["dec_emb"].shape
    H = params["enc_w_hh"].shape[0]

    # Layout plumbing (wrapper-side, sliced back below): batch padded to the 8-sublane
    # width, vocab padded to the 128-lane width. No transposes: kernels are batch-major.
    Bp = ((max(B, 8) + 7) // 8) * 8
    Vp = ((V + 127) // 128) * 128
    src_p = jnp.pad(source, ((0, Bp - B), (0, 0)))
    dec_emb_p = jnp.pad(params["dec_emb"], ((0, Vp - V), (0, 0)))
    dec_w_out_p = jnp.pad(params["dec_w_out"], ((0, 0), (0, Vp - V)))
    dec_b_out_p = jnp.pad(params["dec_b_out"], ((0, 0), (0, Vp - V)),
                          constant_values=-1e30)   # f32 sentinel: padded vocab never wins

    # Embedding lookup is glue (plain XLA gather); hot paths live in the kernels (bf16 in).
    x_bte = params["enc_emb"][src_p]                        # [Bp, T_enc, E] bf16

    enc_blk = _largest_divisor(T_enc, 8)    # raise cap to 16-32 for realistic lengths
    dec_blk = _largest_divisor(t_dec, 8)

    enc_out = encoder_pallas(x_bte, params, enc_blk)        # [Bp, T_enc, H] bf16
    out_btv, mask_btt = decoder_pallas(
        enc_out, dec_emb_p,
        params["dec_w_ih_e"], params["dec_w_ih_c"], params["dec_w_hh"],
        params["dec_b_ih"], params["dec_b_hh"],
        dec_w_out_p, dec_b_out_p, t_dec, dec_blk)

    outputs = out_btv[:B, :, :V]            # [B, T_dec, V] — already batch-major
    masks = mask_btt[:B]                    # [B, T_dec, T_enc]
    return outputs, masks


# ---------------------------------------------------------------------------
# Pure-JAX reference with the SAME mixed-precision policy (bf16 MXU operands,
# f32 accumulation, bf16 enc_out) so the comparison is tight and deterministic.
# ---------------------------------------------------------------------------
def reference_forward(source, params, t_dec):
    bf16, f32 = jnp.bfloat16, jnp.float32
    B, T_enc = source.shape
    H = params["enc_w_hh"].shape[0]

    def mm(a, b):
        return jnp.dot(a.astype(bf16), b.astype(bf16), preferred_element_type=f32)

    emb = params["enc_emb"][source]                         # bf16 [B, T_enc, E]
    h = jnp.zeros((B, H), f32)
    enc_outs = []
    for t in range(T_enc):
        gx = mm(emb[:, t], params["enc_w_ih"]) + params["enc_b_ih"]
        gh = mm(h, params["enc_w_hh"]) + params["enc_b_hh"]
        r = _sigmoid(gx[:, :H] + gh[:, :H])
        z = _sigmoid(gx[:, H:2 * H] + gh[:, H:2 * H])
        n = _tanh(gx[:, 2 * H:] + r * gh[:, 2 * H:])
        h = (1.0 - z) * n + z * h
        enc_outs.append(h.astype(bf16))                     # kernel stores enc_out in bf16
    enc_bf = jnp.stack(enc_outs, axis=1)                    # [B, T_enc, H]
    enc_f32 = enc_bf.astype(f32)

    hd = enc_bf[:, -1].astype(f32)
    prev = jnp.zeros((B,), jnp.int32)
    outs, masks = [], []
    for _ in range(t_dec):
        scores = jnp.sum(enc_f32 * hd[:, None, :], axis=-1)
        p = jnp.exp(scores - jnp.max(scores, axis=-1, keepdims=True))
        attn = p / jnp.sum(p, axis=-1, keepdims=True)
        ctx = jnp.einsum("bt,bth->bh", attn.astype(bf16), enc_bf,
                         preferred_element_type=f32)
        e = params["dec_emb"][prev]
        gx = mm(e, params["dec_w_ih_e"]) + mm(ctx, params["dec_w_ih_c"]) + params["dec_b_ih"]
        gh = mm(hd, params["dec_w_hh"]) + params["dec_b_hh"]
        r = _sigmoid(gx[:, :H] + gh[:, :H])
        z = _sigmoid(gx[:, H:2 * H] + gh[:, H:2 * H])
        n = _tanh(gx[:, 2 * H:] + r * gh[:, 2 * H:])
        hd = (1.0 - z) * n + z * hd
        logits = mm(hd, params["dec_w_out"]) + params["dec_b_out"]
        outs.append(logits)
        masks.append(attn)
        prev = jnp.argmax(logits, axis=-1)
    return jnp.stack(outs, axis=1), jnp.stack(masks, axis=1)


def init_params(key, V, E, H):
    ks = jax.random.split(key, 12)
    # weight matrices / embeddings stored bf16 (halves DMA + VMEM), biases f32
    w = lambda k, shape, s: (s * jax.random.normal(k, shape)).astype(jnp.bfloat16)
    b = lambda k, shape, s: (s * jax.random.normal(k, shape)).astype(jnp.float32)
    return {
        "enc_emb":    w(ks[0], (V, E), 0.2),
        "enc_w_ih":   w(ks[1], (E, 3 * H), 0.1),
        "enc_w_hh":   w(ks[2], (H, 3 * H), 0.1),
        "enc_b_ih":   b(ks[3], (1, 3 * H), 0.1),
        "enc_b_hh":   b(ks[4], (1, 3 * H), 0.1),
        "dec_emb":    w(ks[5], (V, E), 0.2),
        "dec_w_ih_e": w(ks[6], (E, 3 * H), 0.1),
        "dec_w_ih_c": w(ks[7], (H, 3 * H), 0.1),
        "dec_w_hh":   w(ks[8], (H, 3 * H), 0.1),
        "dec_b_ih":   b(ks[9], (1, 3 * H), 0.1),
        "dec_b_hh":   b(ks[10], (1, 3 * H), 0.1),
        "dec_w_out":  w(ks[11], (H, V), 0.1),
        "dec_b_out":  jnp.zeros((1, V), jnp.float32),
    }


if __name__ == "__main__":
    B, T_ENC, T_DEC, V, E, H = 2, 16, 16, 16, 64, 128
    key = jax.random.PRNGKey(0)
    k_par, k_src = jax.random.split(key)
    params = init_params(k_par, V, E, H)
    source = jax.random.randint(k_src, (B, T_ENC), 0, V, dtype=jnp.int32)

    outputs, masks = seq2seq_forward(source, params, T_DEC)
    outputs = jax.block_until_ready(outputs)
    masks = jax.block_until_ready(masks)

    ref_out, ref_masks = reference_forward(source, params, T_DEC)
    assert outputs.shape == (B, T_DEC, V) and masks.shape == (B, T_DEC, T_ENC)
    assert jnp.allclose(outputs, ref_out, atol=1e-2, rtol=1e-2), \
        f"max|dlogits|={float(jnp.max(jnp.abs(outputs - ref_out)))}"
    assert jnp.allclose(masks, ref_masks, atol=1e-2, rtol=1e-2), \
        f"max|dattn|={float(jnp.max(jnp.abs(masks - ref_masks)))}"
    # (exact greedy-token-match assert dropped per review: fragile on bf16 near-ties)

    print("KERNEL_OK")
</pallas_src>

<mosaic_0001>
module attributes {stable_mosaic.version = 11 : i64} {
  func.func @_encoder_kernel(%arg0: i32, %arg1: memref<8x8x64xbf16, #tpu.memory_space<vmem>>, %arg2: memref<64x384xbf16, #tpu.memory_space<vmem>>, %arg3: memref<128x384xbf16, #tpu.memory_space<vmem>>, %arg4: memref<1x384xf32, #tpu.memory_space<vmem>>, %arg5: memref<1x384xf32, #tpu.memory_space<vmem>>, %arg6: memref<8x8x128xbf16, #tpu.memory_space<vmem>>, %arg7: memref<8x128xf32, #tpu.memory_space<vmem>>) attributes {dimension_semantics = [#tpu.dimension_semantics<arbitrary>], iteration_bounds = array<i64: 2>, scalar_prefetch = 0 : i64, scratch_operands = 1 : i64, tpu.core_type = #tpu.core_type<tc>, window_params = [{transform_indices = @transform_0, window_bounds = array<i64: 8, 8, 64>}, {pipeline_mode = #tpu.pipeline_mode<synchronous>, transform_indices = @transform_1, window_bounds = array<i64: 64, 384>}, {pipeline_mode = #tpu.pipeline_mode<synchronous>, transform_indices = @transform_2, window_bounds = array<i64: 128, 384>}, {pipeline_mode = #tpu.pipeline_mode<synchronous>, transform_indices = @transform_3, window_bounds = array<i64: 1, 384>}, {pipeline_mode = #tpu.pipeline_mode<synchronous>, transform_indices = @transform_4, window_bounds = array<i64: 1, 384>}, {transform_indices = @transform_5, window_bounds = array<i64: 8, 8, 128>}]} {
    %c0_i32 = arith.constant 0 : i32
    %0 = arith.cmpi eq, %arg0, %c0_i32 : i32
    %1 = arith.extui %0 : i1 to i32
    %c0_i32_0 = arith.constant 0 : i32
    %2 = arith.cmpi ne, %1, %c0_i32_0 : i32
    scf.if %2 {
      %cst_128 = arith.constant 0.000000e+00 : f32
      %393 = vector.broadcast %cst_128 : f32 to vector<8x128xf32>
      %c0_129 = arith.constant 0 : index
      %c0_130 = arith.constant 0 : index
      %394 = vector.load %arg7[%c0_129, %c0_130] : memref<8x128xf32, #tpu.memory_space<vmem>>, vector<8x128xf32>
      tpu.vector_store %arg7[%c0_129, %c0_130], %393 {strides = array<i32>} : memref<8x128xf32, #tpu.memory_space<vmem>>, vector<8x128xf32>,
    } else {
    }
    %c0 = arith.constant 0 : index
    %c0_1 = arith.constant 0 : index
    %c0_2 = arith.constant 0 : index
    %3 = vector.load %arg1[%c0, %c0_1, %c0_2] : memref<8x8x64xbf16, #tpu.memory_space<vmem>>, vector<8x8x64xbf16>
    %4 = vector.shape_cast %3 : vector<8x8x64xbf16> to vector<64x64xbf16>
    %c0_3 = arith.constant 0 : index
    %c0_4 = arith.constant 0 : index
    %5 = vector.load %arg2[%c0_3, %c0_4] : memref<64x384xbf16, #tpu.memory_space<vmem>>, vector<64x384xbf16>
    %cst = arith.constant dense<0.000000e+00> : vector<64x384xf32>
    %6 = tpu.matmul %4, %5, %cst {dimension_numbers = #tpu.dot_dimension_numbers<[1], [0], [0], [1], [0, 0, 1, 1], [], []>} : vector<64x64xbf16>, vector<64x384xbf16>, vector<64x384xf32> -> vector<64x384xf32>
    %c0_5 = arith.constant 0 : index
    %c0_6 = arith.constant 0 : index
    %7 = vector.load %arg4[%c0_5, %c0_6] : memref<1x384xf32, #tpu.memory_space<vmem>>, vector<1x384xf32>
    %8 = vector.broadcast %7 : vector<1x384xf32> to vector<64x384xf32>
    %9 = arith.addf %6, %8 : vector<64x384xf32>
    %10 = vector.shape_cast %9 : vector<64x384xf32> to vector<8x8x384xf32>
    %c0_7 = arith.constant 0 : index
    %c0_8 = arith.constant 0 : index
    %11 = vector.load %arg3[%c0_7, %c0_8] : memref<128x384xbf16, #tpu.memory_space<vmem>>, vector<128x384xbf16>
    %c0_9 = arith.constant 0 : index
    %c0_10 = arith.constant 0 : index
    %12 = vector.load %arg5[%c0_9, %c0_10] : memref<1x384xf32, #tpu.memory_space<vmem>>, vector<1x384xf32>
    %13 = vector.shape_cast %12 : vector<1x384xf32> to vector<1x384xf32>
    %14 = vector.broadcast %13 : vector<1x384xf32> to vector<8x384xf32>
    %c0_11 = arith.constant 0 : index
    %c0_12 = arith.constant 0 : index
    %15 = vector.load %arg7[%c0_11, %c0_12] : memref<8x128xf32, #tpu.memory_space<vmem>>, vector<8x128xf32>
    %16 = vector.extract_strided_slice %10 {offsets = [0, 0, 0], sizes = [8, 1, 384], strides = [1, 1, 1]} : vector<8x8x384xf32> to vector<8x1x384xf32>
    %17 = vector.shape_cast %16 : vector<8x1x384xf32> to vector<8x384xf32>
    %18 = arith.truncf %15 : vector<8x128xf32> to vector<8x128xbf16>
    %cst_13 = arith.constant dense<0.000000e+00> : vector<8x384xf32>
    %19 = tpu.matmul %18, %11, %cst_13 {dimension_numbers = #tpu.dot_dimension_numbers<[1], [0], [0], [1], [0, 0, 1, 1], [], []>} : vector<8x128xbf16>, vector<128x384xbf16>, vector<8x384xf32> -> vector<8x384xf32>
    %20 = arith.addf %19, %14 : vector<8x384xf32>
    %21 = vector.extract_strided_slice %17 {offsets = [0, 0], sizes = [8, 128], strides = [1, 1]} : vector<8x384xf32> to vector<8x128xf32>
    %22 = vector.extract_strided_slice %20 {offsets = [0, 0], sizes = [8, 128], strides = [1, 1]} : vector<8x384xf32> to vector<8x128xf32>
    %23 = arith.addf %21, %22 : vector<8x128xf32>
    %cst_14 = arith.constant 0.000000e+00 : f32
    %24 = vector.broadcast %cst_14 : f32 to vector<8x128xf32>
    %25 = arith.subf %24, %23 : vector<8x128xf32>
    %26 = math.exp %25 : vector<8x128xf32>
    %cst_15 = arith.constant 1.000000e+00 : f32
    %27 = vector.broadcast %cst_15 : f32 to vector<8x128xf32>
    %28 = arith.addf %27, %26 : vector<8x128xf32>
    %cst_16 = arith.constant 1.000000e+00 : f32
    %29 = vector.broadcast %cst_16 : f32 to vector<8x128xf32>
    %30 = arith.divf %29, %28 : vector<8x128xf32>
    %31 = vector.extract_strided_slice %17 {offsets = [0, 128], sizes = [8, 128], strides = [1, 1]} : vector<8x384xf32> to vector<8x128xf32>
    %32 = vector.extract_strided_slice %20 {offsets = [0, 128], sizes = [8, 128], strides = [1, 1]} : vector<8x384xf32> to vector<8x128xf32>
    %33 = arith.addf %31, %32 : vector<8x128xf32>
    %cst_17 = arith.constant 0.000000e+00 : f32
    %34 = vector.broadcast %cst_17 : f32 to vector<8x128xf32>
    %35 = arith.subf %34, %33 : vector<8x128xf32>
    %36 = math.exp %35 : vector<8x128xf32>
    %cst_18 = arith.constant 1.000000e+00 : f32
    %37 = vector.broadcast %cst_18 : f32 to vector<8x128xf32>
    %38 = arith.addf %37, %36 : vector<8x128xf32>
    %cst_19 = arith.constant 1.000000e+00 : f32
    %39 = vector.broadcast %cst_19 : f32 to vector<8x128xf32>
    %40 = arith.divf %39, %38 : vector<8x128xf32>
    %41 = vector.extract_strided_slice %17 {offsets = [0, 256], sizes = [8, 128], strides = [1, 1]} : vector<8x384xf32> to vector<8x128xf32>
    %42 = vector.extract_strided_slice %20 {offsets = [0, 256], sizes = [8, 128], strides = [1, 1]} : vector<8x384xf32> to vector<8x128xf32>
    %43 = arith.mulf %30, %42 : vector<8x128xf32>
    %44 = arith.addf %41, %43 : vector<8x128xf32>
    %cst_20 = arith.constant -2.000000e+00 : f32
    %45 = vector.broadcast %cst_20 : f32 to vector<8x128xf32>
    %46 = arith.mulf %45, %44 : vector<8x128xf32>
    %47 = math.exp %46 : vector<8x128xf32>
    %cst_21 = arith.constant 1.000000e+00 : f32
    %48 = vector.broadcast %cst_21 : f32 to vector<8x128xf32>
    %49 = arith.addf %48, %47 : vector<8x128xf32>
    %cst_22 = arith.constant 2.000000e+00 : f32
    %50 = vector.broadcast %cst_22 : f32 to vector<8x128xf32>
    %51 = arith.divf %50, %49 : vector<8x128xf32>
    %cst_23 = arith.constant 1.000000e+00 : f32
    %52 = vector.broadcast %cst_23 : f32 to vector<8x128xf32>
    %53 = arith.subf %51, %52 : vector<8x128xf32>
    %cst_24 = arith.constant 1.000000e+00 : f32
    %54 = vector.broadcast %cst_24 : f32 to vector<8x128xf32>
    %55 = arith.subf %54, %40 : vector<8x128xf32>
    %56 = arith.mulf %55, %53 : vector<8x128xf32>
    %57 = arith.mulf %40, %15 : vector<8x128xf32>
    %58 = arith.addf %56, %57 : vector<8x128xf32>
    %59 = arith.truncf %58 : vector<8x128xf32> to vector<8x128xbf16>
    %c0_25 = arith.constant 0 : index
    %c0_26 = arith.constant 0 : index
    %c0_27 = arith.constant 0 : index
    %60 = vector.load %arg6[%c0_25, %c0_26, %c0_27] : memref<8x8x128xbf16, #tpu.memory_space<vmem>>, vector<8x1x128xbf16>
    %61 = vector.shape_cast %60 : vector<8x1x128xbf16> to vector<8x128xbf16>
    %62 = vector.shape_cast %59 : vector<8x128xbf16> to vector<8x1x128xbf16>
    tpu.vector_store %arg6[%c0_25, %c0_26, %c0_27], %62 {strides = array<i32>} : memref<8x8x128xbf16, #tpu.memory_space<vmem>>, vector<8x1x128xbf16>,
    %63 = vector.extract_strided_slice %10 {offsets = [0, 1, 0], sizes = [8, 1, 384], strides = [1, 1, 1]} : vector<8x8x384xf32> to vector<8x1x384xf32>
    %64 = vector.shape_cast %63 : vector<8x1x384xf32> to vector<8x384xf32>
    %65 = arith.truncf %58 : vector<8x128xf32> to vector<8x128xbf16>
    %cst_28 = arith.constant dense<0.000000e+00> : vector<8x384xf32>
    %66 = tpu.matmul %65, %11, %cst_28 {dimension_numbers = #tpu.dot_dimension_numbers<[1], [0], [0], [1], [0, 0, 1, 1], [], []>} : vector<8x128xbf16>, vector<128x384xbf16>, vector<8x384xf32> -> vector<8x384xf32>
    %67 = arith.addf %66, %14 : vector<8x384xf32>
    %68 = vector.extract_strided_slice %64 {offsets = [0, 0], sizes = [8, 128], strides = [1, 1]} : vector<8x384xf32> to vector<8x128xf32>
    %69 = vector.extract_strided_slice %67 {offsets = [0, 0], sizes = [8, 128], strides = [1, 1]} : vector<8x384xf32> to vector<8x128xf32>
    %70 = arith.addf %68, %69 : vector<8x128xf32>
    %cst_29 = arith.constant 0.000000e+00 : f32
    %71 = vector.broadcast %cst_29 : f32 to vector<8x128xf32>
    %72 = arith.subf %71, %70 : vector<8x128xf32>
    %73 = math.exp %72 : vector<8x128xf32>
    %cst_30 = arith.constant 1.000000e+00 : f32
    %74 = vector.broadcast %cst_30 : f32 to vector<8x128xf32>
    %75 = arith.addf %74, %73 : vector<8x128xf32>
    %cst_31 = arith.constant 1.000000e+00 : f32
    %76 = vector.broadcast %cst_31 : f32 to vector<8x128xf32>
    %77 = arith.divf %76, %75 : vector<8x128xf32>
    %78 = vector.extract_strided_slice %64 {offsets = [0, 128], sizes = [8, 128], strides = [1, 1]} : vector<8x384xf32> to vector<8x128xf32>
    %79 = vector.extract_strided_slice %67 {offsets = [0, 128], sizes = [8, 128], strides = [1, 1]} : vector<8x384xf32> to vector<8x128xf32>
    %80 = arith.addf %78, %79 : vector<8x128xf32>
    %cst_32 = arith.constant 0.000000e+00 : f32
    %81 = vector.broadcast %cst_32 : f32 to vector<8x128xf32>
    %82 = arith.subf %81, %80 : vector<8x128xf32>
    %83 = math.exp %82 : vector<8x128xf32>
    %cst_33 = arith.constant 1.000000e+00 : f32
    %84 = vector.broadcast %cst_33 : f32 to vector<8x128xf32>
    %85 = arith.addf %84, %83 : vector<8x128xf32>
    %cst_34 = arith.constant 1.000000e+00 : f32
    %86 = vector.broadcast %cst_34 : f32 to vector<8x128xf32>
    %87 = arith.divf %86, %85 : vector<8x128xf32>
    %88 = vector.extract_strided_slice %64 {offsets = [0, 256], sizes = [8, 128], strides = [1, 1]} : vector<8x384xf32> to vector<8x128xf32>
    %89 = vector.extract_strided_slice %67 {offsets = [0, 256], sizes = [8, 128], strides = [1, 1]} : vector<8x384xf32> to vector<8x128xf32>
    %90 = arith.mulf %77, %89 : vector<8x128xf32>
    %91 = arith.addf %88, %90 : vector<8x128xf32>
    %cst_35 = arith.constant -2.000000e+00 : f32
    %92 = vector.broadcast %cst_35 : f32 to vector<8x128xf32>
    %93 = arith.mulf %92, %91 : vector<8x128xf32>
    %94 = math.exp %93 : vector<8x128xf32>
    %cst_36 = arith.constant 1.000000e+00 : f32
    %95 = vector.broadcast %cst_36 : f32 to vector<8x128xf32>
    %96 = arith.addf %95, %94 : vector<8x128xf32>
    %cst_37 = arith.constant 2.000000e+00 : f32
    %97 = vector.broadcast %cst_37 : f32 to vector<8x128xf32>
    %98 = arith.divf %97, %96 : vector<8x128xf32>
    %cst_38 = arith.constant 1.000000e+00 : f32
    %99 = vector.broadcast %cst_38 : f32 to vector<8x128xf32>
    %100 = arith.subf %98, %99 : vector<8x128xf32>
    %cst_39 = arith.constant 1.000000e+00 : f32
    %101 = vector.broadcast %cst_39 : f32 to vector<8x128xf32>
    %102 = arith.subf %101, %87 : vector<8x128xf32>
    %103 = arith.mulf %102, %100 : vector<8x128xf32>
    %104 = arith.mulf %87, %58 : vector<8x128xf32>
    %105 = arith.addf %103, %104 : vector<8x128xf32>
    %106 = arith.truncf %105 : vector<8x128xf32> to vector<8x128xbf16>
    %c0_40 = arith.constant 0 : index
    %c1 = arith.constant 1 : index
    %c0_41 = arith.constant 0 : index
    %107 = vector.load %arg6[%c0_40, %c1, %c0_41] : memref<8x8x128xbf16, #tpu.memory_space<vmem>>, vector<8x1x128xbf16>
    %108 = vector.shape_cast %107 : vector<8x1x128xbf16> to vector<8x128xbf16>
    %109 = vector.shape_cast %106 : vector<8x128xbf16> to vector<8x1x128xbf16>
    tpu.vector_store %arg6[%c0_40, %c1, %c0_41], %109 {strides = array<i32>} : memref<8x8x128xbf16, #tpu.memory_space<vmem>>, vector<8x1x128xbf16>,
    %110 = vector.extract_strided_slice %10 {offsets = [0, 2, 0], sizes = [8, 1, 384], strides = [1, 1, 1]} : vector<8x8x384xf32> to vector<8x1x384xf32>
    %111 = vector.shape_cast %110 : vector<8x1x384xf32> to vector<8x384xf32>
    %112 = arith.truncf %105 : vector<8x128xf32> to vector<8x128xbf16>
    %cst_42 = arith.constant dense<0.000000e+00> : vector<8x384xf32>
    %113 = tpu.matmul %112, %11, %cst_42 {dimension_numbers = #tpu.dot_dimension_numbers<[1], [0], [0], [1], [0, 0, 1, 1], [], []>} : vector<8x128xbf16>, vector<128x384xbf16>, vector<8x384xf32> -> vector<8x384xf32>
    %114 = arith.addf %113, %14 : vector<8x384xf32>
    %115 = vector.extract_strided_slice %111 {offsets = [0, 0], sizes = [8, 128], strides = [1, 1]} : vector<8x384xf32> to vector<8x128xf32>
    %116 = vector.extract_strided_slice %114 {offsets = [0, 0], sizes = [8, 128], strides = [1, 1]} : vector<8x384xf32> to vector<8x128xf32>
    %117 = arith.addf %115, %116 : vector<8x128xf32>
    %cst_43 = arith.constant 0.000000e+00 : f32
    %118 = vector.broadcast %cst_43 : f32 to vector<8x128xf32>
    %119 = arith.subf %118, %117 : vector<8x128xf32>
    %120 = math.exp %119 : vector<8x128xf32>
    %cst_44 = arith.constant 1.000000e+00 : f32
    %121 = vector.broadcast %cst_44 : f32 to vector<8x128xf32>
    %122 = arith.addf %121, %120 : vector<8x128xf32>
    %cst_45 = arith.constant 1.000000e+00 : f32
    %123 = vector.broadcast %cst_45 : f32 to vector<8x128xf32>
    %124 = arith.divf %123, %122 : vector<8x128xf32>
    %125 = vector.extract_strided_slice %111 {offsets = [0, 128], sizes = [8, 128], strides = [1, 1]} : vector<8x384xf32> to vector<8x128xf32>
    %126 = vector.extract_strided_slice %114 {offsets = [0, 128], sizes = [8, 128], strides = [1, 1]} : vector<8x384xf32> to vector<8x128xf32>
    %127 = arith.addf %125, %126 : vector<8x128xf32>
    %cst_46 = arith.constant 0.000000e+00 : f32
    %128 = vector.broadcast %cst_46 : f32 to vector<8x128xf32>
    %129 = arith.subf %128, %127 : vector<8x128xf32>
    %130 = math.exp %129 : vector<8x128xf32>
    %cst_47 = arith.constant 1.000000e+00 : f32
    %131 = vector.broadcast %cst_47 : f32 to vector<8x128xf32>
    %132 = arith.addf %131, %130 : vector<8x128xf32>
    %cst_48 = arith.constant 1.000000e+00 : f32
    %133 = vector.broadcast %cst_48 : f32 to vector<8x128xf32>
    %134 = arith.divf %133, %132 : vector<8x128xf32>
    %135 = vector.extract_strided_slice %111 {offsets = [0, 256], sizes = [8, 128], strides = [1, 1]} : vector<8x384xf32> to vector<8x128xf32>
    %136 = vector.extract_strided_slice %114 {offsets = [0, 256], sizes = [8, 128], strides = [1, 1]} : vector<8x384xf32> to vector<8x128xf32>
    %137 = arith.mulf %124, %136 : vector<8x128xf32>
    %138 = arith.addf %135, %137 : vector<8x128xf32>
    %cst_49 = arith.constant -2.000000e+00 : f32
    %139 = vector.broadcast %cst_49 : f32 to vector<8x128xf32>
    %140 = arith.mulf %139, %138 : vector<8x128xf32>
    %141 = math.exp %140 : vector<8x128xf32>
    %cst_50 = arith.constant 1.000000e+00 : f32
    %142 = vector.broadcast %cst_50 : f32 to vector<8x128xf32>
    %143 = arith.addf %142, %141 : vector<8x128xf32>
    %cst_51 = arith.constant 2.000000e+00 : f32
    %144 = vector.broadcast %cst_51 : f32 to vector<8x128xf32>
    %145 = arith.divf %144, %143 : vector<8x128xf32>
    %cst_52 = arith.constant 1.000000e+00 : f32
    %146 = vector.broadcast %cst_52 : f32 to vector<8x128xf32>
    %147 = arith.subf %145, %146 : vector<8x128xf32>
    %cst_53 = arith.constant 1.000000e+00 : f32
    %148 = vector.broadcast %cst_53 : f32 to vector<8x128xf32>
    %149 = arith.subf %148, %134 : vector<8x128xf32>
    %150 = arith.mulf %149, %147 : vector<8x128xf32>
    %151 = arith.mulf %134, %105 : vector<8x128xf32>
    %152 = arith.addf %150, %151 : vector<8x128xf32>
    %153 = arith.truncf %152 : vector<8x128xf32> to vector<8x128xbf16>
    %c0_54 = arith.constant 0 : index
    %c2 = arith.constant 2 : index
    %c0_55 = arith.constant 0 : index
    %154 = vector.load %arg6[%c0_54, %c2, %c0_55] : memref<8x8x128xbf16, #tpu.memory_space<vmem>>, vector<8x1x128xbf16>
    %155 = vector.shape_cast %154 : vector<8x1x128xbf16> to vector<8x128xbf16>
    %156 = vector.shape_cast %153 : vector<8x128xbf16> to vector<8x1x128xbf16>
    tpu.vector_store %arg6[%c0_54, %c2, %c0_55], %156 {strides = array<i32>} : memref<8x8x128xbf16, #tpu.memory_space<vmem>>, vector<8x1x128xbf16>,
    %157 = vector.extract_strided_slice %10 {offsets = [0, 3, 0], sizes = [8, 1, 384], strides = [1, 1, 1]} : vector<8x8x384xf32> to vector<8x1x384xf32>
    %158 = vector.shape_cast %157 : vector<8x1x384xf32> to vector<8x384xf32>
    %159 = arith.truncf %152 : vector<8x128xf32> to vector<8x128xbf16>
    %cst_56 = arith.constant dense<0.000000e+00> : vector<8x384xf32>
    %160 = tpu.matmul %159, %11, %cst_56 {dimension_numbers = #tpu.dot_dimension_numbers<[1], [0], [0], [1], [0, 0, 1, 1], [], []>} : vector<8x128xbf16>, vector<128x384xbf16>, vector<8x384xf32> -> vector<8x384xf32>
    %161 = arith.addf %160, %14 : vector<8x384xf32>
    %162 = vector.extract_strided_slice %158 {offsets = [0, 0], sizes = [8, 128], strides = [1, 1]} : vector<8x384xf32> to vector<8x128xf32>
    %163 = vector.extract_strided_slice %161 {offsets = [0, 0], sizes = [8, 128], strides = [1, 1]} : vector<8x384xf32> to vector<8x128xf32>
    %164 = arith.addf %162, %163 : vector<8x128xf32>
    %cst_57 = arith.constant 0.000000e+00 : f32
    %165 = vector.broadcast %cst_57 : f32 to vector<8x128xf32>
    %166 = arith.subf %165, %164 : vector<8x128xf32>
    %167 = math.exp %166 : vector<8x128xf32>
    %cst_58 = arith.constant 1.000000e+00 : f32
    %168 = vector.broadcast %cst_58 : f32 to vector<8x128xf32>
    %169 = arith.addf %168, %167 : vector<8x128xf32>
    %cst_59 = arith.constant 1.000000e+00 : f32
    %170 = vector.broadcast %cst_59 : f32 to vector<8x128xf32>
    %171 = arith.divf %170, %169 : vector<8x128xf32>
    %172 = vector.extract_strided_slice %158 {offsets = [0, 128], sizes = [8, 128], strides = [1, 1]} : vector<8x384xf32> to vector<8x128xf32>
    %173 = vector.extract_strided_slice %161 {offsets = [0, 128], sizes = [8, 128], strides = [1, 1]} : vector<8x384xf32> to vector<8x128xf32>
    %174 = arith.addf %172, %173 : vector<8x128xf32>
    %cst_60 = arith.constant 0.000000e+00 : f32
    %175 = vector.broadcast %cst_60 : f32 to vector<8x128xf32>
    %176 = arith.subf %175, %174 : vector<8x128xf32>
    %177 = math.exp %176 : vector<8x128xf32>
    %cst_61 = arith.constant 1.000000e+00 : f32
    %178 = vector.broadcast %cst_61 : f32 to vector<8x128xf32>
    %179 = arith.addf %178, %177 : vector<8x128xf32>
    %cst_62 = arith.constant 1.000000e+00 : f32
    %180 = vector.broadcast %cst_62 : f32 to vector<8x128xf32>
    %181 = arith.divf %180, %179 : vector<8x128xf32>
    %182 = vector.extract_strided_slice %158 {offsets = [0, 256], sizes = [8, 128], strides = [1, 1]} : vector<8x384xf32> to vector<8x128xf32>
    %183 = vector.extract_strided_slice %161 {offsets = [0, 256], sizes = [8, 128], strides = [1, 1]} : vector<8x384xf32> to vector<8x128xf32>
    %184 = arith.mulf %171, %183 : vector<8x128xf32>
    %185 = arith.addf %182, %184 : vector<8x128xf32>
    %cst_63 = arith.constant -2.000000e+00 : f32
    %186 = vector.broadcast %cst_63 : f32 to vector<8x128xf32>
    %187 = arith.mulf %186, %185 : vector<8x128xf32>
    %188 = math.exp %187 : vector<8x128xf32>
    %cst_64 = arith.constant 1.000000e+00 : f32
    %189 = vector.broadcast %cst_64 : f32 to vector<8x128xf32>
    %190 = arith.addf %189, %188 : vector<8x128xf32>
    %cst_65 = arith.constant 2.000000e+00 : f32
    %191 = vector.broadcast %cst_65 : f32 to vector<8x128xf32>
    %192 = arith.divf %191, %190 : vector<8x128xf32>
    %cst_66 = arith.constant 1.000000e+00 : f32
    %193 = vector.broadcast %cst_66 : f32 to vector<8x128xf32>
    %194 = arith.subf %192, %193 : vector<8x128xf32>
    %cst_67 = arith.constant 1.000000e+00 : f32
    %195 = vector.broadcast %cst_67 : f32 to vector<8x128xf32>
    %196 = arith.subf %195, %181 : vector<8x128xf32>
    %197 = arith.mulf %196, %194 : vector<8x128xf32>
    %198 = arith.mulf %181, %152 : vector<8x128xf32>
    %199 = arith.addf %197, %198 : vector<8x128xf32>
    %200 = arith.truncf %199 : vector<8x128xf32> to vector<8x128xbf16>
    %c0_68 = arith.constant 0 : index
    %c3 = arith.constant 3 : index
    %c0_69 = arith.constant 0 : index
    %201 = vector.load %arg6[%c0_68, %c3, %c0_69] : memref<8x8x128xbf16, #tpu.memory_space<vmem>>, vector<8x1x128xbf16>
    %202 = vector.shape_cast %201 : vector<8x1x128xbf16> to vector<8x128xbf16>
    %203 = vector.shape_cast %200 : vector<8x128xbf16> to vector<8x1x128xbf16>
    tpu.vector_store %arg6[%c0_68, %c3, %c0_69], %203 {strides = array<i32>} : memref<8x8x128xbf16, #tpu.memory_space<vmem>>, vector<8x1x128xbf16>,
    %204 = vector.extract_strided_slice %10 {offsets = [0, 4, 0], sizes = [8, 1, 384], strides = [1, 1, 1]} : vector<8x8x384xf32> to vector<8x1x384xf32>
    %205 = vector.shape_cast %204 : vector<8x1x384xf32> to vector<8x384xf32>
    %206 = arith.truncf %199 : vector<8x128xf32> to vector<8x128xbf16>
    %cst_70 = arith.constant dense<0.000000e+00> : vector<8x384xf32>
    %207 = tpu.matmul %206, %11, %cst_70 {dimension_numbers = #tpu.dot_dimension_numbers<[1], [0], [0], [1], [0, 0, 1, 1], [], []>} : vector<8x128xbf16>, vector<128x384xbf16>, vector<8x384xf32> -> vector<8x384xf32>
    %208 = arith.addf %207, %14 : vector<8x384xf32>
    %209 = vector.extract_strided_slice %205 {offsets = [0, 0], sizes = [8, 128], strides = [1, 1]} : vector<8x384xf32> to vector<8x128xf32>
    %210 = vector.extract_strided_slice %208 {offsets = [0, 0], sizes = [8, 128], strides = [1, 1]} : vector<8x384xf32> to vector<8x128xf32>
    %211 = arith.addf %209, %210 : vector<8x128xf32>
    %cst_71 = arith.constant 0.000000e+00 : f32
    %212 = vector.broadcast %cst_71 : f32 to vector<8x128xf32>
    %213 = arith.subf %212, %211 : vector<8x128xf32>
    %214 = math.exp %213 : vector<8x128xf32>
    %cst_72 = arith.constant 1.000000e+00 : f32
    %215 = vector.broadcast %cst_72 : f32 to vector<8x128xf32>
    %216 = arith.addf %215, %214 : vector<8x128xf32>
    %cst_73 = arith.constant 1.000000e+00 : f32
    %217 = vector.broadcast %cst_73 : f32 to vector<8x128xf32>
    %218 = arith.divf %217, %216 : vector<8x128xf32>
    %219 = vector.extract_strided_slice %205 {offsets = [0, 128], sizes = [8, 128], strides = [1, 1]} : vector<8x384xf32> to vector<8x128xf32>
    %220 = vector.extract_strided_slice %208 {offsets = [0, 128], sizes = [8, 128], strides = [1, 1]} : vector<8x384xf32> to vector<8x128xf32>
    %221 = arith.addf %219, %220 : vector<8x128xf32>
    %cst_74 = arith.constant 0.000000e+00 : f32
    %222 = vector.broadcast %cst_74 : f32 to vector<8x128xf32>
    %223 = arith.subf %222, %221 : vector<8x128xf32>
    %224 = math.exp %223 : vector<8x128xf32>
    %cst_75 = arith.constant 1.000000e+00 : f32
    %225 = vector.broadcast %cst_75 : f32 to vector<8x128xf32>
    %226 = arith.addf %225, %224 : vector<8x128xf32>
    %cst_76 = arith.constant 1.000000e+00 : f32
    %227 = vector.broadcast %cst_76 : f32 to vector<8x128xf32>
    %228 = arith.divf %227, %226 : vector<8x128xf32>
    %229 = vector.extract_strided_slice %205 {offsets = [0, 256], sizes = [8, 128], strides = [1, 1]} : vector<8x384xf32> to vector<8x128xf32>
    %230 = vector.extract_strided_slice %208 {offsets = [0, 256], sizes = [8, 128], strides = [1, 1]} : vector<8x384xf32> to vector<8x128xf32>
    %231 = arith.mulf %218, %230 : vector<8x128xf32>
    %232 = arith.addf %229, %231 : vector<8x128xf32>
    %cst_77 = arith.constant -2.000000e+00 : f32
    %233 = vector.broadcast %cst_77 : f32 to vector<8x128xf32>
    %234 = arith.mulf %233, %232 : vector<8x128xf32>
    %235 = math.exp %234 : vector<8x128xf32>
    %cst_78 = arith.constant 1.000000e+00 : f32
    %236 = vector.broadcast %cst_78 : f32 to vector<8x128xf32>
    %237 = arith.addf %236, %235 : vector<8x128xf32>
    %cst_79 = arith.constant 2.000000e+00 : f32
    %238 = vector.broadcast %cst_79 : f32 to vector<8x128xf32>
    %239 = arith.divf %238, %237 : vector<8x128xf32>
    %cst_80 = arith.constant 1.000000e+00 : f32
    %240 = vector.broadcast %cst_80 : f32 to vector<8x128xf32>
    %241 = arith.subf %239, %240 : vector<8x128xf32>
    %cst_81 = arith.constant 1.000000e+00 : f32
    %242 = vector.broadcast %cst_81 : f32 to vector<8x128xf32>
    %243 = arith.subf %242, %228 : vector<8x128xf32>
    %244 = arith.mulf %243, %241 : vector<8x128xf32>
    %245 = arith.mulf %228, %199 : vector<8x128xf32>
    %246 = arith.addf %244, %245 : vector<8x128xf32>
    %247 = arith.truncf %246 : vector<8x128xf32> to vector<8x128xbf16>
    %c0_82 = arith.constant 0 : index
    %c4 = arith.constant 4 : index
    %c0_83 = arith.constant 0 : index
    %248 = vector.load %arg6[%c0_82, %c4, %c0_83] : memref<8x8x128xbf16, #tpu.memory_space<vmem>>, vector<8x1x128xbf16>
    %249 = vector.shape_cast %248 : vector<8x1x128xbf16> to vector<8x128xbf16>
    %250 = vector.shape_cast %247 : vector<8x128xbf16> to vector<8x1x128xbf16>
    tpu.vector_store %arg6[%c0_82, %c4, %c0_83], %250 {strides = array<i32>} : memref<8x8x128xbf16, #tpu.memory_space<vmem>>, vector<8x1x128xbf16>,
    %251 = vector.extract_strided_slice %10 {offsets = [0, 5, 0], sizes = [8, 1, 384], strides = [1, 1, 1]} : vector<8x8x384xf32> to vector<8x1x384xf32>
    %252 = vector.shape_cast %251 : vector<8x1x384xf32> to vector<8x384xf32>
    %253 = arith.truncf %246 : vector<8x128xf32> to vector<8x128xbf16>
    %cst_84 = arith.constant dense<0.000000e+00> : vector<8x384xf32>
    %254 = tpu.matmul %253, %11, %cst_84 {dimension_numbers = #tpu.dot_dimension_numbers<[1], [0], [0], [1], [0, 0, 1, 1], [], []>} : vector<8x128xbf16>, vector<128x384xbf16>, vector<8x384xf32> -> vector<8x384xf32>
    %255 = arith.addf %254, %14 : vector<8x384xf32>
    %256 = vector.extract_strided_slice %252 {offsets = [0, 0], sizes = [8, 128], strides = [1, 1]} : vector<8x384xf32> to vector<8x128xf32>
    %257 = vector.extract_strided_slice %255 {offsets = [0, 0], sizes = [8, 128], strides = [1, 1]} : vector<8x384xf32> to vector<8x128xf32>
    %258 = arith.addf %256, %257 : vector<8x128xf32>
    %cst_85 = arith.constant 0.000000e+00 : f32
    %259 = vector.broadcast %cst_85 : f32 to vector<8x128xf32>
    %260 = arith.subf %259, %258 : vector<8x128xf32>
    %261 = math.exp %260 : vector<8x128xf32>
    %cst_86 = arith.constant 1.000000e+00 : f32
    %262 = vector.broadcast %cst_86 : f32 to vector<8x128xf32>
    %263 = arith.addf %262, %261 : vector<8x128xf32>
    %cst_87 = arith.constant 1.000000e+00 : f32
    %264 = vector.broadcast %cst_87 : f32 to vector<8x128xf32>
    %265 = arith.divf %264, %263 : vector<8x128xf32>
    %266 = vector.extract_strided_slice %252 {offsets = [0, 128], sizes = [8, 128], strides = [1, 1]} : vector<8x384xf32> to vector<8x128xf32>
    %267 = vector.extract_strided_slice %255 {offsets = [0, 128], sizes = [8, 128], strides = [1, 1]} : vector<8x384xf32> to vector<8x128xf32>
    %268 = arith.addf %266, %267 : vector<8x128xf32>
    %cst_88 = arith.constant 0.000000e+00 : f32
    %269 = vector.broadcast %cst_88 : f32 to vector<8x128xf32>
    %270 = arith.subf %269, %268 : vector<8x128xf32>
    %271 = math.exp %270 : vector<8x128xf32>
    %cst_89 = arith.constant 1.000000e+00 : f32
    %272 = vector.broadcast %cst_89 : f32 to vector<8x128xf32>
    %273 = arith.addf %272, %271 : vector<8x128xf32>
    %cst_90 = arith.constant 1.000000e+00 : f32
    %274 = vector.broadcast %cst_90 : f32 to vector<8x128xf32>
    %275 = arith.divf %274, %273 : vector<8x128xf32>
    %276 = vector.extract_strided_slice %252 {offsets = [0, 256], sizes = [8, 128], strides = [1, 1]} : vector<8x384xf32> to vector<8x128xf32>
    %277 = vector.extract_strided_slice %255 {offsets = [0, 256], sizes = [8, 128], strides = [1, 1]} : vector<8x384xf32> to vector<8x128xf32>
    %278 = arith.mulf %265, %277 : vector<8x128xf32>
    %279 = arith.addf %276, %278 : vector<8x128xf32>
    %cst_91 = arith.constant -2.000000e+00 : f32
    %280 = vector.broadcast %cst_91 : f32 to vector<8x128xf32>
    %281 = arith.mulf %280, %279 : vector<8x128xf32>
    %282 = math.exp %281 : vector<8x128xf32>
    %cst_92 = arith.constant 1.000000e+00 : f32
    %283 = vector.broadcast %cst_92 : f32 to vector<8x128xf32>
    %284 = arith.addf %283, %282 : vector<8x128xf32>
    %cst_93 = arith.constant 2.000000e+00 : f32
    %285 = vector.broadcast %cst_93 : f32 to vector<8x128xf32>
    %286 = arith.divf %285, %284 : vector<8x128xf32>
    %cst_94 = arith.constant 1.000000e+00 : f32
    %287 = vector.broadcast %cst_94 : f32 to vector<8x128xf32>
    %288 = arith.subf %286, %287 : vector<8x128xf32>
    %cst_95 = arith.constant 1.000000e+00 : f32
    %289 = vector.broadcast %cst_95 : f32 to vector<8x128xf32>
    %290 = arith.subf %289, %275 : vector<8x128xf32>
    %291 = arith.mulf %290, %288 : vector<8x128xf32>
    %292 = arith.mulf %275, %246 : vector<8x128xf32>
    %293 = arith.addf %291, %292 : vector<8x128xf32>
    %294 = arith.truncf %293 : vector<8x128xf32> to vector<8x128xbf16>
    %c0_96 = arith.constant 0 : index
    %c5 = arith.constant 5 : index
    %c0_97 = arith.constant 0 : index
    %295 = vector.load %arg6[%c0_96, %c5, %c0_97] : memref<8x8x128xbf16, #tpu.memory_space<vmem>>, vector<8x1x128xbf16>
    %296 = vector.shape_cast %295 : vector<8x1x128xbf16> to vector<8x128xbf16>
    %297 = vector.shape_cast %294 : vector<8x128xbf16> to vector<8x1x128xbf16>
    tpu.vector_store %arg6[%c0_96, %c5, %c0_97], %297 {strides = array<i32>} : memref<8x8x128xbf16, #tpu.memory_space<vmem>>, vector<8x1x128xbf16>,
    %298 = vector.extract_strided_slice %10 {offsets = [0, 6, 0], sizes = [8, 1, 384], strides = [1, 1, 1]} : vector<8x8x384xf32> to vector<8x1x384xf32>
    %299 = vector.shape_cast %298 : vector<8x1x384xf32> to vector<8x384xf32>
    %300 = arith.truncf %293 : vector<8x128xf32> to vector<8x128xbf16>
    %cst_98 = arith.constant dense<0.000000e+00> : vector<8x384xf32>
    %301 = tpu.matmul %300, %11, %cst_98 {dimension_numbers = #tpu.dot_dimension_numbers<[1], [0], [0], [1], [0, 0, 1, 1], [], []>} : vector<8x128xbf16>, vector<128x384xbf16>, vector<8x384xf32> -> vector<8x384xf32>
    %302 = arith.addf %301, %14 : vector<8x384xf32>
    %303 = vector.extract_strided_slice %299 {offsets = [0, 0], sizes = [8, 128], strides = [1, 1]} : vector<8x384xf32> to vector<8x128xf32>
    %304 = vector.extract_strided_slice %302 {offsets = [0, 0], sizes = [8, 128], strides = [1, 1]} : vector<8x384xf32> to vector<8x128xf32>
    %305 = arith.addf %303, %304 : vector<8x128xf32>
    %cst_99 = arith.constant 0.000000e+00 : f32
    %306 = vector.broadcast %cst_99 : f32 to vector<8x128xf32>
    %307 = arith.subf %306, %305 : vector<8x128xf32>
    %308 = math.exp %307 : vector<8x128xf32>
    %cst_100 = arith.constant 1.000000e+00 : f32
    %309 = vector.broadcast %cst_100 : f32 to vector<8x128xf32>
    %310 = arith.addf %309, %308 : vector<8x128xf32>
    %cst_101 = arith.constant 1.000000e+00 : f32
    %311 = vector.broadcast %cst_101 : f32 to vector<8x128xf32>
    %312 = arith.divf %311, %310 : vector<8x128xf32>
    %313 = vector.extract_strided_slice %299 {offsets = [0, 128], sizes = [8, 128], strides = [1, 1]} : vector<8x384xf32> to vector<8x128xf32>
    %314 = vector.extract_strided_slice %302 {offsets = [0, 128], sizes = [8, 128], strides = [1, 1]} : vector<8x384xf32> to vector<8x128xf32>
    %315 = arith.addf %313, %314 : vector<8x128xf32>
    %cst_102 = arith.constant 0.000000e+00 : f32
    %316 = vector.broadcast %cst_102 : f32 to vector<8x128xf32>
    %317 = arith.subf %316, %315 : vector<8x128xf32>
    %318 = math.exp %317 : vector<8x128xf32>
    %cst_103 = arith.constant 1.000000e+00 : f32
    %319 = vector.broadcast %cst_103 : f32 to vector<8x128xf32>
    %320 = arith.addf %319, %318 : vector<8x128xf32>
    %cst_104 = arith.constant 1.000000e+00 : f32
    %321 = vector.broadcast %cst_104 : f32 to vector<8x128xf32>
    %322 = arith.divf %321, %320 : vector<8x128xf32>
    %323 = vector.extract_strided_slice %299 {offsets = [0, 256], sizes = [8, 128], strides = [1, 1]} : vector<8x384xf32> to vector<8x128xf32>
    %324 = vector.extract_strided_slice %302 {offsets = [0, 256], sizes = [8, 128], strides = [1, 1]} : vector<8x384xf32> to vector<8x128xf32>
    %325 = arith.mulf %312, %324 : vector<8x128xf32>
    %326 = arith.addf %323, %325 : vector<8x128xf32>
    %cst_105 = arith.constant -2.000000e+00 : f32
    %327 = vector.broadcast %cst_105 : f32 to vector<8x128xf32>
    %328 = arith.mulf %327, %326 : vector<8x128xf32>
    %329 = math.exp %328 : vector<8x128xf32>
    %cst_106 = arith.constant 1.000000e+00 : f32
    %330 = vector.broadcast %cst_106 : f32 to vector<8x128xf32>
    %331 = arith.addf %330, %329 : vector<8x128xf32>
    %cst_107 = arith.constant 2.000000e+00 : f32
    %332 = vector.broadcast %cst_107 : f32 to vector<8x128xf32>
    %333 = arith.divf %332, %331 : vector<8x128xf32>
    %cst_108 = arith.constant 1.000000e+00 : f32
    %334 = vector.broadcast %cst_108 : f32 to vector<8x128xf32>
    %335 = arith.subf %333, %334 : vector<8x128xf32>
    %cst_109 = arith.constant 1.000000e+00 : f32
    %336 = vector.broadcast %cst_109 : f32 to vector<8x128xf32>
    %337 = arith.subf %336, %322 : vector<8x128xf32>
    %338 = arith.mulf %337, %335 : vector<8x128xf32>
    %339 = arith.mulf %322, %293 : vector<8x128xf32>
    %340 = arith.addf %338, %339 : vector<8x128xf32>
    %341 = arith.truncf %340 : vector<8x128xf32> to vector<8x128xbf16>
    %c0_110 = arith.constant 0 : index
    %c6 = arith.constant 6 : index
    %c0_111 = arith.constant 0 : index
    %342 = vector.load %arg6[%c0_110, %c6, %c0_111] : memref<8x8x128xbf16, #tpu.memory_space<vmem>>, vector<8x1x128xbf16>
    %343 = vector.shape_cast %342 : vector<8x1x128xbf16> to vector<8x128xbf16>
    %344 = vector.shape_cast %341 : vector<8x128xbf16> to vector<8x1x128xbf16>
    tpu.vector_store %arg6[%c0_110, %c6, %c0_111], %344 {strides = array<i32>} : memref<8x8x128xbf16, #tpu.memory_space<vmem>>, vector<8x1x128xbf16>,
    %345 = vector.extract_strided_slice %10 {offsets = [0, 7, 0], sizes = [8, 1, 384], strides = [1, 1, 1]} : vector<8x8x384xf32> to vector<8x1x384xf32>
    %346 = vector.shape_cast %345 : vector<8x1x384xf32> to vector<8x384xf32>
    %347 = arith.truncf %340 : vector<8x128xf32> to vector<8x128xbf16>
    %cst_112 = arith.constant dense<0.000000e+00> : vector<8x384xf32>
    %348 = tpu.matmul %347, %11, %cst_112 {dimension_numbers = #tpu.dot_dimension_numbers<[1], [0], [0], [1], [0, 0, 1, 1], [], []>} : vector<8x128xbf16>, vector<128x384xbf16>, vector<8x384xf32> -> vector<8x384xf32>
    %349 = arith.addf %348, %14 : vector<8x384xf32>
    %350 = vector.extract_strided_slice %346 {offsets = [0, 0], sizes = [8, 128], strides = [1, 1]} : vector<8x384xf32> to vector<8x128xf32>
    %351 = vector.extract_strided_slice %349 {offsets = [0, 0], sizes = [8, 128], strides = [1, 1]} : vector<8x384xf32> to vector<8x128xf32>
    %352 = arith.addf %350, %351 : vector<8x128xf32>
    %cst_113 = arith.constant 0.000000e+00 : f32
    %353 = vector.broadcast %cst_113 : f32 to vector<8x128xf32>
    %354 = arith.subf %353, %352 : vector<8x128xf32>
    %355 = math.exp %354 : vector<8x128xf32>
    %cst_114 = arith.constant 1.000000e+00 : f32
    %356 = vector.broadcast %cst_114 : f32 to vector<8x128xf32>
    %357 = arith.addf %356, %355 : vector<8x128xf32>
    %cst_115 = arith.constant 1.000000e+00 : f32
    %358 = vector.broadcast %cst_115 : f32 to vector<8x128xf32>
    %359 = arith.divf %358, %357 : vector<8x128xf32>
    %360 = vector.extract_strided_slice %346 {offsets = [0, 128], sizes = [8, 128], strides = [1, 1]} : vector<8x384xf32> to vector<8x128xf32>
    %361 = vector.extract_strided_slice %349 {offsets = [0, 128], sizes = [8, 128], strides = [1, 1]} : vector<8x384xf32> to vector<8x128xf32>
    %362 = arith.addf %360, %361 : vector<8x128xf32>
    %cst_116 = arith.constant 0.000000e+00 : f32
    %363 = vector.broadcast %cst_116 : f32 to vector<8x128xf32>
    %364 = arith.subf %363, %362 : vector<8x128xf32>
    %365 = math.exp %364 : vector<8x128xf32>
    %cst_117 = arith.constant 1.000000e+00 : f32
    %366 = vector.broadcast %cst_117 : f32 to vector<8x128xf32>
    %367 = arith.addf %366, %365 : vector<8x128xf32>
    %cst_118 = arith.constant 1.000000e+00 : f32
    %368 = vector.broadcast %cst_118 : f32 to vector<8x128xf32>
    %369 = arith.divf %368, %367 : vector<8x128xf32>
    %370 = vector.extract_strided_slice %346 {offsets = [0, 256], sizes = [8, 128], strides = [1, 1]} : vector<8x384xf32> to vector<8x128xf32>
    %371 = vector.extract_strided_slice %349 {offsets = [0, 256], sizes = [8, 128], strides = [1, 1]} : vector<8x384xf32> to vector<8x128xf32>
    %372 = arith.mulf %359, %371 : vector<8x128xf32>
    %373 = arith.addf %370, %372 : vector<8x128xf32>
    %cst_119 = arith.constant -2.000000e+00 : f32
    %374 = vector.broadcast %cst_119 : f32 to vector<8x128xf32>
    %375 = arith.mulf %374, %373 : vector<8x128xf32>
    %376 = math.exp %375 : vector<8x128xf32>
    %cst_120 = arith.constant 1.000000e+00 : f32
    %377 = vector.broadcast %cst_120 : f32 to vector<8x128xf32>
    %378 = arith.addf %377, %376 : vector<8x128xf32>
    %cst_121 = arith.constant 2.000000e+00 : f32
    %379 = vector.broadcast %cst_121 : f32 to vector<8x128xf32>
    %380 = arith.divf %379, %378 : vector<8x128xf32>
    %cst_122 = arith.constant 1.000000e+00 : f32
    %381 = vector.broadcast %cst_122 : f32 to vector<8x128xf32>
    %382 = arith.subf %380, %381 : vector<8x128xf32>
    %cst_123 = arith.constant 1.000000e+00 : f32
    %383 = vector.broadcast %cst_123 : f32 to vector<8x128xf32>
    %384 = arith.subf %383, %369 : vector<8x128xf32>
    %385 = arith.mulf %384, %382 : vector<8x128xf32>
    %386 = arith.mulf %369, %340 : vector<8x128xf32>
    %387 = arith.addf %385, %386 : vector<8x128xf32>
    %388 = arith.truncf %387 : vector<8x128xf32> to vector<8x128xbf16>
    %c0_124 = arith.constant 0 : index
    %c7 = arith.constant 7 : index
    %c0_125 = arith.constant 0 : index
    %389 = vector.load %arg6[%c0_124, %c7, %c0_125] : memref<8x8x128xbf16, #tpu.memory_space<vmem>>, vector<8x1x128xbf16>
    %390 = vector.shape_cast %389 : vector<8x1x128xbf16> to vector<8x128xbf16>
    %391 = vector.shape_cast %388 : vector<8x128xbf16> to vector<8x1x128xbf16>
    tpu.vector_store %arg6[%c0_124, %c7, %c0_125], %391 {strides = array<i32>} : memref<8x8x128xbf16, #tpu.memory_space<vmem>>, vector<8x1x128xbf16>,
    %c0_126 = arith.constant 0 : index
    %c0_127 = arith.constant 0 : index
    %392 = vector.load %arg7[%c0_126, %c0_127] : memref<8x128xf32, #tpu.memory_space<vmem>>, vector<8x128xf32>
    tpu.vector_store %arg7[%c0_126, %c0_127], %387 {strides = array<i32>} : memref<8x128xf32, #tpu.memory_space<vmem>>, vector<8x128xf32>,
    return
  }
  func.func @transform_0(%arg0: i32) -> (i32, i32, i32) {
    %c0_i32 = arith.constant 0 : i32
    %c0_i32_0 = arith.constant 0 : i32
    %c0_i32_1 = arith.constant 0 : i32
    return %c0_i32, %arg0, %c0_i32_0 : i32, i32, i32
  }
  func.func @transform_1(%arg0: i32) -> (i32, i32) {
    %c0_i32 = arith.constant 0 : i32
    %c0_i32_0 = arith.constant 0 : i32
    %c0_i32_1 = arith.constant 0 : i32
    return %c0_i32, %c0_i32_0 : i32, i32
  }
  func.func @transform_2(%arg0: i32) -> (i32, i32) {
    %c0_i32 = arith.constant 0 : i32
    %c0_i32_0 = arith.constant 0 : i32
    %c0_i32_1 = arith.constant 0 : i32
    return %c0_i32, %c0_i32_0 : i32, i32
  }
  func.func @transform_3(%arg0: i32) -> (i32, i32) {
    %c0_i32 = arith.constant 0 : i32
    %c0_i32_0 = arith.constant 0 : i32
    %c0_i32_1 = arith.constant 0 : i32
    return %c0_i32, %c0_i32_0 : i32, i32
  }
  func.func @transform_4(%arg0: i32) -> (i32, i32) {
    %c0_i32 = arith.constant 0 : i32
    %c0_i32_0 = arith.constant 0 : i32
    %c0_i32_1 = arith.constant 0 : i32
    return %c0_i32, %c0_i32_0 : i32, i32
  }
  func.func @transform_5(%arg0: i32) -> (i32, i32, i32) {
    %c0_i32 = arith.constant 0 : i32
    %c0_i32_0 = arith.constant 0 : i32
    %c0_i32_1 = arith.constant 0 : i32
    return %c0_i32, %arg0, %c0_i32_0 : i32, i32, i32
  }
}

</mosaic_0001>

<bundles_post_ra>
// kernel: tpu_custom_call.1
= control target key start
LH: loop header
LB: loop body
LE: loop exit
PB: predicated region body
PF: predicated region fallthrough
CT: control target
= control target key end

     0   :  { %10 = vsyncpa [#allocation4], 0  ;;  %s7910_s0 = inlined_call_operand.hbm [shape: bf16[8,16,64], index: 0, kind: input, shape index: {}]   ;;  %s7911_s1 = inlined_call_operand.hbm [shape: bf16[64,384], index: 1, kind: input, shape index: {}]   ;;  %s7912_s2 = inlined_call_operand.hbm [shape: bf16[128,384], index: 2, kind: input, shape index: {}]   ;;  %s7913_s3 = inlined_call_operand.vmem [shape: f32[1,384], index: 3, kind: input, shape index: {}]   ;;  %s7914_s4 = inlined_call_operand.vmem [shape: f32[1,384], index: 4, kind: input, shape index: {}]   ;;  %s7915_s5 = inlined_call_operand.hbm [shape: bf16[8,16,128], index: 5, kind: output, shape index: {}]  }
   0x1   :  { %12 = vsyncpa [#allocation4 + $0x1], 0 }
   0x2   :  { %13 = vsyncpa [#allocation7], 0 }
   0x3   :  { %14 = vsyncpa [#allocation5], 0 }
   0x4   :  { %16 = vsyncpa [#allocation5 + $0x1], 0  ;;  %s5873_s18 = smov 0   ;;  %s5875_s19 = smov 0  }
   0x5   :  { %s5877_s20 = smov 0   ;;  %s5879_s21 = smov 0  }
   0x6 LB: > { %s5894_s22 = sadd.s32 4294967295, %s5825_s21   ;;  %s4313_s23 = sadd.s32 4294967294, %s5825_s21   ;;  %s5825_s21 = sphi %s5879_s21, %s8139_s21   ;;  %s5821_s20 = sphi %s5877_s20, %s8138_s20   ;;  %s5817_s19 = sphi %s5875_s19, %s8137_s19   ;;  %s5813_s18 = sphi %s5873_s18, %s8136_s18  }
   0x7   : > { %s5898_s24 = sadd.s32 1, %s5825_s21   ;;  %s29_s25 = sadd.s32 1, %s5821_s20 }
   0x8   : > { %s26_s26 = ssub.s32 %s5825_s21, %s5898_s24  ;;  %p36_p0 = scmp.ne.s32.totalorder %s5821_s20, %s5817_s19 }
   0x9   : > { %p27_p1 = scmp.eq.s32.totalorder %s26_s26, 0  ;;  %p37_p2 = scmp.eq.s32.totalorder %s5825_s21, 0 }
   0xa   : > { %p42_p3 = scmp.ne.s32.totalorder %s5817_s19, %s5813_s18  ;;  %p7916_p4 = scmp.eq.s32.totalorder %s5894_s22, 0 }
   0xb   : > { %s5910_s27 = scalar_select %p27_p1, %s5821_s20, %s29_s25  }
   0xc   : > { %p5912_p5 = por %p37_p2, %p36_p0  ;;  %p5918_p6 = por %p7916_p4, %p42_p3 }
   0xd   : > { %p150_p7 = scmp.eq.s32.totalorder %s5894_s22, 1  ;;  %p156_p8 = scmp.eq.s32.totalorder %s4313_s23, 1 }
   0xe   : > { %s7990_s28 = scalar_select %p5912_p5, 1, 0 }
   0xf   : > { %s7991_s29 = scalar_select %p5918_p6, 1, 0 }
  0x10   : > { %p4314_p9 = scmp.ge.s32.totalorder %s5825_s21, 1  ;;  %p163_p10 = scmp.lt.s32.totalorder %s5825_s21, 3 }
  0x11   : > { %p5925_p11 = por %p150_p7, %p36_p0  ;;  %p5929_p12 = por %p156_p8, %p42_p3 }
  0x12   : > { %p5933_p13 = pnand %p4314_p9, %p163_p10  ;;  %s5827_s8 = smov [#allocation6]  }
  0x13   : > { %s7992_s30 = scalar_select %p5925_p11, 1, 0 }
  0x14   : > { %s7993_s6 = scalar_select %p5929_p12, 1, 0 }
  0x15   : > { %s7994_s7 = scalar_select %p5933_p13, 1, 0 }
  0x16   : > { %p4710_p2 = pneg %p5933_p13  ;;  %s175_s9 = sshll.u32 %s5827_s8, 4  ;;  %s176_s9 = int_to_ptr.vmem [resolvable:$true] %s175_s9 }
  0x17   : > { %s5828_s11 = smov [#allocation8]   ;;  %s5669_s15 = scalar_lea.hbm %s7911_s1, 1536 }
  0x18   : > { %p5942_p0 = pnand %p4710_p2, %p7916_p4  ;;  %s188_s12 = sshll.u32 %s5828_s11, 4  ;;  %s189_s12 = int_to_ptr.vmem [resolvable:$true] %s188_s12 }
  0x19   : > { %p5670_p8 = scmp.ne.s32.totalorder %s7911_s1, %s5669_s15  ;;  %p5676_p3 = scmp.lt.u32.totalorder %s5669_s15, %s7911_s1 }
  0x1a   : > { %p5671_p9 = pneg %p5942_p0 }
  0x1c   : > { %p5672_p10 = pnand %p5671_p9, %p5670_p8 }
  0x1e   : > { %p5673_p2 = pneg %p5672_p10 }
  0x20   : > { %p5678_p1 = pnand %p5676_p3, %p5673_p2 }
  0x22   : > { %5681 = shalt.err (!%p5678_p1)
}
  0x23   : > { %s5682_s26 = scalar_lea.vmem %s176_s9, 1536  ;;  %p5690_p11 = scmp.lt.s32.totalorder %s176_s9, %s176_s9 }
  0x24   : > { %p5683_p4 = scmp.ne.s32.totalorder %s176_s9, %s5682_s26  ;;  %p5691_p6 = scmp.lt.s32.totalorder %s5682_s26, %s5682_s26 }
  0x26   : > { %p5685_p7 = pnand %p5683_p4, %p5671_p9  ;;  %p5692_p13 = por %p5691_p6, %p5690_p11 }
  0x28   : > { %p5686_p12 = pneg %p5685_p7 }
  0x2a   : > { %p5693_p5 = pnand %p5692_p13, %p5686_p12 }
  0x2c   : > { %5696 = shalt.err (!%p5693_p5)
}
  0x2d   : > { %s5829_s8 = smov 192   ;;  %s5830_s11 = smov 12  }
  0x2e   : > { %4713 = dma.hbm_to_vmem [thread:$0]  (!%p5942_p0), %s7911_s1, 1536, %s176_s9, [#allocation7], %s5829_s8, %s5829_s8, %s5830_s11  }
  0x2f   : > { %p7996_p1 = scmp.ne.s32.totalorder %s7990_s28, 0  ;;  %p7997_p3 = scmp.lt.s32.totalorder %s5825_s21, 2 }
  0x30   : > { %s5697_s23 = scalar_lea.hbm %s7912_s2, 3072 }
  0x31   : > { %p5974_p4 = pnand %p7997_p3, %p7996_p1  ;;  %p5698_p5 = scmp.ne.s32.totalorder %s7912_s2, %s5697_s23 }
  0x32   : > { %p5704_p12 = scmp.lt.u32.totalorder %s5697_s23, %s7912_s2 }
  0x33   : > { %s7998_s15 = scalar_select %p5974_p4, 1, 0 }
  0x34   : > { %p5700_p6 = pnand %p5698_p5, %p5671_p9 }
  0x36   : > { %p5701_p11 = pneg %p5700_p6 }
  0x38   : > { %p5706_p13 = pnand %p5704_p12, %p5701_p11 }
  0x3a   : > { %5709 = shalt.err (!%p5706_p13)
}
  0x3b   : > { %s5710_s13 = scalar_lea.vmem %s189_s12, 3072  ;;  %p5718_p2 = scmp.lt.s32.totalorder %s189_s12, %s189_s12 }
  0x3c   : > { %p5711_p7 = scmp.ne.s32.totalorder %s189_s12, %s5710_s13  ;;  %p5719_p1 = scmp.lt.s32.totalorder %s5710_s13, %s5710_s13 }
  0x3e   : > { %p5713_p8 = pnand %p5711_p7, %p5671_p9  ;;  %p5720_p3 = por %p5719_p1, %p5718_p2 }
  0x40   : > { %p5714_p10 = pneg %p5713_p8 }
  0x42   : > { %p5721_p4 = pnand %p5720_p3, %p5714_p10 }
  0x44   : > { %5724 = shalt.err (!%p5721_p4)
}
  0x45   : > { %4716 = dma.hbm_to_vmem [thread:$0]  (!%p5942_p0), %s7912_s2, 3072, %s189_s12, [#allocation7], %s5829_s8, %s5829_s8, %s5830_s11  }
  0x46   : > { %s208_s17 = sand.u32 1, %s5821_s20   ;;  %s4319_s25 = sshll.u32 %s5825_s21, 6 }
  0x47   : > { %s4318_s23 = sshll.u32 %s208_s17, 5  ;;  %s6003_s28 = scalar_lea.hbm %s7910_s0, %s4319_s25 }
  0x48   : > { %s212_s10 = scalar_lea.vmem [#allocation3], %s4318_s23  ;;  %s6007_s14 = scalar_lea.sflag [#allocation4], %s208_s17 }
  0x49   : > { %s218_s13 = sshll.u32 %s212_s10, 4  ;;  %s5725_s16 = scalar_lea.hbm %s6003_s28, 512  ;;  %s6005_s13 = int_to_ptr.vmem [resolvable:$true] %s218_s13 }
  0x4a   : > { %p5726_p0 = scmp.ne.s32.totalorder %s6003_s28, %s5725_s16  ;;  %p7999_p9 = scmp.ne.s32.totalorder %s7998_s15, 0 }
  0x4b   : > { %s5730_s11 = scalar_lea.hbm %s7910_s0, 1024  ;;  %p5731_p11 = scmp.lt.u32.totalorder %s6003_s28, %s7910_s0 }
  0x4c   : > { %p5727_p4 = pneg %p7999_p9  ;;  %p5732_p12 = scmp.lt.u32.totalorder %s5730_s11, %s5725_s16 }
  0x4d   : > { %p5734_p7 = scmp.lt.u32.totalorder %s5725_s16, %s6003_s28 }
  0x4e   : > { %p5728_p5 = pnand %p5727_p4, %p5726_p0  ;;  %p5733_p13 = por %p5732_p12, %p5731_p11 }
  0x50   : > { %p5729_p6 = pneg %p5728_p5  ;;  %p5735_p8 = por %p5734_p7, %p5733_p13 }
  0x52   : > { %p5736_p10 = pnand %p5735_p8, %p5729_p6 }
  0x54   : > { %5739 = shalt.err (!%p5736_p10)
}
  0x55   : > { %s5740_s17 = scalar_lea.vmem %s6005_s13, 512  ;;  %s5831_s23 = smov [#allocation3]  }
  0x56   : > { %p5741_p2 = scmp.ne.s32.totalorder %s6005_s13, %s5740_s17  ;;  %s5745_s9 = sshll.u32 %s5831_s23, 4  ;;  %s5746_s9 = int_to_ptr.vmem [resolvable:$false] %s5745_s9 }
  0x57   : > { %s5747_s10 = scalar_lea.vmem %s5746_s9, 1024  ;;  %p5748_p0 = scmp.lt.s32.totalorder %s6005_s13, %s5746_s9 }
  0x58   : > { %p5743_p1 = pnand %p5741_p2, %p5727_p4  ;;  %p5749_p5 = scmp.lt.s32.totalorder %s5747_s10, %s5740_s17 }
  0x5a   : > { %p5744_p3 = pneg %p5743_p1  ;;  %p5750_p11 = por %p5749_p5, %p5748_p0 }
  0x5c   : > { %p5751_p12 = pnand %p5750_p11, %p5744_p3 }
  0x5e   : > { %5754 = shalt.err (!%p5751_p12)
}
  0x5f   : > { %s5832_s16 = smov 128   ;;  %s5833_s12 = smov 64  }
  0x60   : > { %s5834_s8 = smov 4   ;;  %p8000_p4 = scmp.ne.s32.totalorder %s7994_s7, 0 }
  0x61   : > { %4720 = dma.hbm_to_vmem [thread:$0]  (!%p7999_p9), %s6003_s28, 512, %s6005_s13, %s6007_s14, %s5832_s16, %s5833_s12, %s5834_s8  }
  0x62   : > { %230 = sbr.rel (%p8000_p4) target bundleno = 2642 (0xa52), region = 40 }
  0x69   : > { %s6038_s11 = sand.u32 1, %s5817_s19   ;;  %p8001_p6 = scmp.ne.s32.totalorder %s7991_s29, 0 }
  0x6a   : > { %s4321_s25 = sshll.u32 %s6038_s11, 5  ;;  %s233_s26 = scalar_lea.sflag [#allocation4], %s6038_s11 }
  0x6b   : > { %s6042_s17 = scalar_lea.vmem [#allocation3], %s4321_s25 }
  0x6c   : > { %5800 = dma.done.wait (%p8001_p6), %s233_s26, 512  }
  0x6d   : > { %5802 = vsyncadd (%p8001_p6), %s233_s26, 4294966784  ;;  %p8002_p9 = scmp.eq.s32.totalorder %s5894_s22, 0 }
  0x6f   : > { %5804 = dma.done.wait (%p8002_p9), [#allocation7], 4608   ;;  %p8003_p13 = pmov %p8002_p9 }
  0x70   : > { %s6052_s7 = scalar_lea.vmem [#allocation9], %s4321_s25  ;;  %p8004_p7 = scmp.ne.s32.totalorder %s5894_s22, 0 }
  0x71   : > { %5806 = vsyncadd (%p8003_p13), [#allocation7], 4294962688  ;;  %v5835_v0 = vmov (!%p8004_p7), 0.0  }
  0x72   : > { %275 = sbr.rel (%p8004_p7) target bundleno = 121 (0x79), region = 56  ;;  %276 = vst [vmem:[#allocation2] sm:$0xff] (!%p8004_p7), %v5835_v0 }
  0x79 PF: > { %v4777_v1 = vld [vmem:[#allocation6 + $0x4] ss:$12 sps:$4 sm:$0xff]   ;;  %v4779_v2 = vld [vmem:[#allocation6] ss:$12 sps:$4 sm:$0xff]   ;;  %v7921_v3 = vmov 0   ;;  %vm402_vm0 = vcmask 523264   ;;  %v303_v56 = vlaneseq }
  0x7a   : > { %447 = vmatprep.mubr.bf16.mxu0 %v7921_v3  ;;  %415 = vmatprep.subr.bf16.mxu0 %v4777_v1  ;;  %v4780_v4 = vld [vmem:[#allocation6 + $0x1c] ss:$12 sps:$4 sm:$0xff]   ;;  %v4782_v5 = vld [vmem:[#allocation6 + $0x18] ss:$12 sps:$4 sm:$0xff]   ;;  %v4783_v6 = vld [vmem:[#allocation6 + $0x34] ss:$12 sps:$4 sm:$0xff]  }
  0x7b   : > { %416 = vmatpush1.bf16.msra.mxu0 %v4779_v2  ;;  %v4789_v7 = vld [vmem:[%s6042_s17] sm:$0xff]   ;;  %v4785_v8 = vld [vmem:[#allocation6 + $0x30] ss:$12 sps:$4 sm:$0xff]   ;;  %v4786_v9 = vld [vmem:[#allocation6 + $0x4c] ss:$12 sps:$4 sm:$0xff]   ;;  %v7923_v26 = vmov 0.0  }
  0x7c   : > { %417 = vmatprep.subr.bf16.mxu0 %v4780_v4  ;;  %4530 = vmatprep.mubr.msk.bf16.mxu1 %vm402_vm0, %v4789_v7  ;;  %v4788_v10 = vld [vmem:[#allocation6 + $0x48] ss:$12 sps:$4 sm:$0xff]   ;;  %v6059_v11 = vld [vmem:[#allocation8 + $0x4] ss:$12 sps:$4 sm:$0xff]   ;;  %v6061_v13 = vld [vmem:[#allocation8] ss:$12 sps:$4 sm:$0xff]  }
  0x7d   : > { %v4800_v12 = vld [vmem:[#allocation6 + $0x8] ss:$12 sps:$4 sm:$0xff]   ;;  %v4805_v14 = vld [vmem:[#allocation6 + $0x20] ss:$12 sps:$4 sm:$0xff]   ;;  %v4809_v16 = vld [vmem:[#allocation6 + $0x38] ss:$12 sps:$4 sm:$0xff]  }
  0x7e   : > { %4522 = vmatprep.subr.bf16.mxu1 %v4800_v12  ;;  %v6064_v15 = vld [vmem:[#allocation8 + $0x1c] ss:$12 sps:$4 sm:$0xff]   ;;  %v6068_v17 = vld [vmem:[#allocation8 + $0x18] ss:$12 sps:$4 sm:$0xff]   ;;  %v6072_v18 = vld [vmem:[#allocation8 + $0x34] ss:$12 sps:$4 sm:$0xff]  }
  0x7f   : > { %418 = vmatpush1.bf16.msra.mxu0 %v4782_v5  ;;  %4523 = vmatpush3.bf16.msra.mxu1 %v4800_v12  ;;  %v4814_v19 = vld [vmem:[#allocation6 + $0x50] ss:$12 sps:$4 sm:$0xff]   ;;  %v4796_v20 = vld [vmem:[%s6042_s17 + $0x8] sm:$0xff]   ;;  %v4812_v31 = vld [vmem:[#allocation8 + $0x78] ss:$12 sps:$4 sm:$0xff]   ;;  %vm5838_vm1 = vmmov 0  }
  0x80   : > { %419 = vmatprep.subr.bf16.mxu0 %v4783_v6  ;;  %4524 = vmatprep.subr.bf16.mxu1 %v4805_v14  ;;  %v6076_v21 = vld [vmem:[#allocation8 + $0x30] ss:$12 sps:$4 sm:$0xff]   ;;  %v6079_v22 = vld [vmem:[#allocation8 + $0x4c] ss:$12 sps:$4 sm:$0xff]   ;;  %v6082_v23 = vld [vmem:[#allocation8 + $0x48] ss:$12 sps:$4 sm:$0xff]  }
  0x81   : > { %v6086_v24 = vld [vmem:[#allocation8 + $0x64] ss:$12 sps:$4 sm:$0xff]   ;;  %v6089_v25 = vld [vmem:[#allocation8 + $0x8] ss:$12 sps:$4 sm:$0xff]   ;;  %v6094_v28 = vld [vmem:[#allocation8 + $0x60] ss:$12 sps:$4 sm:$0xff]  }
  0x82   : > { %v4804_v27 = vld [vmem:[%s6042_s17 + $0x10] sm:$0xff]   ;;  %v6098_v29 = vld [vmem:[#allocation8 + $0x7c] ss:$12 sps:$4 sm:$0xff]   ;;  %v6101_v30 = vld [vmem:[#allocation8 + $0x20] ss:$12 sps:$4 sm:$0xff]   ;;  %v6206_v62 = vshrl.u32 %v303_v56, 7 }
  0x83   : > { %420 = vmatpush1.bf16.msra.mxu0 %v4785_v8  ;;  %4525 = vmatpush3.bf16.msra.mxu1 %v4805_v14  ;;  %v4815_v32 = vld [vmem:[#allocation8 + $0x94] ss:$12 sps:$4 sm:$0xff]   ;;  %v6110_v33 = vld [vmem:[#allocation8 + $0x38] ss:$12 sps:$4 sm:$0xff]   ;;  %v6114_v35 = vld [vmem:[#allocation8 + $0x90] ss:$12 sps:$4 sm:$0xff]  }
  0x84   : > { %421 = vmatprep.subr.bf16.mxu0 %v4786_v9  ;;  %4526 = vmatprep.subr.bf16.mxu1 %v4809_v16  ;;  %v4813_v34 = vld [vmem:[%s6042_s17 + $0x18] sm:$0xff]   ;;  %v6127_v38 = vld [vmem:[#allocation8 + $0xa8] ss:$12 sps:$4 sm:$0xff]   ;;  %v6141_v42 = vld [vmem:[#allocation8 + $0x80] ss:$12 sps:$4 sm:$0xff]   ;;  %v305_v2 = vsub.s32 0, %v6206_v62 }
  0x85   : > { %v6117_v36 = vld [vmem:[#allocation8 + $0xac] ss:$12 sps:$4 sm:$0xff]   ;;  %v6120_v37 = vld [vmem:[#allocation8 + $0x50] ss:$12 sps:$4 sm:$0xff]   ;;  %v6134_v40 = vld [vmem:[#allocation8 + $0x68] ss:$12 sps:$4 sm:$0xff]  }
  0x86   : > { %v6130_v39 = vld [vmem:[#allocation2] sm:$0xff]  ;;  %v309_v4 = vsub.s32 1, %v6206_v62  ;;  %vm1101_vm2 = vcmask 1040384   ;;  %vm1102_vm3 = vsmask.f32 256  ;;  %vm1145_vm4 = vcmask 1041409  }
  0x87   : > { %422 = vmatpush1.bf16.msra.mxu0 %v4788_v10  ;;  %4527 = vmatpush3.bf16.msra.mxu1 %v4809_v16  ;;  %v603_v41 = vpack.c.bf16 %v6130_v39, %v6130_v39  ;;  %v6148_v43 = vld [vmem:[#allocation8 + $0x98] ss:$12 sps:$4 sm:$0xff]   ;;  %v6154_v44 = vld [vmem:[#allocation8 + $0xb0] ss:$12 sps:$4 sm:$0xff]   ;;  %vm6405_vm5 = vmand %vm1101_vm2, %vm1102_vm3  ;;  %vm1148_vm6 = vcmask 1042434   ;;  %vm1151_vm7 = vcmask 1043459  }
  0x88   : > { %732 = vmatprep.subr.bf16.mxu0 %v6059_v11  ;;  %4528 = vmatprep.subr.bf16.mxu1 %v4814_v19  ;;  %v6228_v10 = vld [vmem:[%s7914_s4] sm:$0x7]  ;;  %vm1154_vm8 = vcmask 1044484   ;;  %vm1157_vm9 = vcmask 1045509   ;;  %vm1160_vm10 = vcmask 1046534   ;;  %vm1163_vm11 = vcmask 1047559  }
  0x89   : > { %v6237_v14 = vrot.slane %v6228_v10, %v305_v2  ;;  %vm1544_vm12 = vsmask.f32 7938  ;;  %vm1980_vm14 = vsmask.f32 1280  ;;  %vm2851_vm3 = vsmask.f32 2304 }
  0x8a   : > { %4342 = vmatmul.mubr.msk.bf16.vlgmr.msra.gmra.mrb[0].mxu0 %vm402_vm0, %v4789_v7  ;;  %v6221_v7 = vld [vmem:[%s7913_s3] sm:$0x7]  ;;  %vm6625_vm13 = vmand %vm1101_vm2, %vm1544_vm12  ;;  %vm3286_vm12 = vsmask.f32 7946  ;;  %s4439_s14 = sshll.u32 %s5894_s22, 6  ;;  %s4221_s23 = sshll.u32 %s6052_s7, 4  ;;  %s7845_s23 = int_to_ptr.vmem [resolvable:$true] %s4221_s23 }
  0x8b   : > { %733 = vmatpush1.bf16.msra.mxu0 %v6061_v13  ;;  %457 = vmatprep.mubr.bf16.mxu0 %v7921_v3  ;;  %v306_v12 = vrot.slane %v6221_v7, %v305_v2  ;;  %8005 = vst [vmem:[#allocation13_spill] sm:$0xff] %v6237_v14  ;;  %vm6842_vm15 = vmand %vm1145_vm4, %vm1980_vm14  ;;  %s7832_s10 = scalar_lea.hbm %s7915_s5, %s4439_s14  ;;  %s4209_s16 = scalar_lea.sflag [#allocation5], %s6038_s11 }
  0x8c   : > { %734 = vmatprep.subr.bf16.mxu0 %v6064_v15  ;;  %4529 = vmatpush3.bf16.msra.mxu1 %v4814_v19  ;;  %s5755_s12 = scalar_lea.vmem %s7845_s23, 512  ;;  %p8133_p10 = scmp.ne.s32.totalorder %s7992_s30, 0 }
  0x8d   : > { %4538 = vmatprep.subr.bf16.mxu1 %v7923_v26  ;;  %p5756_p8 = scmp.ne.s32.totalorder %s7845_s23, %s5755_s12  ;;  %s5839_s8 = smov [#allocation9]  }
  0x8e   : > { %s5759_s25 = sshll.u32 %s5839_s8, 4  ;;  %s5760_s25 = int_to_ptr.vmem [resolvable:$false] %s5759_s25 }
  0x8f   : > { %735 = vmatpush1.bf16.msra.mxu0 %v6068_v17  ;;  %4531 = vmatmul.mubr.msk.bf16.vlgmr.msra.gmra.mrb[0].mxu1 %vm402_vm0, %v4796_v20  ;;  %p5757_p2 = pnand %p5756_p8, %p8133_p10  ;;  %s5761_s26 = scalar_lea.vmem %s5760_s25, 1024 }
  0x90   : > { %736 = vmatprep.subr.bf16.mxu0 %v6072_v18  ;;  %4539 = vmatpush3.bf16.msra.mxu1 %v6089_v25  ;;  %p5762_p3 = scmp.lt.s32.totalorder %s7845_s23, %s5760_s25  ;;  %p5763_p0 = scmp.lt.s32.totalorder %s5761_s26, %s5755_s12 }
  0x91   : > { %4540 = vmatprep.subr.bf16.mxu1 %v7923_v26  ;;  %4534 = vmatprep.mubr.msk.bf16.mxu1 %vm402_vm0, %v4804_v27  ;;  %p5758_p1 = pneg %p5757_p2 }
  0x92   : > { %4343 = vmatmul.mubr.msk.bf16.gmra.mrb[4].mxu0 %vm402_vm0, %v4796_v20  ;;  %p5764_p5 = por %p5763_p0, %p5762_p3 }
  0x93   : > { %737 = vmatpush1.bf16.msra.mxu0 %v6076_v21  ;;  %467 = vmatprep.mubr.bf16.mxu0 %v7921_v3 }
  0x94   : > { %738 = vmatprep.subr.bf16.mxu0 %v6079_v22  ;;  %4541 = vmatpush3.bf16.msra.mxu1 %v6101_v30  ;;  %p5765_p11 = pnand %p5764_p5, %p5758_p1 }
  0x95   : > { %4542 = vmatprep.subr.bf16.mxu1 %v7923_v26 }
  0x97   : > { %739 = vmatpush1.bf16.msra.mxu0 %v6082_v23  ;;  %4535 = vmatmul.mubr.msk.bf16.gmra.mrb[4].mxu1 %vm402_vm0, %v4813_v34 }
  0x98   : > { %740 = vmatprep.subr.bf16.mxu0 %v6086_v24  ;;  %4543 = vmatpush3.bf16.msra.mxu1 %v6110_v33 }
  0x99   : > { %4544 = vmatprep.subr.bf16.mxu1 %v7923_v26  ;;  %4554 = vmatprep.mubr.msk.bf16.mxu1 %vm5838_vm1, %v7923_v26 }
  0x9a   : > { %4344 = vmatmul.mubr.msk.bf16.gmra.mrb[8].mxu0 %vm402_vm0, %v4804_v27 }
  0x9b   : > { %741 = vmatpush1.bf16.msra.mxu0 %v6094_v28  ;;  %477 = vmatprep.mubr.bf16.mxu0 %v7921_v3 }
  0x9c   : > { %742 = vmatprep.subr.bf16.mxu0 %v6098_v29  ;;  %4545 = vmatpush3.bf16.msra.mxu1 %v6120_v37 }
  0x9d   : > { %4546 = vmatprep.subr.bf16.mxu1 %v7923_v26 }
  0x9f   : > { %743 = vmatpush1.bf16.msra.mxu0 %v4812_v31 }
  0xa0   : > { %744 = vmatprep.subr.bf16.mxu0 %v4815_v32  ;;  %4547 = vmatpush3.bf16.msra.mxu1 %v6134_v40 }
  0xa1   : > { %4548 = vmatprep.subr.bf16.mxu1 %v7923_v26 }
  0xa2   : > { %4345 = vmatmul.mubr.msk.bf16.gmra.mrb[12].mxu0 %vm402_vm0, %v4813_v34  ;;  %vm2415_vm0 = vsmask.f32 7942 }
  0xa3   : > { %745 = vmatpush1.bf16.msra.mxu0 %v6114_v35  ;;  %764 = vmatprep.mubr.bf16.mxu0 %v7921_v3  ;;  %vm7061_vm2 = vmand %vm1145_vm4, %vm2415_vm0 }
  0xa4   : > { %746 = vmatprep.subr.bf16.mxu0 %v6117_v36  ;;  %4549 = vmatpush3.bf16.msra.mxu1 %v6141_v42 }
  0xa5   : > { %4550 = vmatprep.subr.bf16.mxu1 %v7923_v26 }
  0xa7   : > { %747 = vmatpush1.bf16.msra.mxu0 %v6127_v38 }
  0xa8   : > { %1167 = vmatprep.subr.bf16.mxu0 %v6059_v11  ;;  %4551 = vmatpush3.bf16.msra.mxu1 %v6148_v43 }
  0xa9   : > { %4552 = vmatprep.subr.bf16.mxu1 %v7923_v26 }
  0xaa   : > { %765 = vmatmul.mubr.bf16.vlgmr.msra.gmra.mrb[16].mxu0 %v603_v41 }
  0xab   : > { %1168 = vmatpush1.bf16.msra.mxu0 %v6061_v13  ;;  %1199 = vmatprep.mubr.bf16.mxu0 %v7921_v3  ;;  %v6234_v13 = vrot.slane %v6221_v7, %v309_v4 }
  0xac   : > { %1169 = vmatprep.subr.bf16.mxu0 %v6064_v15  ;;  %4553 = vmatpush3.bf16.msra.mxu1 %v6154_v44  ;;  %v6240_v15 = vrot.slane %v6228_v10, %v309_v4 }
  0xad   : > { %4558 = vmatprep.subr.bf16.mxu1 %v7923_v26 }
  0xae   : > { %8006 = vst [vmem:[#allocation14_spill] sm:$0xff] %v6240_v15 }
  0xaf   : > { %1170 = vmatpush1.bf16.msra.mxu0 %v6068_v17  ;;  %4555 = vmatmul.mubr.bf16.vlgmr.msra.gmra.mrb[8].mxu1 %v603_v41 }
  0xb0   : > { %1171 = vmatprep.subr.bf16.mxu0 %v6072_v18  ;;  %4559 = vmatpush3.bf16.msra.mxu1 %v6089_v25 }
  0xb1   : > { %4560 = vmatprep.subr.bf16.mxu1 %v7923_v26  ;;  %4574 = vmatprep.mubr.msk.bf16.mxu1 %vm5838_vm1, %v7923_v26 }
  0xb3   : > { %1172 = vmatpush1.bf16.msra.mxu0 %v6076_v21 }
  0xb4   : > { %1173 = vmatprep.subr.bf16.mxu0 %v6079_v22  ;;  %4561 = vmatpush3.bf16.msra.mxu1 %v6101_v30 }
  0xb5   : > { %4562 = vmatprep.subr.bf16.mxu1 %v7923_v26 }
  0xb7   : > { %1174 = vmatpush1.bf16.msra.mxu0 %v6082_v23 }
  0xb8   : > { %1175 = vmatprep.subr.bf16.mxu0 %v6086_v24  ;;  %4563 = vmatpush3.bf16.msra.mxu1 %v6110_v33 }
  0xb9   : > { %4564 = vmatprep.subr.bf16.mxu1 %v7923_v26 }
  0xbb   : > { %1176 = vmatpush1.bf16.msra.mxu0 %v6094_v28 }
  0xbc   : > { %1177 = vmatprep.subr.bf16.mxu0 %v6098_v29  ;;  %4565 = vmatpush3.bf16.msra.mxu1 %v6120_v37 }
  0xbd   : > { %4566 = vmatprep.subr.bf16.mxu1 %v7923_v26 }
  0xbf   : > { %1178 = vmatpush1.bf16.msra.mxu0 %v4812_v31 }
  0xc0   : > { %1179 = vmatprep.subr.bf16.mxu0 %v4815_v32  ;;  %4567 = vmatpush3.bf16.msra.mxu1 %v6134_v40 }
  0xc1   : > { %4568 = vmatprep.subr.bf16.mxu1 %v7923_v26 }
  0xc3   : > { %1180 = vmatpush1.bf16.msra.mxu0 %v6114_v35 }
  0xc4   : > { %1181 = vmatprep.subr.bf16.mxu0 %v6117_v36  ;;  %4569 = vmatpush3.bf16.msra.mxu1 %v6141_v42 }
  0xc5   : > { %4570 = vmatprep.subr.bf16.mxu1 %v7923_v26 }
  0xc7   : > { %1182 = vmatpush1.bf16.msra.mxu0 %v6127_v38 }
  0xc8   : > { %1602 = vmatprep.subr.bf16.mxu0 %v6059_v11  ;;  %4571 = vmatpush3.bf16.msra.mxu1 %v6148_v43 }
  0xc9   : > { %4572 = vmatprep.subr.bf16.mxu1 %v7923_v26 }
  0xcc   : > { %4573 = vmatpush3.bf16.msra.mxu1 %v6154_v44 }
  0xcd   : > { %4578 = vmatprep.subr.bf16.mxu1 %v7923_v26 }
 0x15d   : > { %v449_v45 = vpop.f32.mrb[0].mxu0 }
 0x15e   : > { %v451_v46 = vpop.f32.mrb[1].mxu0  ;;  %v6242_v16 = vadd.f32 %v449_v45, %v306_v12 }
 0x15f   : > { %v453_v47 = vpop.f32.mrb[2].mxu0  ;;  %v6245_v17 = vadd.f32 %v451_v46, %v6234_v13 }
 0x160   : > { %v6188_v48 = vpop.f32.mrb[3].mxu0  ;;  %8007 = vst [vmem:[#allocation15_spill] sm:$0xff] %v6242_v16  ;;  %v6247_v18 = vadd.f32 %v453_v47, %v306_v12 }
 0x162   : > { %v6194_v53 = vpop.f32.mrb[0].mxu1  ;;  %8008 = vst [vmem:[#allocation16_spill] sm:$0xff] %v6247_v18 }
 0x163   : > { %v6196_v54 = vpop.f32.mrb[1].mxu1 }
 0x164   : > { %v6198_v55 = vpop.f32.mrb[2].mxu1 }
 0x165   : > { %v459_v49 = vpop.f32.mrb[4].mxu0  ;;  %v6200_v58 = vpop.f32.mrb[3].mxu1 }
 0x166   : > { %v6190_v50 = vpop.f32.mrb[5].mxu0  ;;  %v6249_v20 = vadd.f32 %v459_v49, %v306_v12 }
 0x167   : > { %v463_v51 = vpop.f32.mrb[6].mxu0 }
 0x168   : > { %v6192_v52 = vpop.f32.mrb[7].mxu0  ;;  %8009 = vst [vmem:[#allocation17_spill] sm:$0xff] %v6249_v20  ;;  %v6251_v21 = vadd.f32 %v463_v51, %v306_v12 }
 0x16a   : > { %v6208_v63 = vpop.f32.mrb[4].mxu1  ;;  %8010 = vst [vmem:[#allocation18_spill] sm:$0xff] %v6251_v21 }
 0x16b   : > { %v6210_v0 = vpop.f32.mrb[5].mxu1 }
 0x16c   : > { %v6212_v1 = vpop.f32.mrb[6].mxu1 }
 0x16d   : > { %v469_v57 = vpop.f32.mrb[8].mxu0  ;;  %v6216_v6 = vpop.f32.mrb[7].mxu1 }
 0x16e   : > { %v6202_v59 = vpop.f32.mrb[9].mxu0  ;;  %v6253_v22 = vadd.f32 %v469_v57, %v306_v12 }
 0x16f   : > { %v473_v60 = vpop.f32.mrb[10].mxu0 }
 0x170   : > { %v6204_v61 = vpop.f32.mrb[11].mxu0  ;;  %v6256_v25 = vadd.f32 %v473_v60, %v306_v12 }
 0x172   : > { %8011 = vst [vmem:[#allocation19_spill] sm:$0xff] %v6256_v25 }
 0x175   : > { %v479_v5 = vpop.f32.mrb[12].mxu0 }
 0x176   : > { %v6223_v8 = vpop.f32.mrb[13].mxu0  ;;  %v6258_v27 = vadd.f32 %v479_v5, %v306_v12 }
 0x177   : > { %v483_v9 = vpop.f32.mrb[14].mxu0 }
 0x178   : > { %v6230_v11 = vpop.f32.mrb[15].mxu0  ;;  %v6260_v28 = vadd.f32 %v483_v9, %v306_v12 }
 0x17d   : > { %v766_v19 = vpop.f32.mrb[16].mxu0 }
 0x17e   : > { %v767_v23 = vadd.f32 %v766_v19, %v6237_v14  ;;  %v768_v24 = vpop.f32.mrb[17].mxu0 }
 0x17f   : > { %v6263_v29 = vadd.f32 %v768_v24, %v6240_v15  ;;  %v770_v31 = vpop.f32.mrb[18].mxu0 }
 0x180   : > { %v814_v32 = vrot.slane %v767_v23, 1  ;;  %v815_v34 = vrot.slane %v767_v23, 2  ;;  %v816_v41 = vrot.slane %v767_v23, 3  ;;  %v817_v45 = vrot.slane %v767_v23, 4  ;;  %v771_v46 = vpop.f32.mrb[19].mxu0 }
 0x181   : > { %v818_v47 = vrot.slane %v767_v23, 5  ;;  %v819_v49 = vrot.slane %v767_v23, 6  ;;  %v820_v51 = vrot.slane %v767_v23, 7  ;;  %v829_v56 = vadd.f32 %v767_v23, %v6242_v16 }
 0x182   : > { %v830_v57 = vadd.f32 %v814_v32, %v6247_v18  ;;  %v831_v60 = vadd.f32 %v815_v34, %v6249_v20  ;;  %v832_v2 = vadd.f32 %v816_v41, %v6251_v21  ;;  %v833_v4 = vadd.f32 %v817_v45, %v6253_v22 }
 0x183   : > { %v834_v5 = vadd.f32 %v818_v47, %v6256_v25  ;;  %v835_v9 = vadd.f32 %v819_v49, %v6258_v27  ;;  %v836_v12 = vadd.f32 %v820_v51, %v6260_v28  ;;  %v837_v19 = vsub.f32 0.0, %v829_v56 }
 0x184   : > { %v838_v24 = vsub.f32 0.0, %v830_v57  ;;  %v839_v31 = vsub.f32 0.0, %v831_v60  ;;  %v840_v46 = vsub.f32 0.0, %v832_v2  ;;  %v841_v3 = vsub.f32 0.0, %v833_v4 }
 0x185   : > { %v842_v23 = vsub.f32 0.0, %v834_v5  ;;  %v843_v26 = vsub.f32 0.0, %v835_v9  ;;  %v844_v32 = vsub.f32 0.0, %v836_v12  ;;  %v845_v15 = vmul.f32 1.442695, %v837_v19 }
 0x186   : > { %v847_v34 = vmul.f32 1.442695, %v838_v24  ;;  %v849_v20 = vmul.f32 1.442695, %v839_v31  ;;  %v851_v41 = vmul.f32 1.442695, %v840_v46  ;;  %v6275_v45 = vadd.f32 %v6188_v48, %v6234_v13 }
 0x187   : > { %4829 = vpow2.f32 %v845_v15  ;;  %v853_v47 = vmul.f32 1.442695, %v841_v3  ;;  %v901_v49 = vadd.f32 %v6263_v29, %v6245_v17  ;;  %v855_v51 = vmul.f32 1.442695, %v842_v23  ;;  %v807_v3 = vpop.f32.mrb[8].mxu1 }
 0x188   : > { %4831 = vpow2.f32 %v847_v34  ;;  %v886_v56 = vrot.slane %v6263_v29, 1  ;;  %v887_v57 = vrot.slane %v6263_v29, 2  ;;  %v6283_v60 = vadd.f32 %v6190_v50, %v6234_v13  ;;  %v4556_v5 = vpop.f32.mrb[9].mxu1 }
 0x189   : > { %4833 = vpow2.f32 %v849_v20  ;;  %v857_v2 = vmul.f32 1.442695, %v843_v26  ;;  %v859_v48 = vmul.f32 1.442695, %v844_v32  ;;  %v909_v9 = vsub.f32 0.0, %v901_v49  ;;  %v810_v12 = vpop.f32.mrb[10].mxu1 }
 0x18a   : > { %8012 = vst [vmem:[#allocation20_spill] sm:$0xff] %v6283_v60  ;;  %4835 = vpow2.f32 %v851_v41  ;;  %v902_v15 = vadd.f32 %v886_v56, %v6275_v45  ;;  %v903_v4 = vadd.f32 %v887_v57, %v6283_v60  ;;  %v313_v19 = vsub.s32 2, %v6206_v62  ;;  %v4557_v31 = vpop.f32.mrb[11].mxu1 }
 0x18b   : > { %4837 = vpow2.f32 %v853_v47  ;;  %v888_v26 = vrot.slane %v6263_v29, 3  ;;  %v889_v20 = vrot.slane %v6263_v29, 4  ;;  %v917_v46 = vmul.f32 1.442695, %v909_v9 }
 0x18c   : > { %4839 = vpow2.f32 %v855_v51  ;;  %v910_v24 = vsub.f32 0.0, %v902_v15  ;;  %v911_v50 = vsub.f32 0.0, %v903_v4  ;;  %v6292_v34 = vadd.f32 %v6192_v52, %v6234_v13 }
 0x18d   : > { %4841 = vpow2.f32 %v857_v2  ;;  %v6296_v62 = vadd.f32 %v6202_v59, %v6234_v13  ;;  %v6299_v47 = vrot.slane %v6221_v7, %v313_v19  ;;  %v6302_v49 = vrot.slane %v6228_v10, %v313_v19 }
 0x18e   : > { %4843 = vpow2.f32 %v859_v48  ;;  %v919_v23 = vmul.f32 1.442695, %v910_v24  ;;  %v921_v32 = vmul.f32 1.442695, %v911_v50  ;;  %8013 = vst [vmem:[#allocation21_spill] sm:$0xff] %v6292_v34  ;;  %v890_v57 = vrot.slane %v6263_v29, 5 }
 0x18f   : > { %8014 = vst [vmem:[#allocation22_spill] sm:$0xff] %v6296_v62  ;;  %4845 = vpow2.f32 %v917_v46  ;;  %8015 = vst [vmem:[#allocation23_spill] sm:$0xff] %v6302_v49  ;;  %v904_v2 = vadd.f32 %v888_v26, %v6292_v34  ;;  %v891_v15 = vrot.slane %v6263_v29, 6  ;;  %v905_v59 = vadd.f32 %v889_v20, %v6296_v62 }
 0x190   : > { %4847 = vpow2.f32 %v919_v23  ;;  %v6310_v4 = vadd.f32 %v6204_v61, %v6234_v13  ;;  %v892_v5 = vrot.slane %v6263_v29, 7  ;;  %v6315_v12 = vadd.f32 %v6223_v8, %v6234_v13 }
 0x191   : > { %v4830_v41 = vpop.eup %4829  ;;  %4849 = vpow2.f32 %v921_v32  ;;  %v6319_v19 = vadd.f32 %v6230_v11, %v6234_v13  ;;  %v912_v26 = vsub.f32 0.0, %v904_v2  ;;  %v913_v23 = vsub.f32 0.0, %v905_v59 }
 0x192   : > { %v4832_v51 = vpop.eup %4831  ;;  %v861_v56 = vadd.f32 1.0, %v4830_v41  ;;  %8016 = vst [vmem:[#allocation24_spill] sm:$0xff] %v6315_v12  ;;  %v906_v61 = vadd.f32 %v890_v57, %v6310_v4  ;;  %v907_v29 = vadd.f32 %v891_v15, %v6315_v12  ;;  %v6324_v11 = vadd.f32 %v807_v3, %v6302_v49 }
 0x193   : > { %v4834_v52 = vpop.eup %4833  ;;  %v862_v48 = vadd.f32 1.0, %v4832_v51  ;;  %8017 = vst [vmem:[#allocation25_spill] sm:$0xff] %v6319_v19  ;;  %v908_v13 = vadd.f32 %v892_v5, %v6319_v19  ;;  %v6329_v2 = vadd.f32 %v6194_v53, %v6299_v47  ;;  %v6333_v3 = vadd.f32 %v6196_v54, %v6299_v47 }
 0x194   : > { %v4836_v7 = vpop.eup %4835  ;;  %v863_v10 = vadd.f32 1.0, %v4834_v52  ;;  %4851 = vrcp.f32 %v861_v56  ;;  %v914_v51 = vsub.f32 0.0, %v906_v61  ;;  %v923_v56 = vmul.f32 1.442695, %v912_v26 }
 0x195   : > { %v4838_v9 = vpop.eup %4837  ;;  %v864_v24 = vadd.f32 1.0, %v4836_v7  ;;  %4853 = vrcp.f32 %v862_v48  ;;  %8018 = vst [vmem:[#allocation26_spill] sm:$0xff] %v6329_v2  ;;  %v915_v52 = vsub.f32 0.0, %v907_v29  ;;  %v925_v48 = vmul.f32 1.442695, %v913_v23  ;;  %8019 = vst [vmem:[#allocation27_spill] sm:$0xff] %v6333_v3 }
 0x196   : > { %v4840_v50 = vpop.eup %4839  ;;  %v865_v31 = vadd.f32 1.0, %v4838_v9  ;;  %4855 = vrcp.f32 %v863_v10  ;;  %v6337_v59 = vadd.f32 %v6198_v55, %v6299_v47  ;;  %v958_v7 = vrot.slane %v6324_v11, 1 }
 0x197   : > { %v4842_v20 = vpop.eup %4841  ;;  %v866_v46 = vadd.f32 1.0, %v4840_v50  ;;  %4857 = vrcp.f32 %v864_v24  ;;  %v916_v10 = vsub.f32 0.0, %v908_v13  ;;  %v6342_v53 = vadd.f32 %v6200_v58, %v6299_v47 }
 0x198   : > { %v4844_v8 = vpop.eup %4843  ;;  %v867_v32 = vadd.f32 1.0, %v4842_v20  ;;  %4859 = vrcp.f32 %v865_v31  ;;  %8020 = vst [vmem:[#allocation28_spill] sm:$0xff] %v6337_v59  ;;  %v6346_v9 = vadd.f32 %v6208_v63, %v6299_v47  ;;  %v6350_v54 = vadd.f32 %v6210_v0, %v6299_v47 }
 0x199   : > { %v868_v41 = vadd.f32 1.0, %v4844_v8  ;;  %4861 = vrcp.f32 %v866_v46  ;;  %v4846_v57 = vpop.eup %4845  ;;  %8021 = vst [vmem:[#allocation29_spill] sm:$0xff] %v6342_v53  ;;  %v959_v24 = vrot.slane %v6324_v11, 2  ;;  %v927_v50 = vmul.f32 1.442695, %v914_v51 }
 0x19a   : > { %4863 = vrcp.f32 %v867_v32  ;;  %v4848_v15 = vpop.eup %4847  ;;  %8022 = vst [vmem:[#allocation30_spill] sm:$0xff] %v6346_v9  ;;  %8023 = vst [vmem:[#allocation31_spill] sm:$0xff] %v6350_v54  ;;  %v6355_v31 = vadd.f32 %v6212_v1, %v6299_v47  ;;  %v960_v58 = vrot.slane %v6324_v11, 3  ;;  %v929_v26 = vmul.f32 1.442695, %v915_v52 }
 0x19b   : > { %4865 = vrcp.f32 %v868_v41  ;;  %v4850_v5 = vpop.eup %4849  ;;  %v961_v63 = vrot.slane %v6324_v11, 4  ;;  %v6362_v46 = vadd.f32 %v6216_v6, %v6299_v47  ;;  %v962_v29 = vrot.slane %v6324_v11, 5 }
 0x19c   : > { %4867 = vpow2.f32 %v923_v56  ;;  %8024 = vst [vmem:[#allocation32_spill] sm:$0xff] %v6355_v31  ;;  %v931_v8 = vmul.f32 1.442695, %v916_v10  ;;  %v963_v32 = vrot.slane %v6324_v11, 6  ;;  %v964_v13 = vrot.slane %v6324_v11, 7 }
 0x19d   : > { %4869 = vpow2.f32 %v925_v48  ;;  %8025 = vst [vmem:[#allocation33_spill] sm:$0xff] %v6362_v46  ;;  %v933_v52 = vadd.f32 1.0, %v4846_v57 }
 0x19e   : > { %v4852_v55 = vpop.eup %4851  ;;  %4871 = vpow2.f32 %v927_v50 }
 0x19f   : > { %v4854_v61 = vpop.eup %4853  ;;  %v973_v20 = vmul.f32 %v4852_v55, %v6324_v11  ;;  %4873 = vpow2.f32 %v929_v26 }
 0x1a0   : > { %v4856_v0 = vpop.eup %4855  ;;  %v974_v23 = vmul.f32 %v4854_v61, %v958_v7  ;;  %4875 = vpow2.f32 %v931_v8 }
 0x1a1   : > { %v4858_v1 = vpop.eup %4857  ;;  %v975_v41 = vmul.f32 %v4856_v0, %v959_v24  ;;  %v981_v51 = vadd.f32 %v973_v20, %v6333_v3 }
 0x1a2   : > { %v4860_v56 = vpop.eup %4859  ;;  %v976_v48 = vmul.f32 %v4858_v1, %v960_v58  ;;  %v982_v55 = vadd.f32 %v974_v23, %v6342_v53 }
 0x1a3   : > { %v4862_v6 = vpop.eup %4861  ;;  %v977_v47 = vmul.f32 %v4860_v56, %v961_v63  ;;  %v983_v49 = vadd.f32 %v975_v41, %v6329_v2  ;;  %v989_v7 = vmul.f32 -2.0, %v981_v51  ;;  %v934_v41 = vadd.f32 1.0, %v4848_v15 }
 0x1a4   : > { %v4864_v10 = vpop.eup %4863  ;;  %v978_v61 = vmul.f32 %v4862_v6, %v962_v29  ;;  %v984_v19 = vadd.f32 %v976_v48, %v6337_v59  ;;  %v990_v11 = vmul.f32 -2.0, %v982_v55  ;;  %v935_v56 = vadd.f32 1.0, %v4850_v5 }
 0x1a5   : > { %v4866_v24 = vpop.eup %4865  ;;  %v991_v20 = vmul.f32 -2.0, %v983_v49  ;;  %v997_v0 = vmul.f32 1.442695, %v989_v7  ;;  %v979_v50 = vmul.f32 %v4864_v10, %v963_v32  ;;  %v985_v57 = vadd.f32 %v977_v47, %v6350_v54 }
 0x1a6   : > { %v992_v58 = vmul.f32 -2.0, %v984_v19  ;;  %v999_v23 = vmul.f32 1.442695, %v990_v11  ;;  %v980_v1 = vmul.f32 %v4866_v24, %v964_v13  ;;  %v986_v63 = vadd.f32 %v978_v61, %v6362_v46  ;;  %v4868_v51 = vpop.eup %4867 }
 0x1a7   : > { %4877 = vpow2.f32 %v997_v0  ;;  %v1001_v26 = vmul.f32 1.442695, %v991_v20  ;;  %v987_v29 = vadd.f32 %v979_v50, %v6346_v9  ;;  %v993_v49 = vmul.f32 -2.0, %v985_v57  ;;  %v4870_v48 = vpop.eup %4869 }
 0x1a8   : > { %4879 = vpow2.f32 %v999_v23  ;;  %v988_v8 = vadd.f32 %v980_v1, %v6355_v31  ;;  %v994_v32 = vmul.f32 -2.0, %v986_v63  ;;  %v1003_v55 = vmul.f32 1.442695, %v992_v58  ;;  %v4872_v47 = vpop.eup %4871 }
 0x1a9   : > { %4881 = vpow2.f32 %v1001_v26  ;;  %v995_v19 = vmul.f32 -2.0, %v987_v29  ;;  %v1005_v13 = vmul.f32 1.442695, %v993_v49  ;;  %v936_v6 = vadd.f32 1.0, %v4868_v51  ;;  %v4874_v10 = vpop.eup %4873 }
 0x1aa   : > { %4883 = vrcp.f32 %v933_v52  ;;  %v996_v15 = vmul.f32 -2.0, %v988_v8  ;;  %v937_v7 = vadd.f32 1.0, %v4870_v48  ;;  %v1007_v5 = vmul.f32 1.442695, %v994_v32  ;;  %v4876_v61 = vpop.eup %4875 }
 0x1ab   : > { %4885 = vrcp.f32 %v934_v41  ;;  %v1009_v11 = vmul.f32 1.442695, %v995_v19  ;;  %v938_v57 = vadd.f32 1.0, %v4872_v47  ;;  %v939_v1 = vadd.f32 1.0, %v4874_v10 }
 0x1ac   : > { %4887 = vrcp.f32 %v935_v56  ;;  %v1011_v24 = vmul.f32 1.442695, %v996_v15  ;;  %v940_v26 = vadd.f32 1.0, %v4876_v61  ;;  %v1062_v47 = vrot.slane %v6130_v39, 1 }
 0x1ad   : > { %4889 = vpow2.f32 %v1003_v55  ;;  %v1064_v61 = vrot.slane %v6130_v39, 3 }
 0x1ae   : > { %4891 = vpow2.f32 %v1005_v13 }
 0x1af   : > { %4893 = vrcp.f32 %v936_v6 }
 0x1b0   : > { %4895 = vrcp.f32 %v937_v7  ;;  %v1063_v7 = vrot.slane %v6130_v39, 2 }
 0x1b1   : > { %v4878_v20 = vpop.eup %4877  ;;  %4897 = vpow2.f32 %v1007_v5 }
 0x1b2   : > { %v4880_v52 = vpop.eup %4879  ;;  %4899 = vpow2.f32 %v1009_v11  ;;  %v1013_v0 = vadd.f32 1.0, %v4878_v20  ;;  %v1065_v11 = vrot.slane %v6130_v39, 4 }
 0x1b3   : > { %v4882_v50 = vpop.eup %4881  ;;  %4901 = vpow2.f32 %v1011_v24  ;;  %v1014_v58 = vadd.f32 1.0, %v4880_v52  ;;  %v1066_v52 = vrot.slane %v6130_v39, 5 }
 0x1b4   : > { %v4884_v23 = vpop.eup %4883  ;;  %v1015_v63 = vadd.f32 1.0, %v4882_v50  ;;  %4903 = vrcp.f32 %v1013_v0  ;;  %v1067_v0 = vrot.slane %v6130_v39, 6 }
 0x1b5   : > { %v4886_v41 = vpop.eup %4885  ;;  %4905 = vrcp.f32 %v1014_v58  ;;  %v1068_v58 = vrot.slane %v6130_v39, 7 }
 0x1b6   : > { %v4888_v29 = vpop.eup %4887  ;;  %4907 = vrcp.f32 %v1015_v63 }
 0x1b7   : > { %v4890_v51 = vpop.eup %4889  ;;  %4909 = vrcp.f32 %v938_v57 }
 0x1b8   : > { %v4892_v56 = vpop.eup %4891  ;;  %4911 = vrcp.f32 %v939_v1  ;;  %v1016_v8 = vadd.f32 1.0, %v4890_v51  ;;  %v1045_v51 = vsub.f32 1.0, %v4884_v23 }
 0x1b9   : > { %v6375_v49 = vpop.eup %4893  ;;  %4913 = vrcp.f32 %v940_v26  ;;  %v1017_v48 = vadd.f32 1.0, %v4892_v56 }
 0x1ba   : > { %v6377_v32 = vpop.eup %4895  ;;  %4915 = vrcp.f32 %v1016_v8  ;;  %v1080_v9 = vmul.f32 %v6375_v49, %v1064_v61  ;;  %v1104_v61 = vld [vmem:[%s6052_s7] sm:$0x1] }
 0x1bb   : > { %v4898_v19 = vpop.eup %4897  ;;  %4917 = vrcp.f32 %v1017_v48  ;;  %v1046_v48 = vsub.f32 1.0, %v4886_v41 }
 0x1bc   : > { %v4900_v55 = vpop.eup %4899  ;;  %v1018_v13 = vadd.f32 1.0, %v4898_v19  ;;  %v1047_v19 = vsub.f32 1.0, %v4888_v29 }
 0x1bd   : > { %v4902_v6 = vpop.eup %4901  ;;  %v1019_v15 = vadd.f32 1.0, %v4900_v55  ;;  %v1077_v55 = vmul.f32 %v4884_v23, %v6130_v39  ;;  %v1081_v39 = vmul.f32 %v6377_v32, %v1065_v11 }
 0x1be   : > { %v4904_v10 = vpop.eup %4903  ;;  %v1020_v5 = vadd.f32 1.0, %v4902_v6  ;;  %4919 = vrcp.f32 %v1018_v13 }
 0x1bf   : > { %v4906_v24 = vpop.eup %4905  ;;  %v1022_v20 = vmul.f32 2.0, %v4904_v10  ;;  %4921 = vrcp.f32 %v1019_v15  ;;  %v1078_v10 = vmul.f32 %v4886_v41, %v1062_v47 }
 0x1c0   : > { %v4908_v50 = vpop.eup %4907  ;;  %v1024_v57 = vmul.f32 2.0, %v4906_v24  ;;  %4923 = vrcp.f32 %v1020_v5  ;;  %v1079_v5 = vmul.f32 %v4888_v29, %v1063_v7 }
 0x1c1   : > { %v6386_v1 = vpop.eup %4909  ;;  %v1026_v63 = vmul.f32 2.0, %v4908_v50  ;;  %v4374_v26 = vadd.f32 -1.0, %v1022_v20  ;;  %v1048_v50 = vsub.f32 1.0, %v6375_v49  ;;  %v1049_v20 = vsub.f32 1.0, %v6377_v32  ;;  %v6483_v49 = vld [vmem:[#allocation8 + $0x8] ss:$12 sps:$4 sm:$0xff]  }
 0x1c2   : > { %v6388_v56 = vpop.eup %4911  ;;  %v4375_v8 = vadd.f32 -1.0, %v1024_v57  ;;  %v1050_v29 = vsub.f32 1.0, %v6386_v1  ;;  %v1082_v47 = vmul.f32 %v6386_v1, %v1066_v52 }
 0x1c3   : > { %v6391_v13 = vpop.eup %4913  ;;  %v4376_v6 = vadd.f32 -1.0, %v1026_v63  ;;  %v1053_v15 = vmul.f32 %v4374_v26, %v1045_v51  ;;  %v1051_v11 = vsub.f32 1.0, %v6388_v56  ;;  %v1107_v51 = vld [vmem:[%s6052_s7 + $0x4] sm:$0x1] }
 0x1c4   : > { %v4916_v24 = vpop.eup %4915  ;;  %v1054_v31 = vmul.f32 %v4375_v8, %v1046_v48  ;;  %v1052_v1 = vsub.f32 1.0, %v6391_v13  ;;  %v1083_v8 = vmul.f32 %v6388_v56, %v1067_v0 }
 0x1c5   : > { %v4918_v57 = vpop.eup %4917  ;;  %v1028_v46 = vmul.f32 2.0, %v4916_v24  ;;  %v1055_v54 = vmul.f32 %v4376_v6, %v1047_v19  ;;  %v6397_v23 = vadd.f32 %v1077_v55, %v1053_v15  ;;  %v1110_v19 = vld [vmem:[%s6052_s7 + $0x8] sm:$0x1] }
 0x1c6   : > { %v1030_v41 = vmul.f32 2.0, %v4918_v57  ;;  %v6401_v7 = vadd.f32 %v1078_v10, %v1054_v31 }
 0x1c7   : > { %v4377_v32 = vadd.f32 -1.0, %v1028_v46  ;;  %v6411_v63 = vadd.f32 %v1079_v5, %v1055_v54  ;;  %v1093_v26 = vpack.c.bf16 %v6397_v23, %v6397_v23  ;;  %v1084_v5 = vmul.f32 %v6391_v13, %v1068_v58 }
 0x1c8   : > { %v4920_v52 = vpop.eup %4919  ;;  %v4378_v31 = vadd.f32 -1.0, %v1030_v41  ;;  %v1094_v48 = vpack.c.bf16 %v6401_v7, %v6401_v7 }
 0x1c9   : > { %v4922_v46 = vpop.eup %4921  ;;  %v1032_v54 = vmul.f32 2.0, %v4920_v52  ;;  %v1056_v55 = vmul.f32 %v4377_v32, %v1048_v50  ;;  %v1095_v6 = vpack.c.bf16 %v6411_v63, %v6411_v63  ;;  %v1105_v15 = vsel %vm6405_vm5, %v1093_v26, %v1104_v61 }
 0x1ca   : > { %v4924_v10 = vpop.eup %4923  ;;  %v1034_v0 = vmul.f32 2.0, %v4922_v46  ;;  %v1057_v56 = vmul.f32 %v4378_v31, %v1049_v20  ;;  %1106 = vst [vmem:[%s6052_s7] sm:$0x1] %v1105_v15  ;;  %v1108_v24 = vsel %vm6405_vm5, %v1094_v48, %v1107_v51  ;;  %v1113_v20 = vld [vmem:[%s6052_s7 + $0xc] sm:$0x1]  ;;  %v1137_v31 = vunpack.c.l.b16 %v1094_v48 }
 0x1cb   : > { %v1036_v50 = vmul.f32 2.0, %v4924_v10  ;;  %v4379_v57 = vadd.f32 -1.0, %v1032_v54  ;;  %v6429_v41 = vadd.f32 %v1080_v9, %v1056_v55  ;;  %1109 = vst [vmem:[%s6052_s7 + $0x4] sm:$0x1] %v1108_v24  ;;  %v1111_v61 = vsel %vm6405_vm5, %v1095_v6, %v1110_v19  ;;  %v1116_v9 = vld [vmem:[%s6052_s7 + $0x10] sm:$0x1] }
 0x1cc   : > { %v4380_v32 = vadd.f32 -1.0, %v1034_v0  ;;  %v6434_v52 = vadd.f32 %v1081_v39, %v1057_v56  ;;  %1112 = vst [vmem:[%s6052_s7 + $0x8] sm:$0x1] %v1111_v61  ;;  %v1138_v58 = vunpack.c.l.b16 %v1095_v6  ;;  %v1136_v54 = vunpack.c.l.b16 %v1093_v26  ;;  %v1119_v26 = vld [vmem:[%s6052_s7 + $0x14] sm:$0x1] }
 0x1cd   : > { %v4381_v13 = vadd.f32 -1.0, %v1036_v50  ;;  %v1058_v46 = vmul.f32 %v4379_v57, %v1050_v29  ;;  %v1096_v51 = vpack.c.bf16 %v6429_v41, %v6429_v41  ;;  %v1144_v39 = vrot.slane %v1137_v31, 7 }
 0x1ce   : > { %v1059_v55 = vmul.f32 %v4380_v32, %v1051_v11  ;;  %v1097_v19 = vpack.c.bf16 %v6434_v52, %v6434_v52  ;;  %v1147_v15 = vrot.slane %v1138_v58, 6  ;;  %v1125_v32 = vld [vmem:[%s6052_s7 + $0x1c] sm:$0x1] }
 0x1cf   : > { %v1060_v10 = vmul.f32 %v4381_v13, %v1052_v1  ;;  %v6443_v48 = vadd.f32 %v1082_v47, %v1058_v46  ;;  %v1114_v29 = vsel %vm6405_vm5, %v1096_v51, %v1113_v20  ;;  %v1139_v6 = vunpack.c.l.b16 %v1096_v51  ;;  %v1122_v1 = vld [vmem:[%s6052_s7 + $0x18] sm:$0x1] }
 0x1d0   : > { %v6447_v0 = vadd.f32 %v1083_v8, %v1059_v55  ;;  %1115 = vst [vmem:[%s6052_s7 + $0xc] sm:$0x1] %v1114_v29  ;;  %v1117_v11 = vsel %vm6405_vm5, %v1097_v19, %v1116_v9  ;;  %v1140_v56 = vunpack.c.l.b16 %v1097_v19  ;;  %v1146_v24 = vsel %vm1145_vm4, %v1144_v39, %v1136_v54 }
 0x1d1   : > { %v6454_v50 = vadd.f32 %v1084_v5, %v1060_v10  ;;  %v1098_v47 = vpack.c.bf16 %v6443_v48, %v6443_v48  ;;  %1118 = vst [vmem:[%s6052_s7 + $0x10] sm:$0x1] %v1117_v11  ;;  %v1149_v8 = vsel %vm1148_vm6, %v1147_v15, %v1146_v24  ;;  %v1150_v57 = vrot.slane %v1139_v6, 5 }
 0x1d2   : > { %v1099_v61 = vpack.c.bf16 %v6447_v0, %v6447_v0  ;;  %v1153_v20 = vrot.slane %v1140_v56, 4  ;;  %v6486_v56 = vld [vmem:[#allocation8 + $0x1c] ss:$12 sps:$4 sm:$0xff]   ;;  %v8028_v24 = vmov 0.0  }
 0x1d3   : > { %v1100_v31 = vpack.c.bf16 %v6454_v50, %v6454_v50  ;;  %v1120_v5 = vsel %vm6405_vm5, %v1098_v47, %v1119_v26  ;;  %v1141_v58 = vunpack.c.l.b16 %v1098_v47  ;;  %v1152_v13 = vsel %vm1151_vm7, %v1150_v57, %v1149_v8  ;;  %v6480_v26 = vld [vmem:[#allocation8] ss:$12 sps:$4 sm:$0xff]   ;;  %v6501_v57 = vld [vmem:[#allocation8 + $0x30] ss:$12 sps:$4 sm:$0xff]  }
 0x1d4   : > { %1121 = vst [vmem:[%s6052_s7 + $0x14] sm:$0x1] %v1120_v5  ;;  %v1123_v46 = vsel %vm6405_vm5, %v1099_v61, %v1122_v1  ;;  %v1142_v51 = vunpack.c.l.b16 %v1099_v61  ;;  %v1155_v9 = vsel %vm1154_vm8, %v1153_v20, %v1152_v13  ;;  %v8029_v47 = vmov 0   ;;  %v6493_v1 = vld [vmem:[#allocation8 + $0x18] ss:$12 sps:$4 sm:$0xff]  }
 0x1d5   : > { %1124 = vst [vmem:[%s6052_s7 + $0x18] sm:$0x1] %v1123_v46  ;;  %v1126_v54 = vsel %vm6405_vm5, %v1100_v31, %v1125_v32  ;;  %v1143_v55 = vunpack.c.l.b16 %v1100_v31  ;;  %v1156_v19 = vrot.slane %v1141_v58, 3  ;;  %v6497_v8 = vld [vmem:[#allocation8 + $0x34] ss:$12 sps:$4 sm:$0xff]   ;;  %vm7275_vm5 = vmand %vm1148_vm6, %vm2851_vm3 }
 0x1d6   : > { %1127 = vst [vmem:[%s6052_s7 + $0x1c] sm:$0x1] %v1126_v54  ;;  %v1159_v39 = vrot.slane %v1142_v51, 2  ;;  %v6505_v61 = vld [vmem:[#allocation8 + $0x4c] ss:$12 sps:$4 sm:$0xff]  }
 0x1d7   : > { %v1158_v15 = vsel %vm1157_vm9, %v1156_v19, %v1155_v9  ;;  %v1162_v10 = vrot.slane %v1143_v55, 1  ;;  %v6509_v32 = vld [vmem:[#allocation8 + $0x48] ss:$12 sps:$4 sm:$0xff]   ;;  %v6517_v20 = vld [vmem:[#allocation8 + $0x60] ss:$12 sps:$4 sm:$0xff]  }
 0x1d8   : > { %v1161_v29 = vsel %vm1160_vm10, %v1159_v39, %v1158_v15  ;;  %v6525_v31 = vld [vmem:[#allocation8 + $0x78] ss:$12 sps:$4 sm:$0xff]  }
 0x1d9   : > { %v1164_v6 = vsel %vm1163_vm11, %v1162_v10, %v1161_v29  ;;  %v8032_v29 = vld [vmem:[#allocation17_spill] sm:$0xff] }
 0x1da   : > { %v1165_v11 = vpack.c.b16 %v1164_v6, %v1164_v6 }
 0x1dc   : > { %1200 = vmatmul.mubr.bf16.vlgmr.msra.gmra.mrb[20].mxu0 %v1165_v11  ;;  %4575 = vmatmul.mubr.bf16.vlgmr.msra.gmra.mrb[12].mxu1 %v1165_v11 }
 0x1dd   : > { %1603 = vmatpush1.bf16.msra.mxu0 %v6480_v26  ;;  %4579 = vmatpush3.bf16.msra.mxu1 %v6483_v49 }
 0x1de   : > { %1604 = vmatprep.subr.bf16.mxu0 %v6486_v56  ;;  %4580 = vmatprep.subr.bf16.mxu1 %v8028_v24 }
 0x1df   : > { %1634 = vmatprep.mubr.bf16.mxu0 %v8029_v47  ;;  %4594 = vmatprep.mubr.msk.bf16.mxu1 %vm5838_vm1, %v8028_v24 }
 0x1e1   : > { %1605 = vmatpush1.bf16.msra.mxu0 %v6493_v1  ;;  %4581 = vmatpush3.bf16.msra.mxu1 %v6101_v30  ;;  %v6513_v30 = vld [vmem:[#allocation8 + $0x64] ss:$12 sps:$4 sm:$0xff]  }
 0x1e2   : > { %1606 = vmatprep.subr.bf16.mxu0 %v6497_v8  ;;  %4582 = vmatprep.subr.bf16.mxu1 %v8028_v24 }
 0x1e5   : > { %1607 = vmatpush1.bf16.msra.mxu0 %v6501_v57  ;;  %4583 = vmatpush3.bf16.msra.mxu1 %v6110_v33  ;;  %v6521_v33 = vld [vmem:[#allocation8 + $0x7c] ss:$12 sps:$4 sm:$0xff]  }
 0x1e6   : > { %1608 = vmatprep.subr.bf16.mxu0 %v6505_v61  ;;  %4584 = vmatprep.subr.bf16.mxu1 %v8028_v24 }
 0x1e9   : > { %1609 = vmatpush1.bf16.msra.mxu0 %v6509_v32  ;;  %4585 = vmatpush3.bf16.msra.mxu1 %v6120_v37  ;;  %v6529_v37 = vld [vmem:[#allocation8 + $0x94] ss:$12 sps:$4 sm:$0xff]  }
 0x1ea   : > { %1610 = vmatprep.subr.bf16.mxu0 %v6513_v30  ;;  %4586 = vmatprep.subr.bf16.mxu1 %v8028_v24  ;;  %8030 = vst [vmem:[#allocation34_spill] sm:$0xff] %v6529_v37 }
 0x1ed   : > { %1611 = vmatpush1.bf16.msra.mxu0 %v6517_v20  ;;  %4587 = vmatpush3.bf16.msra.mxu1 %v6134_v40  ;;  %v6539_v40 = vld [vmem:[#allocation8 + $0x4] ss:$12 sps:$4 sm:$0xff]  }
 0x1ee   : > { %1612 = vmatprep.subr.bf16.mxu0 %v6521_v33  ;;  %4588 = vmatprep.subr.bf16.mxu1 %v8028_v24  ;;  %8031 = vst [vmem:[#allocation35_spill] sm:$0xff] %v6539_v40 }
 0x1f1   : > { %1613 = vmatpush1.bf16.msra.mxu0 %v6525_v31  ;;  %4589 = vmatpush3.bf16.msra.mxu1 %v6141_v42 }
 0x1f2   : > { %1614 = vmatprep.subr.bf16.mxu0 %v6529_v37  ;;  %4590 = vmatprep.subr.bf16.mxu1 %v8028_v24 }
 0x1f5   : > { %1615 = vmatpush1.bf16.msra.mxu0 %v6114_v35  ;;  %4591 = vmatpush3.bf16.msra.mxu1 %v6148_v43 }
 0x1f6   : > { %1616 = vmatprep.subr.bf16.mxu0 %v6117_v36  ;;  %4592 = vmatprep.subr.bf16.mxu1 %v8028_v24 }
 0x1f9   : > { %1617 = vmatpush1.bf16.msra.mxu0 %v6127_v38  ;;  %4593 = vmatpush3.bf16.msra.mxu1 %v6154_v44 }
 0x1fa   : > { %2038 = vmatprep.subr.bf16.mxu0 %v6539_v40  ;;  %4598 = vmatprep.subr.bf16.mxu1 %v8028_v24 }
 0x2af   : > { %v1201_v42 = vpop.f32.mrb[20].mxu0  ;;  %v6543_v5 = vpop.f32.mrb[12].mxu1 }
 0x2b0   : > { %v1202_v35 = vadd.f32 %v1201_v42, %v6237_v14  ;;  %v1203_v43 = vpop.f32.mrb[21].mxu0  ;;  %v4576_v58 = vpop.f32.mrb[13].mxu1 }
 0x2b1   : > { %v1205_v36 = vpop.f32.mrb[22].mxu0  ;;  %v1245_v13 = vpop.f32.mrb[14].mxu1 }
 0x2b2   : > { %v1249_v46 = vrot.slane %v1202_v35, 7  ;;  %v1250_v51 = vrot.slane %v1202_v35, 1  ;;  %v1251_v38 = vrot.slane %v1202_v35, 2  ;;  %v1252_v9 = vrot.slane %v1202_v35, 3  ;;  %v1206_v44 = vpop.f32.mrb[23].mxu0  ;;  %v4577_v54 = vpop.f32.mrb[15].mxu1 }
 0x2b3   : > { %v1253_v55 = vrot.slane %v1202_v35, 4  ;;  %v1254_v19 = vrot.slane %v1202_v35, 5  ;;  %v1255_v39 = vrot.slane %v1202_v35, 6  ;;  %v1265_v15 = vadd.f32 %v1202_v35, %v6247_v18 }
 0x2b4   : > { %v1264_v10 = vadd.f32 %v1249_v46, %v6242_v16  ;;  %v1266_v6 = vadd.f32 %v1250_v51, %v8032_v29  ;;  %v1267_v11 = vadd.f32 %v1251_v38, %v6251_v21  ;;  %v1268_v42 = vadd.f32 %v1252_v9, %v6253_v22  ;;  %v8033_v21 = vld [vmem:[#allocation14_spill] sm:$0xff] }
 0x2b5   : > { %v1269_v58 = vadd.f32 %v1253_v55, %v6256_v25  ;;  %v1270_v36 = vadd.f32 %v1254_v19, %v6258_v27  ;;  %v1271_v13 = vadd.f32 %v1255_v39, %v6260_v28  ;;  %v1273_v44 = vsub.f32 0.0, %v1265_v15 }
 0x2b6   : > { %v1272_v54 = vsub.f32 0.0, %v1264_v10  ;;  %v1274_v14 = vsub.f32 0.0, %v1266_v6  ;;  %v1275_v40 = vsub.f32 0.0, %v1267_v11  ;;  %v1276_v37 = vsub.f32 0.0, %v1268_v42 }
 0x2b7   : > { %v1277_v35 = vsub.f32 0.0, %v1269_v58  ;;  %v1278_v18 = vsub.f32 0.0, %v1270_v36  ;;  %v1279_v46 = vsub.f32 0.0, %v1271_v13  ;;  %v1282_v16 = vmul.f32 1.442695, %v1273_v44 }
 0x2b8   : > { %v1280_v51 = vmul.f32 1.442695, %v1272_v54  ;;  %v1284_v29 = vmul.f32 1.442695, %v1274_v14  ;;  %v1286_v38 = vmul.f32 1.442695, %v1275_v40  ;;  %v1204_v9 = vadd.f32 %v1203_v43, %v8033_v21 }
 0x2b9   : > { %4925 = vpow2.f32 %v1282_v16  ;;  %v1288_v55 = vmul.f32 1.442695, %v1276_v37  ;;  %v1290_v19 = vmul.f32 1.442695, %v1277_v35  ;;  %v1292_v39 = vmul.f32 1.442695, %v1278_v18 }
 0x2ba   : > { %4927 = vpow2.f32 %v1280_v51  ;;  %v1294_v15 = vmul.f32 1.442695, %v1279_v46  ;;  %v1321_v10 = vrot.slane %v1204_v9, 7  ;;  %v1322_v6 = vrot.slane %v1204_v9, 1 }
 0x2bb   : > { %4929 = vpow2.f32 %v1284_v29  ;;  %v1323_v14 = vrot.slane %v1204_v9, 2  ;;  %v1324_v40 = vrot.slane %v1204_v9, 3  ;;  %v1325_v43 = vrot.slane %v1204_v9, 4 }
 0x2bc   : > { %4931 = vpow2.f32 %v1286_v38  ;;  %v1336_v11 = vadd.f32 %v1321_v10, %v6245_v17  ;;  %v1337_v16 = vadd.f32 %v1204_v9, %v6275_v45  ;;  %v1338_v29 = vadd.f32 %v1322_v6, %v6283_v60 }
 0x2bd   : > { %4933 = vpow2.f32 %v1288_v55  ;;  %v1326_v13 = vrot.slane %v1204_v9, 5  ;;  %v1339_v44 = vadd.f32 %v1323_v14, %v6292_v34  ;;  %v1327_v46 = vrot.slane %v1204_v9, 6 }
 0x2be   : > { %4935 = vpow2.f32 %v1290_v19  ;;  %v1344_v42 = vsub.f32 0.0, %v1336_v11  ;;  %v1340_v51 = vadd.f32 %v1324_v40, %v6296_v62  ;;  %v1341_v19 = vadd.f32 %v1325_v43, %v6310_v4 }
 0x2bf   : > { %4937 = vpow2.f32 %v1292_v39  ;;  %v1345_v39 = vsub.f32 0.0, %v1337_v16  ;;  %v1346_v6 = vsub.f32 0.0, %v1338_v29  ;;  %v1342_v14 = vadd.f32 %v1326_v13, %v6315_v12 }
 0x2c0   : > { %4939 = vpow2.f32 %v1294_v15  ;;  %v1352_v18 = vmul.f32 1.442695, %v1344_v42  ;;  %v1348_v40 = vsub.f32 0.0, %v1340_v51  ;;  %v1349_v43 = vsub.f32 0.0, %v1341_v19 }
 0x2c1   : > { %v1354_v16 = vmul.f32 1.442695, %v1345_v39  ;;  %v1356_v29 = vmul.f32 1.442695, %v1346_v6  ;;  %v1350_v13 = vsub.f32 0.0, %v1342_v14 }
 0x2c2   : > { %4941 = vpow2.f32 %v1352_v18  ;;  %v8034_v18 = vld [vmem:[#allocation25_spill] sm:$0xff]  ;;  %v1362_v51 = vmul.f32 1.442695, %v1349_v43 }
 0x2c3   : > { %v4926_v37 = vpop.eup %4925  ;;  %v1364_v19 = vmul.f32 1.442695, %v1350_v13 }
 0x2c4   : > { %v4928_v58 = vpop.eup %4927  ;;  %v1297_v36 = vadd.f32 1.0, %v4926_v37  ;;  %v1347_v37 = vsub.f32 0.0, %v1339_v44 }
 0x2c5   : > { %v4930_v54 = vpop.eup %4929  ;;  %v1296_v35 = vadd.f32 1.0, %v4928_v58 }
 0x2c6   : > { %v4932_v38 = vpop.eup %4931  ;;  %v1298_v55 = vadd.f32 1.0, %v4930_v54  ;;  %4943 = vrcp.f32 %v1297_v36  ;;  %v1343_v54 = vadd.f32 %v1327_v46, %v8034_v18  ;;  %v1358_v44 = vmul.f32 1.442695, %v1347_v37 }
 0x2c7   : > { %v4934_v15 = vpop.eup %4933  ;;  %v1299_v10 = vadd.f32 1.0, %v4932_v38  ;;  %4945 = vrcp.f32 %v1296_v35  ;;  %v8035_v35 = vld [vmem:[#allocation23_spill] sm:$0xff] }
 0x2c8   : > { %v4936_v11 = vpop.eup %4935  ;;  %v1300_v42 = vadd.f32 1.0, %v4934_v15  ;;  %4947 = vrcp.f32 %v1298_v55  ;;  %v1243_v55 = vadd.f32 %v6543_v5, %v8035_v35  ;;  %v1360_v15 = vmul.f32 1.442695, %v1348_v40 }
 0x2c9   : > { %v4938_v9 = vpop.eup %4937  ;;  %v1301_v58 = vadd.f32 1.0, %v4936_v11  ;;  %4949 = vrcp.f32 %v1299_v10  ;;  %v1351_v10 = vsub.f32 0.0, %v1343_v54 }
 0x2ca   : > { %v4940_v36 = vpop.eup %4939  ;;  %v1302_v62 = vadd.f32 1.0, %v4938_v9  ;;  %4951 = vrcp.f32 %v1300_v42  ;;  %v1393_v42 = vrot.slane %v1243_v55, 7  ;;  %v1394_v6 = vrot.slane %v1243_v55, 1 }
 0x2cb   : > { %v1303_v38 = vadd.f32 1.0, %v4940_v36  ;;  %4953 = vrcp.f32 %v1301_v58  ;;  %v1366_v58 = vmul.f32 1.442695, %v1351_v10  ;;  %v1395_v14 = vrot.slane %v1243_v55, 2 }
 0x2cc   : > { %4955 = vrcp.f32 %v1302_v62  ;;  %v4942_v46 = vpop.eup %4941  ;;  %v1396_v37 = vrot.slane %v1243_v55, 3  ;;  %v1397_v54 = vrot.slane %v1243_v55, 4 }
 0x2cd   : > { %4957 = vrcp.f32 %v1303_v38  ;;  %v1368_v39 = vadd.f32 1.0, %v4942_v46 }
 0x2ce   : > { %4959 = vpow2.f32 %v1354_v16 }
 0x2cf   : > { %4961 = vpow2.f32 %v1356_v29  ;;  %v1398_v29 = vrot.slane %v1243_v55, 5 }
 0x2d0   : > { %v4944_v11 = vpop.eup %4943  ;;  %4963 = vpow2.f32 %v1358_v44 }
 0x2d1   : > { %v4946_v9 = vpop.eup %4945  ;;  %v1409_v62 = vmul.f32 %v4944_v11, %v1243_v55  ;;  %4965 = vpow2.f32 %v1360_v15 }
 0x2d2   : > { %v4948_v5 = vpop.eup %4947  ;;  %v1408_v36 = vmul.f32 %v4946_v9, %v1393_v42  ;;  %4967 = vpow2.f32 %v1362_v51  ;;  %v1399_v51 = vrot.slane %v1243_v55, 6 }
 0x2d3   : > { %v4950_v40 = vpop.eup %4949  ;;  %v1410_v43 = vmul.f32 %v4948_v5, %v1394_v6  ;;  %v1417_v16 = vadd.f32 %v1409_v62, %v6342_v53  ;;  %4969 = vrcp.f32 %v1368_v39 }
 0x2d4   : > { %v4952_v38 = vpop.eup %4951  ;;  %v1411_v13 = vmul.f32 %v4950_v40, %v1395_v14  ;;  %v1416_v44 = vadd.f32 %v1408_v36, %v6333_v3  ;;  %4971 = vpow2.f32 %v1364_v19  ;;  %v8036_v19 = vld [vmem:[#allocation31_spill] sm:$0xff] }
 0x2d5   : > { %v4954_v46 = vpop.eup %4953  ;;  %v1412_v15 = vmul.f32 %v4952_v38, %v1396_v37  ;;  %v1418_v10 = vadd.f32 %v1410_v43, %v6329_v2  ;;  %v1425_v11 = vmul.f32 -2.0, %v1417_v16  ;;  %4973 = vpow2.f32 %v1366_v58  ;;  %v8037_v58 = vld [vmem:[#allocation33_spill] sm:$0xff] }
 0x2d6   : > { %v4956_v42 = vpop.eup %4955  ;;  %v1413_v9 = vmul.f32 %v4954_v46, %v1397_v54  ;;  %v1424_v35 = vmul.f32 -2.0, %v1416_v44  ;;  %v1419_v62 = vadd.f32 %v1411_v13, %v6337_v59  ;;  %v8038_v44 = vld [vmem:[#allocation30_spill] sm:$0xff]  ;;  %v8039_v13 = vld [vmem:[#allocation32_spill] sm:$0xff] }
 0x2d7   : > { %v4958_v6 = vpop.eup %4957  ;;  %v1426_v39 = vmul.f32 -2.0, %v1418_v10  ;;  %v1434_v5 = vmul.f32 1.442695, %v1425_v11  ;;  %v1414_v53 = vmul.f32 %v4956_v42, %v1398_v29  ;;  %v1420_v3 = vadd.f32 %v1412_v15, %v8036_v19 }
 0x2d8   : > { %v4960_v14 = vpop.eup %4959  ;;  %v1432_v40 = vmul.f32 1.442695, %v1424_v35  ;;  %v1415_v36 = vmul.f32 %v4958_v6, %v1399_v51  ;;  %v1421_v38 = vadd.f32 %v1413_v9, %v8037_v58  ;;  %v1427_v29 = vmul.f32 -2.0, %v1419_v62 }
 0x2d9   : > { %v4962_v37 = vpop.eup %4961  ;;  %4975 = vpow2.f32 %v1434_v5  ;;  %v1436_v43 = vmul.f32 1.442695, %v1426_v39  ;;  %v1369_v16 = vadd.f32 1.0, %v4960_v14  ;;  %v1422_v46 = vadd.f32 %v1414_v53, %v8038_v44 }
 0x2da   : > { %v4964_v55 = vpop.eup %4963  ;;  %4977 = vpow2.f32 %v1432_v40  ;;  %v1370_v54 = vadd.f32 1.0, %v4962_v37  ;;  %v1423_v10 = vadd.f32 %v1415_v36, %v8039_v13  ;;  %v1428_v51 = vmul.f32 -2.0, %v1420_v3 }
 0x2db   : > { %v4966_v11 = vpop.eup %4965  ;;  %4979 = vpow2.f32 %v1436_v43  ;;  %v1371_v35 = vadd.f32 1.0, %v4964_v55  ;;  %v1504_v39 = vrot.slane %v6397_v23, 7  ;;  %v1429_v5 = vmul.f32 -2.0, %v1421_v38 }
 0x2dc   : > { %v4968_v42 = vpop.eup %4967  ;;  %4981 = vrcp.f32 %v1369_v16  ;;  %v1372_v15 = vadd.f32 1.0, %v4966_v11  ;;  %v1430_v53 = vmul.f32 -2.0, %v1422_v46  ;;  %v1431_v40 = vmul.f32 -2.0, %v1423_v10 }
 0x2dd   : > { %v6573_v6 = vpop.eup %4969  ;;  %4983 = vrcp.f32 %v1370_v54  ;;  %v1373_v9 = vadd.f32 1.0, %v4968_v42  ;;  %v1438_v62 = vmul.f32 1.442695, %v1427_v29  ;;  %v1440_v3 = vmul.f32 1.442695, %v1428_v51 }
 0x2de   : > { %v4972_v14 = vpop.eup %4971  ;;  %4985 = vrcp.f32 %v1371_v35  ;;  %v6577_v43 = vmul.f32 %v6573_v6, %v1504_v39  ;;  %v1442_v55 = vmul.f32 1.442695, %v1429_v5  ;;  %v1444_v23 = vmul.f32 1.442695, %v1430_v53 }
 0x2df   : > { %v4974_v36 = vpop.eup %4973  ;;  %v1374_v37 = vadd.f32 1.0, %v4972_v14  ;;  %4987 = vrcp.f32 %v1372_v15  ;;  %v1446_v38 = vmul.f32 1.442695, %v1431_v40  ;;  %v1505_v10 = vrot.slane %v6401_v7, 7 }
 0x2e0   : > { %v1375_v16 = vadd.f32 1.0, %v4974_v36  ;;  %4989 = vrcp.f32 %v1373_v9  ;;  %v1506_v15 = vrot.slane %v6411_v63, 7  ;;  %v1507_v9 = vrot.slane %v6429_v41, 7 }
 0x2e1   : > { %4991 = vrcp.f32 %v1374_v37  ;;  %v1508_v53 = vrot.slane %v6434_v52, 7  ;;  %v1509_v36 = vrot.slane %v6443_v48, 7  ;;  %v1510_v41 = vrot.slane %v6447_v0, 7 }
 0x2e2   : > { %4993 = vrcp.f32 %v1375_v16  ;;  %v1511_v52 = vrot.slane %v6454_v50, 7 }
 0x2e3   : > { %v4976_v54 = vpop.eup %4975  ;;  %4995 = vpow2.f32 %v1438_v62 }
 0x2e4   : > { %v4978_v11 = vpop.eup %4977  ;;  %4997 = vpow2.f32 %v1440_v3  ;;  %v1449_v35 = vadd.f32 1.0, %v4976_v54 }
 0x2e5   : > { %v4980_v46 = vpop.eup %4979  ;;  %4999 = vpow2.f32 %v1442_v55  ;;  %v1448_v29 = vadd.f32 1.0, %v4978_v11 }
 0x2e6   : > { %v4982_v42 = vpop.eup %4981  ;;  %5001 = vpow2.f32 %v1444_v23  ;;  %v1450_v51 = vadd.f32 1.0, %v4980_v46 }
 0x2e7   : > { %v4984_v39 = vpop.eup %4983  ;;  %5003 = vpow2.f32 %v1446_v38  ;;  %v1521_v5 = vmul.f32 %v4982_v42, %v1505_v10  ;;  %v1481_v44 = vsub.f32 1.0, %v4982_v42 }
 0x2e8   : > { %v6582_v14 = vpop.eup %4985  ;;  %5005 = vrcp.f32 %v1448_v29  ;;  %v1522_v40 = vmul.f32 %v4984_v39, %v1506_v15 }
 0x2e9   : > { %v6585_v7 = vpop.eup %4987  ;;  %5007 = vrcp.f32 %v1449_v35  ;;  %v6589_v63 = vmul.f32 %v6582_v14, %v1507_v9 }
 0x2ea   : > { %v6591_v37 = vpop.eup %4989  ;;  %5009 = vrcp.f32 %v1450_v51  ;;  %v6595_v62 = vmul.f32 %v6585_v7, %v1508_v53 }
 0x2eb   : > { %v6597_v16 = vpop.eup %4991  ;;  %v6601_v3 = vmul.f32 %v6591_v37, %v1509_v36  ;;  %v1485_v42 = vsub.f32 1.0, %v6591_v37 }
 0x2ec   : > { %v6603_v48 = vpop.eup %4993  ;;  %v6606_v55 = vmul.f32 %v6597_v16, %v1510_v41 }
 0x2ed   : > { %v4996_v23 = vpop.eup %4995  ;;  %v6609_v54 = vmul.f32 %v6603_v48, %v1511_v52 }
 0x2ee   : > { %v4998_v0 = vpop.eup %4997  ;;  %v1451_v38 = vadd.f32 1.0, %v4996_v23  ;;  %v1480_v23 = vsub.f32 1.0, %v6573_v6 }
 0x2ef   : > { %v5000_v11 = vpop.eup %4999  ;;  %v1452_v46 = vadd.f32 1.0, %v4998_v0 }
 0x2f0   : > { %v5002_v10 = vpop.eup %5001  ;;  %v1453_v29 = vadd.f32 1.0, %v5000_v11  ;;  %5011 = vrcp.f32 %v1451_v38  ;;  %v1482_v38 = vsub.f32 1.0, %v4984_v39 }
 0x2f1   : > { %v5004_v50 = vpop.eup %5003  ;;  %v1454_v35 = vadd.f32 1.0, %v5002_v10  ;;  %5013 = vrcp.f32 %v1452_v46 }
 0x2f2   : > { %v5006_v15 = vpop.eup %5005  ;;  %v1455_v51 = vadd.f32 1.0, %v5004_v50  ;;  %5015 = vrcp.f32 %v1453_v29 }
 0x2f3   : > { %v5008_v9 = vpop.eup %5007  ;;  %v1457_v53 = vmul.f32 2.0, %v5006_v15  ;;  %5017 = vrcp.f32 %v1454_v35  ;;  %v1483_v35 = vsub.f32 1.0, %v6582_v14  ;;  %v1484_v15 = vsub.f32 1.0, %v6585_v7  ;;  %v1546_v7 = vld [vmem:[%s6052_s7] sm:$0x1] }
 0x2f4   : > { %v5010_v36 = vpop.eup %5009  ;;  %v1459_v41 = vmul.f32 2.0, %v5008_v9  ;;  %5019 = vrcp.f32 %v1455_v51  ;;  %v1487_v14 = vsub.f32 1.0, %v6603_v48 }
 0x2f5   : > { %v1461_v52 = vmul.f32 2.0, %v5010_v36  ;;  %v4382_v13 = vadd.f32 -1.0, %v1457_v53 }
 0x2f6   : > { %v4383_v0 = vadd.f32 -1.0, %v1459_v41 }
 0x2f7   : > { %v4384_v11 = vadd.f32 -1.0, %v1461_v52  ;;  %v1488_v58 = vmul.f32 %v4382_v13, %v1480_v23  ;;  %v1549_v23 = vld [vmem:[%s6052_s7 + $0x4] sm:$0x1] }
 0x2f8   : > { %v1489_v10 = vmul.f32 %v4383_v0, %v1481_v44 }
 0x2f9   : > { %v1490_v46 = vmul.f32 %v4384_v11, %v1482_v38  ;;  %v6613_v29 = vadd.f32 %v6577_v43, %v1488_v58  ;;  %v1552_v38 = vld [vmem:[%s6052_s7 + $0x8] sm:$0x1]  ;;  %v6707_v58 = vld [vmem:[#allocation8 + $0x20] ss:$12 sps:$4 sm:$0xff]  }
 0x2fa   : > { %v5012_v50 = vpop.eup %5011  ;;  %v6617_v51 = vadd.f32 %v1521_v5, %v1489_v10  ;;  %v1486_v5 = vsub.f32 1.0, %v6597_v16 }
 0x2fb   : > { %v5014_v6 = vpop.eup %5013  ;;  %v1463_v9 = vmul.f32 2.0, %v5012_v50  ;;  %v6620_v13 = vadd.f32 %v1522_v40, %v1490_v46  ;;  %v1536_v44 = vpack.c.bf16 %v6613_v29, %v6613_v29 }
 0x2fc   : > { %8040 = vst [vmem:[#allocation14_spill] sm:$0xff] %v6617_v51  ;;  %v5016_v43 = vpop.eup %5015  ;;  %v1465_v39 = vmul.f32 2.0, %v5014_v6  ;;  %v1537_v40 = vpack.c.bf16 %v6617_v51, %v6617_v51 }
 0x2fd   : > { %8041 = vst [vmem:[#allocation36_spill] sm:$0xff] %v6620_v13  ;;  %v5018_v37 = vpop.eup %5017  ;;  %v1467_v53 = vmul.f32 2.0, %v5016_v43  ;;  %v4385_v36 = vadd.f32 -1.0, %v1463_v9  ;;  %v1538_v41 = vpack.c.bf16 %v6620_v13, %v6620_v13  ;;  %v1547_v52 = vsel %vm6625_vm13, %v1536_v44, %v1546_v7 }
 0x2fe   : > { %v5020_v0 = vpop.eup %5019  ;;  %v1469_v16 = vmul.f32 2.0, %v5018_v37  ;;  %v4386_v11 = vadd.f32 -1.0, %v1465_v39  ;;  %1548 = vst [vmem:[%s6052_s7] sm:$0x1] %v1547_v52  ;;  %v1550_v48 = vsel %vm6625_vm13, %v1537_v40, %v1549_v23  ;;  %v1578_v10 = vunpack.c.l.b16 %v1536_v44 }
 0x2ff   : > { %v1471_v46 = vmul.f32 2.0, %v5020_v0  ;;  %v4387_v50 = vadd.f32 -1.0, %v1467_v53  ;;  %v1491_v6 = vmul.f32 %v4385_v36, %v1483_v35  ;;  %1551 = vst [vmem:[%s6052_s7 + $0x4] sm:$0x1] %v1550_v48  ;;  %v1553_v9 = vsel %vm6625_vm13, %v1538_v41, %v1552_v38 }
 0x300   : > { %v4388_v43 = vadd.f32 -1.0, %v1469_v16  ;;  %v1492_v7 = vmul.f32 %v4386_v11, %v1484_v15  ;;  %1554 = vst [vmem:[%s6052_s7 + $0x8] sm:$0x1] %v1553_v9  ;;  %v1579_v13 = vunpack.c.l.b16 %v1537_v40  ;;  %v1580_v37 = vunpack.c.l.b16 %v1538_v41 }
 0x301   : > { %v4389_v39 = vadd.f32 -1.0, %v1471_v46  ;;  %v1493_v52 = vmul.f32 %v4387_v50, %v1485_v42  ;;  %v6648_v51 = vadd.f32 %v6589_v63, %v1491_v6  ;;  %v1586_v44 = vrot.slane %v1578_v10, 1  ;;  %v1564_v46 = vld [vmem:[%s6052_s7 + $0x18] sm:$0x1] }
 0x302   : > { %v1494_v23 = vmul.f32 %v4388_v43, %v1486_v5  ;;  %v6651_v35 = vadd.f32 %v6595_v62, %v1492_v7  ;;  %v1588_v53 = vrot.slane %v1580_v37, 7  ;;  %v1555_v5 = vld [vmem:[%s6052_s7 + $0xc] sm:$0x1]  ;;  %v1567_v43 = vld [vmem:[%s6052_s7 + $0x1c] sm:$0x1] }
 0x303   : > { %v1495_v36 = vmul.f32 %v4389_v39, %v1487_v14  ;;  %v6654_v15 = vadd.f32 %v6601_v3, %v1493_v52  ;;  %v1539_v40 = vpack.c.bf16 %v6648_v51, %v6648_v51  ;;  %v1587_v42 = vsel %vm1145_vm4, %v1579_v13, %v1586_v44 }
 0x304   : > { %v6660_v63 = vadd.f32 %v6606_v55, %v1494_v23  ;;  %v1540_v62 = vpack.c.bf16 %v6651_v35, %v6651_v35  ;;  %v1589_v14 = vsel %vm1148_vm6, %v1588_v53, %v1587_v42  ;;  %v1558_v55 = vld [vmem:[%s6052_s7 + $0x10] sm:$0x1] }
 0x305   : > { %v6667_v41 = vadd.f32 %v6609_v54, %v1495_v36  ;;  %v1541_v3 = vpack.c.bf16 %v6654_v15, %v6654_v15  ;;  %v1556_v13 = vsel %vm6625_vm13, %v1539_v40, %v1555_v5  ;;  %v1581_v0 = vunpack.c.l.b16 %v1539_v40  ;;  %v1561_v54 = vld [vmem:[%s6052_s7 + $0x14] sm:$0x1] }
 0x306   : > { %v1542_v16 = vpack.c.bf16 %v6660_v63, %v6660_v63  ;;  %1557 = vst [vmem:[%s6052_s7 + $0xc] sm:$0x1] %v1556_v13  ;;  %v1559_v11 = vsel %vm6625_vm13, %v1540_v62, %v1558_v55  ;;  %v1582_v48 = vunpack.c.l.b16 %v1540_v62  ;;  %v8046_v13 = vld [vmem:[#allocation13_spill] sm:$0xff] }
 0x307   : > { %v1543_v38 = vpack.c.bf16 %v6667_v41, %v6667_v41  ;;  %1560 = vst [vmem:[%s6052_s7 + $0x10] sm:$0x1] %v1559_v11  ;;  %v1562_v10 = vsel %vm6625_vm13, %v1541_v3, %v1561_v54  ;;  %v1583_v50 = vunpack.c.l.b16 %v1541_v3  ;;  %v1590_v6 = vrot.slane %v1581_v0, 6 }
 0x308   : > { %1563 = vst [vmem:[%s6052_s7 + $0x14] sm:$0x1] %v1562_v10  ;;  %v1565_v9 = vsel %vm6625_vm13, %v1542_v16, %v1564_v46  ;;  %v1584_v7 = vunpack.c.l.b16 %v1542_v16  ;;  %v1592_v37 = vrot.slane %v1582_v48, 5 }
 0x309   : > { %1566 = vst [vmem:[%s6052_s7 + $0x18] sm:$0x1] %v1565_v9  ;;  %v1568_v39 = vsel %vm6625_vm13, %v1543_v38, %v1567_v43  ;;  %v1585_v52 = vunpack.c.l.b16 %v1543_v38  ;;  %v1591_v44 = vsel %vm1151_vm7, %v1590_v6, %v1589_v14  ;;  %v1594_v23 = vrot.slane %v1583_v50, 4  ;;  %vm7490_vm13 = vmand %vm1148_vm6, %vm3286_vm12 }
 0x30a   : > { %1569 = vst [vmem:[%s6052_s7 + $0x1c] sm:$0x1] %v1568_v39  ;;  %v1593_v53 = vsel %vm1154_vm8, %v1592_v37, %v1591_v44  ;;  %v1596_v36 = vrot.slane %v1584_v7, 3  ;;  %v8047_v37 = vld [vmem:[#allocation17_spill] sm:$0xff] }
 0x30b   : > { %v1595_v40 = vsel %vm1157_vm9, %v1594_v23, %v1593_v53  ;;  %v1598_v42 = vrot.slane %v1585_v52, 2  ;;  %v8048_v52 = vld [vmem:[#allocation15_spill] sm:$0xff]  ;;  %v8049_v23 = vld [vmem:[#allocation16_spill] sm:$0xff] }
 0x30c   : > { %v1597_v62 = vsel %vm1160_vm10, %v1596_v36, %v1595_v40  ;;  %v8050_v36 = vld [vmem:[#allocation18_spill] sm:$0xff] }
 0x30d   : > { %v1599_v5 = vsel %vm1163_vm11, %v1598_v42, %v1597_v62 }
 0x30e   : > { %v1600_v3 = vpack.c.b16 %v1599_v5, %v1599_v5 }
 0x310   : > { %1635 = vmatmul.mubr.bf16.vlgmr.msra.gmra.mrb[24].mxu0 %v1600_v3  ;;  %4595 = vmatmul.mubr.bf16.vlgmr.msra.gmra.mrb[16].mxu1 %v1600_v3 }
 0x311   : > { %2039 = vmatpush1.bf16.msra.mxu0 %v6480_v26  ;;  %4599 = vmatpush3.bf16.msra.mxu1 %v6483_v49  ;;  %v6713_v26 = vld [vmem:[#allocation8 + $0x38] ss:$12 sps:$4 sm:$0xff]   ;;  %v6719_v49 = vld [vmem:[#allocation8 + $0x50] ss:$12 sps:$4 sm:$0xff]  }
 0x312   : > { %2040 = vmatprep.subr.bf16.mxu0 %v6486_v56  ;;  %4600 = vmatprep.subr.bf16.mxu1 %v8028_v24  ;;  %v6725_v56 = vld [vmem:[#allocation8 + $0x68] ss:$12 sps:$4 sm:$0xff]  }
 0x313   : > { %2070 = vmatprep.mubr.bf16.mxu0 %v8029_v47  ;;  %4614 = vmatprep.mubr.msk.bf16.mxu1 %vm5838_vm1, %v8028_v24 }
 0x315   : > { %2041 = vmatpush1.bf16.msra.mxu0 %v6493_v1  ;;  %4601 = vmatpush3.bf16.msra.mxu1 %v6707_v58  ;;  %v6731_v1 = vld [vmem:[#allocation8 + $0x80] ss:$12 sps:$4 sm:$0xff]  }
 0x316   : > { %2042 = vmatprep.subr.bf16.mxu0 %v6497_v8  ;;  %4602 = vmatprep.subr.bf16.mxu1 %v8028_v24  ;;  %v8044_v8 = vld [vmem:[#allocation34_spill] sm:$0xff] }
 0x319   : > { %2043 = vmatpush1.bf16.msra.mxu0 %v6501_v57  ;;  %4603 = vmatpush3.bf16.msra.mxu1 %v6713_v26  ;;  %v6736_v57 = vld [vmem:[#allocation8 + $0x90] ss:$12 sps:$4 sm:$0xff]  }
 0x31a   : > { %2044 = vmatprep.subr.bf16.mxu0 %v6505_v61  ;;  %4604 = vmatprep.subr.bf16.mxu1 %v8028_v24  ;;  %v6739_v61 = vld [vmem:[#allocation8 + $0x98] ss:$12 sps:$4 sm:$0xff]  }
 0x31d   : > { %2045 = vmatpush1.bf16.msra.mxu0 %v6509_v32  ;;  %4605 = vmatpush3.bf16.msra.mxu1 %v6719_v49  ;;  %v6742_v32 = vld [vmem:[#allocation8 + $0xac] ss:$12 sps:$4 sm:$0xff]  }
 0x31e   : > { %2046 = vmatprep.subr.bf16.mxu0 %v6513_v30  ;;  %4606 = vmatprep.subr.bf16.mxu1 %v8028_v24  ;;  %v6746_v30 = vld [vmem:[#allocation8 + $0xa8] ss:$12 sps:$4 sm:$0xff]  }
 0x321   : > { %2047 = vmatpush1.bf16.msra.mxu0 %v6517_v20  ;;  %4607 = vmatpush3.bf16.msra.mxu1 %v6725_v56  ;;  %v6749_v20 = vld [vmem:[#allocation8 + $0xb0] ss:$12 sps:$4 sm:$0xff]  }
 0x322   : > { %2048 = vmatprep.subr.bf16.mxu0 %v6521_v33  ;;  %4608 = vmatprep.subr.bf16.mxu1 %v8028_v24  ;;  %v8045_v33 = vld [vmem:[#allocation35_spill] sm:$0xff] }
 0x325   : > { %2049 = vmatpush1.bf16.msra.mxu0 %v6525_v31  ;;  %4609 = vmatpush3.bf16.msra.mxu1 %v6731_v1 }
 0x326   : > { %2050 = vmatprep.subr.bf16.mxu0 %v8044_v8  ;;  %4610 = vmatprep.subr.bf16.mxu1 %v8028_v24 }
 0x329   : > { %2051 = vmatpush1.bf16.msra.mxu0 %v6736_v57  ;;  %4611 = vmatpush3.bf16.msra.mxu1 %v6739_v61 }
 0x32a   : > { %2052 = vmatprep.subr.bf16.mxu0 %v6742_v32  ;;  %4612 = vmatprep.subr.bf16.mxu1 %v8028_v24 }
 0x32d   : > { %2053 = vmatpush1.bf16.msra.mxu0 %v6746_v30  ;;  %4613 = vmatpush3.bf16.msra.mxu1 %v6749_v20 }
 0x32e   : > { %2473 = vmatprep.subr.bf16.mxu0 %v8045_v33  ;;  %4618 = vmatprep.subr.bf16.mxu1 %v8028_v24 }
 0x3e3   : > { %v1636_v31 = vpop.f32.mrb[24].mxu0  ;;  %v6754_v14 = vpop.f32.mrb[16].mxu1 }
 0x3e4   : > { %v1637_v55 = vadd.f32 %v1636_v31, %v8046_v13  ;;  %v1638_v0 = vpop.f32.mrb[25].mxu0  ;;  %v4596_v16 = vpop.f32.mrb[17].mxu1 }
 0x3e5   : > { %v1640_v11 = vpop.f32.mrb[26].mxu0  ;;  %v1680_v54 = vpop.f32.mrb[18].mxu1 }
 0x3e6   : > { %v1684_v48 = vrot.slane %v1637_v55, 6  ;;  %v1685_v38 = vrot.slane %v1637_v55, 7  ;;  %v1686_v10 = vrot.slane %v1637_v55, 1  ;;  %v1687_v46 = vrot.slane %v1637_v55, 2  ;;  %v1641_v50 = vpop.f32.mrb[27].mxu0  ;;  %v4597_v6 = vpop.f32.mrb[19].mxu1 }
 0x3e7   : > { %v1688_v9 = vrot.slane %v1637_v55, 3  ;;  %v1689_v43 = vrot.slane %v1637_v55, 4  ;;  %v1690_v7 = vrot.slane %v1637_v55, 5  ;;  %v1701_v39 = vadd.f32 %v1637_v55, %v8047_v37 }
 0x3e8   : > { %v1699_v44 = vadd.f32 %v1684_v48, %v8048_v52  ;;  %v1700_v53 = vadd.f32 %v1685_v38, %v8049_v23  ;;  %v1702_v40 = vadd.f32 %v1686_v10, %v8050_v36  ;;  %v1703_v42 = vadd.f32 %v1687_v46, %v6253_v22 }
 0x3e9   : > { %v1704_v62 = vadd.f32 %v1688_v9, %v6256_v25  ;;  %v1705_v5 = vadd.f32 %v1689_v43, %v6258_v27  ;;  %v1706_v3 = vadd.f32 %v1690_v7, %v6260_v28  ;;  %v1709_v8 = vsub.f32 0.0, %v1701_v39 }
 0x3ea   : > { %v1707_v33 = vsub.f32 0.0, %v1699_v44  ;;  %v1708_v31 = vsub.f32 0.0, %v1700_v53  ;;  %v1710_v16 = vsub.f32 0.0, %v1702_v40  ;;  %v1711_v11 = vsub.f32 0.0, %v1703_v42 }
 0x3eb   : > { %v1712_v55 = vsub.f32 0.0, %v1704_v62  ;;  %v1713_v54 = vsub.f32 0.0, %v1705_v5  ;;  %v1714_v48 = vsub.f32 0.0, %v1706_v3  ;;  %v1719_v50 = vmul.f32 1.442695, %v1709_v8 }
 0x3ec   : > { %v1715_v38 = vmul.f32 1.442695, %v1707_v33  ;;  %v1717_v6 = vmul.f32 1.442695, %v1708_v31  ;;  %v1721_v10 = vmul.f32 1.442695, %v1710_v16  ;;  %v1639_v46 = vadd.f32 %v1638_v0, %v8033_v21 }
 0x3ed   : > { %5021 = vpow2.f32 %v1719_v50  ;;  %v1723_v9 = vmul.f32 1.442695, %v1711_v11  ;;  %v1725_v43 = vmul.f32 1.442695, %v1712_v55  ;;  %v1727_v7 = vmul.f32 1.442695, %v1713_v54 }
 0x3ee   : > { %5023 = vpow2.f32 %v1715_v38  ;;  %v1729_v39 = vmul.f32 1.442695, %v1714_v48  ;;  %v1756_v44 = vrot.slane %v1639_v46, 6  ;;  %v1757_v53 = vrot.slane %v1639_v46, 7 }
 0x3ef   : > { %5025 = vpow2.f32 %v1717_v6  ;;  %v1758_v42 = vrot.slane %v1639_v46, 1  ;;  %v1759_v62 = vrot.slane %v1639_v46, 2  ;;  %v1760_v0 = vrot.slane %v1639_v46, 3  ;;  %v8051_v6 = vld [vmem:[#allocation22_spill] sm:$0xff] }
 0x3f0   : > { %5027 = vpow2.f32 %v1721_v10  ;;  %v1771_v40 = vadd.f32 %v1756_v44, %v6245_v17  ;;  %v1772_v3 = vadd.f32 %v1757_v53, %v6275_v45  ;;  %v1773_v33 = vadd.f32 %v1639_v46, %v6283_v60 }
 0x3f1   : > { %5029 = vpow2.f32 %v1723_v9  ;;  %v1761_v55 = vrot.slane %v1639_v46, 4  ;;  %v1774_v54 = vadd.f32 %v1758_v42, %v6292_v34  ;;  %v1762_v38 = vrot.slane %v1639_v46, 5 }
 0x3f2   : > { %5031 = vpow2.f32 %v1725_v43  ;;  %v1779_v5 = vsub.f32 0.0, %v1771_v40  ;;  %v1775_v10 = vadd.f32 %v1759_v62, %v8051_v6  ;;  %v1781_v40 = vsub.f32 0.0, %v1773_v33 }
 0x3f3   : > { %5033 = vpow2.f32 %v1727_v7  ;;  %v1776_v7 = vadd.f32 %v1760_v0, %v6310_v4  ;;  %v1777_v42 = vadd.f32 %v1761_v55, %v6315_v12 }
 0x3f4   : > { %5035 = vpow2.f32 %v1729_v39  ;;  %v1787_v31 = vmul.f32 1.442695, %v1779_v5  ;;  %v1780_v39 = vsub.f32 0.0, %v1772_v3  ;;  %v1783_v62 = vsub.f32 0.0, %v1775_v10 }
 0x3f5   : > { %v1784_v0 = vsub.f32 0.0, %v1776_v7  ;;  %v1791_v33 = vmul.f32 1.442695, %v1781_v40  ;;  %v1785_v55 = vsub.f32 0.0, %v1777_v42 }
 0x3f6   : > { %5037 = vpow2.f32 %v1787_v31  ;;  %v1778_v31 = vadd.f32 %v1762_v38, %v8034_v18  ;;  %v1789_v3 = vmul.f32 1.442695, %v1780_v39 }
 0x3f7   : > { %v5022_v8 = vpop.eup %5021  ;;  %v1797_v10 = vmul.f32 1.442695, %v1784_v0  ;;  %v1799_v7 = vmul.f32 1.442695, %v1785_v55 }
 0x3f8   : > { %v5024_v16 = vpop.eup %5023  ;;  %v1733_v11 = vadd.f32 1.0, %v5022_v8 }
 0x3f9   : > { %v5026_v48 = vpop.eup %5025  ;;  %v1731_v50 = vadd.f32 1.0, %v5024_v16  ;;  %v1782_v16 = vsub.f32 0.0, %v1774_v54 }
 0x3fa   : > { %v5028_v9 = vpop.eup %5027  ;;  %v1732_v43 = vadd.f32 1.0, %v5026_v48  ;;  %5039 = vrcp.f32 %v1733_v11 }
 0x3fb   : > { %v5030_v44 = vpop.eup %5029  ;;  %v1734_v53 = vadd.f32 1.0, %v5028_v9  ;;  %5041 = vrcp.f32 %v1731_v50  ;;  %v8052_v50 = vld [vmem:[#allocation23_spill] sm:$0xff]  ;;  %v1793_v54 = vmul.f32 1.442695, %v1782_v16 }
 0x3fc   : > { %v5032_v5 = vpop.eup %5031  ;;  %v1735_v8 = vadd.f32 1.0, %v5030_v44  ;;  %5043 = vrcp.f32 %v1732_v43  ;;  %v1678_v43 = vadd.f32 %v6754_v14, %v8052_v50  ;;  %v1795_v44 = vmul.f32 1.442695, %v1783_v62 }
 0x3fd   : > { %v5034_v46 = vpop.eup %5033  ;;  %v1736_v34 = vadd.f32 1.0, %v5032_v5  ;;  %5045 = vrcp.f32 %v1734_v53  ;;  %v1786_v53 = vsub.f32 0.0, %v1778_v31 }
 0x3fe   : > { %v5036_v11 = vpop.eup %5035  ;;  %v1737_v48 = vadd.f32 1.0, %v5034_v46  ;;  %5047 = vrcp.f32 %v1735_v8  ;;  %v1828_v8 = vrot.slane %v1678_v43, 6  ;;  %v1829_v40 = vrot.slane %v1678_v43, 7 }
 0x3ff   : > { %v1738_v9 = vadd.f32 1.0, %v5036_v11  ;;  %5049 = vrcp.f32 %v1736_v34  ;;  %v1801_v11 = vmul.f32 1.442695, %v1786_v53  ;;  %v1830_v42 = vrot.slane %v1678_v43, 1  ;;  %v8054_v53 = vld [vmem:[#allocation29_spill] sm:$0xff] }
 0x400   : > { %5051 = vrcp.f32 %v1737_v48  ;;  %v5038_v38 = vpop.eup %5037  ;;  %v1831_v16 = vrot.slane %v1678_v43, 2  ;;  %v1832_v31 = vrot.slane %v1678_v43, 3 }
 0x401   : > { %5053 = vrcp.f32 %v1738_v9  ;;  %v1803_v39 = vadd.f32 1.0, %v5038_v38 }
 0x402   : > { %5055 = vpow2.f32 %v1789_v3 }
 0x403   : > { %5057 = vpow2.f32 %v1791_v33  ;;  %v1833_v33 = vrot.slane %v1678_v43, 4 }
 0x404   : > { %v5040_v5 = vpop.eup %5039  ;;  %5059 = vpow2.f32 %v1793_v54  ;;  %v8053_v54 = vld [vmem:[#allocation27_spill] sm:$0xff] }
 0x405   : > { %v5042_v34 = vpop.eup %5041  ;;  %v1845_v46 = vmul.f32 %v5040_v5, %v1678_v43  ;;  %5061 = vpow2.f32 %v1795_v44 }
 0x406   : > { %v5044_v14 = vpop.eup %5043  ;;  %v1843_v48 = vmul.f32 %v5042_v34, %v1828_v8  ;;  %5063 = vpow2.f32 %v1797_v10  ;;  %v1834_v10 = vrot.slane %v1678_v43, 5 }
 0x407   : > { %v5046_v62 = vpop.eup %5045  ;;  %v1844_v0 = vmul.f32 %v5044_v14, %v1829_v40  ;;  %v1853_v3 = vadd.f32 %v1845_v46, %v6329_v2  ;;  %5065 = vrcp.f32 %v1803_v39 }
 0x408   : > { %v5048_v9 = vpop.eup %5047  ;;  %v1846_v55 = vmul.f32 %v5046_v62, %v1830_v42  ;;  %v1851_v38 = vadd.f32 %v1843_v48, %v8053_v54  ;;  %5067 = vpow2.f32 %v1799_v7 }
 0x409   : > { %v5050_v5 = vpop.eup %5049  ;;  %v1847_v44 = vmul.f32 %v5048_v9, %v1831_v16  ;;  %v1852_v50 = vadd.f32 %v1844_v0, %v8054_v53  ;;  %v1861_v18 = vmul.f32 -2.0, %v1853_v3  ;;  %5069 = vpow2.f32 %v1801_v11  ;;  %v8055_v11 = vld [vmem:[#allocation33_spill] sm:$0xff] }
 0x40a   : > { %v5052_v8 = vpop.eup %5051  ;;  %v1848_v34 = vmul.f32 %v5050_v5, %v1832_v31  ;;  %v1859_v12 = vmul.f32 -2.0, %v1851_v38  ;;  %v1854_v46 = vadd.f32 %v1846_v55, %v6337_v59  ;;  %v8056_v38 = vld [vmem:[#allocation30_spill] sm:$0xff]  ;;  %v8057_v55 = vld [vmem:[#allocation32_spill] sm:$0xff] }
 0x40b   : > { %v5054_v40 = vpop.eup %5053  ;;  %v1860_v39 = vmul.f32 -2.0, %v1852_v50  ;;  %v1871_v14 = vmul.f32 1.442695, %v1861_v18  ;;  %v1849_v2 = vmul.f32 %v5052_v8, %v1833_v33  ;;  %v1855_v7 = vadd.f32 %v1847_v44, %v8036_v19 }
 0x40c   : > { %v5056_v42 = vpop.eup %5055  ;;  %v1867_v62 = vmul.f32 1.442695, %v1859_v12  ;;  %v1850_v48 = vmul.f32 %v5054_v40, %v1834_v10  ;;  %v1856_v3 = vadd.f32 %v1848_v34, %v8055_v11  ;;  %v1862_v33 = vmul.f32 -2.0, %v1854_v46 }
 0x40d   : > { %v5058_v16 = vpop.eup %5057  ;;  %v1869_v9 = vmul.f32 1.442695, %v1860_v39  ;;  %5071 = vpow2.f32 %v1871_v14  ;;  %v1804_v0 = vadd.f32 1.0, %v5056_v42  ;;  %v1857_v5 = vadd.f32 %v1849_v2, %v8056_v38 }
 0x40e   : > { %v5060_v43 = vpop.eup %5059  ;;  %5073 = vpow2.f32 %v1867_v62  ;;  %v1805_v31 = vadd.f32 1.0, %v5058_v16  ;;  %v1858_v50 = vadd.f32 %v1850_v48, %v8057_v55  ;;  %v1863_v10 = vmul.f32 -2.0, %v1855_v7 }
 0x40f   : > { %v5062_v18 = vpop.eup %5061  ;;  %5075 = vpow2.f32 %v1869_v9  ;;  %v1806_v12 = vadd.f32 1.0, %v5060_v43  ;;  %v1939_v39 = vrot.slane %v6613_v29, 7  ;;  %v1864_v14 = vmul.f32 -2.0, %v1856_v3 }
 0x410   : > { %v5064_v8 = vpop.eup %5063  ;;  %5077 = vrcp.f32 %v1804_v0  ;;  %v1807_v44 = vadd.f32 1.0, %v5062_v18  ;;  %v1865_v2 = vmul.f32 -2.0, %v1857_v5  ;;  %v1866_v62 = vmul.f32 -2.0, %v1858_v50  ;;  %v8058_v50 = vld [vmem:[#allocation14_spill] sm:$0xff] }
 0x411   : > { %v6784_v40 = vpop.eup %5065  ;;  %5079 = vrcp.f32 %v1805_v31  ;;  %v1808_v34 = vadd.f32 1.0, %v5064_v8  ;;  %v1873_v46 = vmul.f32 1.442695, %v1862_v33  ;;  %v1875_v7 = vmul.f32 1.442695, %v1863_v10 }
 0x412   : > { %v5068_v42 = vpop.eup %5067  ;;  %5081 = vrcp.f32 %v1806_v12  ;;  %v6788_v9 = vmul.f32 %v6784_v40, %v1939_v39  ;;  %v1877_v43 = vmul.f32 1.442695, %v1864_v14  ;;  %v1879_v29 = vmul.f32 1.442695, %v1865_v2 }
 0x413   : > { %v5070_v48 = vpop.eup %5069  ;;  %v1809_v16 = vadd.f32 1.0, %v5068_v42  ;;  %5083 = vrcp.f32 %v1807_v44  ;;  %v1881_v3 = vmul.f32 1.442695, %v1866_v62  ;;  %v1940_v12 = vrot.slane %v8058_v50, 7  ;;  %v8059_v44 = vld [vmem:[#allocation36_spill] sm:$0xff] }
 0x414   : > { %v1810_v0 = vadd.f32 1.0, %v5070_v48  ;;  %5085 = vrcp.f32 %v1808_v34  ;;  %v1941_v39 = vrot.slane %v8059_v44, 7  ;;  %v1942_v14 = vrot.slane %v6648_v51, 7 }
 0x415   : > { %5087 = vrcp.f32 %v1809_v16  ;;  %v1943_v62 = vrot.slane %v6651_v35, 7  ;;  %v1945_v51 = vrot.slane %v6660_v63, 7  ;;  %v1946_v35 = vrot.slane %v6667_v41, 7 }
 0x416   : > { %5089 = vrcp.f32 %v1810_v0  ;;  %v1944_v0 = vrot.slane %v6654_v15, 7 }
 0x417   : > { %v5072_v31 = vpop.eup %5071  ;;  %5091 = vpow2.f32 %v1873_v46 }
 0x418   : > { %v5074_v18 = vpop.eup %5073  ;;  %5093 = vpow2.f32 %v1875_v7  ;;  %v1885_v10 = vadd.f32 1.0, %v5072_v31 }
 0x419   : > { %v5076_v5 = vpop.eup %5075  ;;  %5095 = vpow2.f32 %v1877_v43  ;;  %v1883_v33 = vadd.f32 1.0, %v5074_v18 }
 0x41a   : > { %v5078_v8 = vpop.eup %5077  ;;  %5097 = vpow2.f32 %v1879_v29  ;;  %v1884_v34 = vadd.f32 1.0, %v5076_v5 }
 0x41b   : > { %v5080_v42 = vpop.eup %5079  ;;  %5099 = vpow2.f32 %v1881_v3  ;;  %v1956_v2 = vmul.f32 %v5078_v8, %v1940_v12 }
 0x41c   : > { %v6793_v48 = vpop.eup %5081  ;;  %5101 = vrcp.f32 %v1883_v33  ;;  %v1957_v16 = vmul.f32 %v5080_v42, %v1941_v39 }
 0x41d   : > { %v6796_v46 = vpop.eup %5083  ;;  %5103 = vrcp.f32 %v1884_v34  ;;  %v6800_v7 = vmul.f32 %v6793_v48, %v1942_v14 }
 0x41e   : > { %v6802_v43 = vpop.eup %5085  ;;  %5105 = vrcp.f32 %v1885_v10  ;;  %v6806_v29 = vmul.f32 %v6796_v46, %v1943_v62 }
 0x41f   : > { %v6808_v31 = vpop.eup %5087  ;;  %v6812_v3 = vmul.f32 %v6802_v43, %v1944_v0 }
 0x420   : > { %v6814_v15 = vpop.eup %5089  ;;  %v6817_v18 = vmul.f32 %v6808_v31, %v1945_v51 }
 0x421   : > { %v5092_v5 = vpop.eup %5091  ;;  %v6820_v50 = vmul.f32 %v6814_v15, %v1946_v35 }
 0x422   : > { %v5094_v63 = vpop.eup %5093  ;;  %v1886_v12 = vadd.f32 1.0, %v5092_v5 }
 0x423   : > { %v5096_v33 = vpop.eup %5095  ;;  %v1887_v44 = vadd.f32 1.0, %v5094_v63  ;;  %v1915_v63 = vsub.f32 1.0, %v6784_v40 }
 0x424   : > { %v5098_v39 = vpop.eup %5097  ;;  %v1888_v34 = vadd.f32 1.0, %v5096_v33  ;;  %5107 = vrcp.f32 %v1886_v12  ;;  %v1916_v33 = vsub.f32 1.0, %v5078_v8  ;;  %v1919_v8 = vsub.f32 1.0, %v6796_v46 }
 0x425   : > { %v5100_v41 = vpop.eup %5099  ;;  %v1889_v10 = vadd.f32 1.0, %v5098_v39  ;;  %5109 = vrcp.f32 %v1887_v44  ;;  %v1917_v39 = vsub.f32 1.0, %v5080_v42  ;;  %v1985_v42 = vld [vmem:[%s6052_s7 + $0x4] sm:$0x2] }
 0x426   : > { %v5102_v14 = vpop.eup %5101  ;;  %v1890_v62 = vadd.f32 1.0, %v5100_v41  ;;  %5111 = vrcp.f32 %v1888_v34 }
 0x427   : > { %v5104_v0 = vpop.eup %5103  ;;  %v1892_v51 = vmul.f32 2.0, %v5102_v14  ;;  %5113 = vrcp.f32 %v1889_v10  ;;  %v1918_v14 = vsub.f32 1.0, %v6793_v48  ;;  %v1921_v48 = vsub.f32 1.0, %v6808_v31 }
 0x428   : > { %v5106_v55 = vpop.eup %5105  ;;  %v1894_v38 = vmul.f32 2.0, %v5104_v0  ;;  %5115 = vrcp.f32 %v1890_v62  ;;  %v1982_v62 = vld [vmem:[%s6052_s7] sm:$0x2] }
 0x429   : > { %v1896_v35 = vmul.f32 2.0, %v5106_v55  ;;  %v4390_v5 = vadd.f32 -1.0, %v1892_v51 }
 0x42a   : > { %v4391_v11 = vadd.f32 -1.0, %v1894_v38 }
 0x42b   : > { %v4392_v12 = vadd.f32 -1.0, %v1896_v35  ;;  %v1923_v44 = vmul.f32 %v4390_v5, %v1915_v63  ;;  %v1920_v35 = vsub.f32 1.0, %v6802_v43 }
 0x42c   : > { %v1924_v19 = vmul.f32 %v4391_v11, %v1916_v33 }
 0x42d   : > { %v1925_v41 = vmul.f32 %v4392_v12, %v1917_v39  ;;  %v6824_v34 = vadd.f32 %v6788_v9, %v1923_v44 }
 0x42e   : > { %v5108_v10 = vpop.eup %5107  ;;  %v6827_v55 = vadd.f32 %v1956_v2, %v1924_v19  ;;  %v6911_v2 = vld [vmem:[#allocation8] ss:$12 sps:$4 sm:$0xff]  }
 0x42f   : > { %v5110_v40 = vpop.eup %5109  ;;  %v1898_v38 = vmul.f32 2.0, %v5108_v10  ;;  %v6831_v0 = vadd.f32 %v1957_v16, %v1925_v41  ;;  %v1971_v11 = vpack.c.bf16 %v6824_v34, %v6824_v34  ;;  %v1988_v16 = vld [vmem:[%s6052_s7 + $0x8] sm:$0x2] }
 0x430   : > { %8060 = vst [vmem:[#allocation34_spill] sm:$0xff] %v6827_v55  ;;  %v5112_v9 = vpop.eup %5111  ;;  %v1900_v51 = vmul.f32 2.0, %v5110_v40  ;;  %v1972_v19 = vpack.c.bf16 %v6827_v55, %v6827_v55 }
 0x431   : > { %8061 = vst [vmem:[#allocation35_spill] sm:$0xff] %v6831_v0  ;;  %v5114_v46 = vpop.eup %5113  ;;  %v1902_v5 = vmul.f32 2.0, %v5112_v9  ;;  %v4393_v63 = vadd.f32 -1.0, %v1898_v38  ;;  %v1973_v33 = vpack.c.bf16 %v6831_v0, %v6831_v0  ;;  %v1983_v43 = vsel %vm6842_vm15, %v1971_v11, %v1982_v62 }
 0x432   : > { %v5116_v31 = vpop.eup %5115  ;;  %v1904_v12 = vmul.f32 2.0, %v5114_v46  ;;  %v4394_v39 = vadd.f32 -1.0, %v1900_v51  ;;  %1984 = vst [vmem:[%s6052_s7] sm:$0x2] %v1983_v43  ;;  %v1986_v44 = vsel %vm6842_vm15, %v1972_v19, %v1985_v42  ;;  %v2014_v41 = vunpack.c.l.b16 %v1971_v11 }
 0x433   : > { %v1906_v10 = vmul.f32 2.0, %v5116_v31  ;;  %v4395_v40 = vadd.f32 -1.0, %v1902_v5  ;;  %v1926_v9 = vmul.f32 %v4393_v63, %v1918_v14  ;;  %1987 = vst [vmem:[%s6052_s7 + $0x4] sm:$0x2] %v1986_v44  ;;  %v1989_v38 = vsel %vm6842_vm15, %v1973_v33, %v1988_v16  ;;  %v1991_v16 = vld [vmem:[%s6052_s7 + $0xc] sm:$0x2] }
 0x434   : > { %v4396_v0 = vadd.f32 -1.0, %v1904_v12  ;;  %v1922_v62 = vsub.f32 1.0, %v6814_v15  ;;  %v1927_v55 = vmul.f32 %v4394_v39, %v1919_v8  ;;  %1990 = vst [vmem:[%s6052_s7 + $0x8] sm:$0x2] %v1989_v38  ;;  %v2015_v51 = vunpack.c.l.b16 %v1972_v19 }
 0x435   : > { %v4397_v46 = vadd.f32 -1.0, %v1906_v10  ;;  %v1928_v43 = vmul.f32 %v4395_v40, %v1920_v35  ;;  %v6860_v11 = vadd.f32 %v6800_v7, %v1926_v9  ;;  %v2022_v42 = vrot.slane %v2014_v41, 2  ;;  %v1994_v35 = vld [vmem:[%s6052_s7 + $0x10] sm:$0x2]  ;;  %v2003_v41 = vld [vmem:[%s6052_s7 + $0x1c] sm:$0x2] }
 0x436   : > { %v1929_v5 = vmul.f32 %v4396_v0, %v1921_v48  ;;  %v6863_v14 = vadd.f32 %v6806_v29, %v1927_v55  ;;  %v2023_v63 = vrot.slane %v2015_v51, 1  ;;  %v1997_v29 = vld [vmem:[%s6052_s7 + $0x14] sm:$0x2]  ;;  %v2016_v55 = vunpack.c.l.b16 %v1973_v33 }
 0x437   : > { %v1930_v31 = vmul.f32 %v4397_v46, %v1922_v62  ;;  %v6867_v15 = vadd.f32 %v6812_v3, %v1928_v43  ;;  %v1974_v8 = vpack.c.bf16 %v6860_v11, %v6860_v11 }
 0x438   : > { %v6873_v7 = vadd.f32 %v6817_v18, %v1929_v5  ;;  %v1975_v0 = vpack.c.bf16 %v6863_v14, %v6863_v14  ;;  %v2024_v48 = vsel %vm1145_vm4, %v2023_v63, %v2022_v42  ;;  %v2000_v18 = vld [vmem:[%s6052_s7 + $0x18] sm:$0x2] }
 0x439   : > { %v6880_v19 = vadd.f32 %v6820_v50, %v1930_v31  ;;  %v1976_v3 = vpack.c.bf16 %v6867_v15, %v6867_v15  ;;  %v1992_v12 = vsel %vm6842_vm15, %v1974_v8, %v1991_v16  ;;  %v2017_v39 = vunpack.c.l.b16 %v1974_v8 }
 0x43a   : > { %v1977_v44 = vpack.c.bf16 %v6873_v7, %v6873_v7  ;;  %1993 = vst [vmem:[%s6052_s7 + $0xc] sm:$0x2] %v1992_v12  ;;  %v1995_v33 = vsel %vm6842_vm15, %v1975_v0, %v1994_v35  ;;  %v2018_v50 = vunpack.c.l.b16 %v1975_v0  ;;  %v2025_v10 = vsel %vm1148_vm6, %v2016_v55, %v2024_v48  ;;  %v6917_v12 = vld [vmem:[#allocation8 + $0x1c] ss:$12 sps:$4 sm:$0xff]  }
 0x43b   : > { %v1978_v40 = vpack.c.bf16 %v6880_v19, %v6880_v19  ;;  %1996 = vst [vmem:[%s6052_s7 + $0x10] sm:$0x2] %v1995_v33  ;;  %v1998_v9 = vsel %vm6842_vm15, %v1976_v3, %v1997_v29  ;;  %v2019_v38 = vunpack.c.l.b16 %v1976_v3  ;;  %v2026_v62 = vrot.slane %v2017_v39, 7  ;;  %v6914_v3 = vld [vmem:[#allocation8 + $0x8] ss:$12 sps:$4 sm:$0xff]  }
 0x43c   : > { %1999 = vst [vmem:[%s6052_s7 + $0x14] sm:$0x2] %v1998_v9  ;;  %v2001_v51 = vsel %vm6842_vm15, %v1977_v44, %v2000_v18  ;;  %v2020_v46 = vunpack.c.l.b16 %v1977_v44  ;;  %v2028_v43 = vrot.slane %v2018_v50, 6  ;;  %v6924_v18 = vld [vmem:[#allocation8 + $0x18] ss:$12 sps:$4 sm:$0xff]  }
 0x43d   : > { %2002 = vst [vmem:[%s6052_s7 + $0x18] sm:$0x2] %v2001_v51  ;;  %v2004_v42 = vsel %vm6842_vm15, %v1978_v40, %v2003_v41  ;;  %v2021_v5 = vunpack.c.l.b16 %v1978_v40  ;;  %v2027_v16 = vsel %vm1151_vm7, %v2026_v62, %v2025_v10  ;;  %v2030_v63 = vrot.slane %v2019_v38, 5  ;;  %v6928_v39 = vld [vmem:[#allocation8 + $0x34] ss:$12 sps:$4 sm:$0xff]  }
 0x43e   : > { %2005 = vst [vmem:[%s6052_s7 + $0x1c] sm:$0x2] %v2004_v42  ;;  %v2029_v31 = vsel %vm1154_vm8, %v2028_v43, %v2027_v16  ;;  %v2032_v8 = vrot.slane %v2020_v46, 4  ;;  %v6932_v44 = vld [vmem:[#allocation8 + $0x30] ss:$12 sps:$4 sm:$0xff]  }
 0x43f   : > { %v2031_v35 = vsel %vm1157_vm9, %v2030_v63, %v2029_v31  ;;  %v2034_v0 = vrot.slane %v2021_v5, 3  ;;  %v6936_v33 = vld [vmem:[#allocation8 + $0x4c] ss:$12 sps:$4 sm:$0xff]   ;;  %v6940_v41 = vld [vmem:[#allocation8 + $0x48] ss:$12 sps:$4 sm:$0xff]  }
 0x440   : > { %v2033_v29 = vsel %vm1160_vm10, %v2032_v8, %v2031_v35  ;;  %v6948_v50 = vld [vmem:[#allocation8 + $0x60] ss:$12 sps:$4 sm:$0xff]   ;;  %v6956_v10 = vld [vmem:[#allocation8 + $0x78] ss:$12 sps:$4 sm:$0xff]  }
 0x441   : > { %v2035_v55 = vsel %vm1163_vm11, %v2034_v0, %v2033_v29 }
 0x442   : > { %v2036_v48 = vpack.c.b16 %v2035_v55, %v2035_v55 }
 0x444   : > { %2071 = vmatmul.mubr.bf16.vlgmr.msra.gmra.mrb[28].mxu0 %v2036_v48  ;;  %4615 = vmatmul.mubr.bf16.vlgmr.msra.gmra.mrb[20].mxu1 %v2036_v48 }
 0x445   : > { %2474 = vmatpush1.bf16.msra.mxu0 %v6911_v2  ;;  %4619 = vmatpush3.bf16.msra.mxu1 %v6914_v3 }
 0x446   : > { %2475 = vmatprep.subr.bf16.mxu0 %v6917_v12  ;;  %4620 = vmatprep.subr.bf16.mxu1 %v8028_v24 }
 0x447   : > { %2505 = vmatprep.mubr.bf16.mxu0 %v8029_v47  ;;  %4634 = vmatprep.mubr.msk.bf16.mxu1 %vm5838_vm1, %v8028_v24 }
 0x449   : > { %2476 = vmatpush1.bf16.msra.mxu0 %v6924_v18  ;;  %4621 = vmatpush3.bf16.msra.mxu1 %v6707_v58  ;;  %v6944_v58 = vld [vmem:[#allocation8 + $0x64] ss:$12 sps:$4 sm:$0xff]  }
 0x44a   : > { %2477 = vmatprep.subr.bf16.mxu0 %v6928_v39  ;;  %4622 = vmatprep.subr.bf16.mxu1 %v8028_v24 }
 0x44d   : > { %2478 = vmatpush1.bf16.msra.mxu0 %v6932_v44  ;;  %4623 = vmatpush3.bf16.msra.mxu1 %v6713_v26  ;;  %v6952_v26 = vld [vmem:[#allocation8 + $0x7c] ss:$12 sps:$4 sm:$0xff]  }
 0x44e   : > { %2479 = vmatprep.subr.bf16.mxu0 %v6936_v33  ;;  %4624 = vmatprep.subr.bf16.mxu1 %v8028_v24 }
 0x451   : > { %2480 = vmatpush1.bf16.msra.mxu0 %v6940_v41  ;;  %4625 = vmatpush3.bf16.msra.mxu1 %v6719_v49  ;;  %v6960_v49 = vld [vmem:[#allocation8 + $0x94] ss:$12 sps:$4 sm:$0xff]  }
 0x452   : > { %2481 = vmatprep.subr.bf16.mxu0 %v6944_v58  ;;  %4626 = vmatprep.subr.bf16.mxu1 %v8028_v24 }
 0x455   : > { %2482 = vmatpush1.bf16.msra.mxu0 %v6948_v50  ;;  %4627 = vmatpush3.bf16.msra.mxu1 %v6725_v56  ;;  %v6970_v56 = vld [vmem:[#allocation8 + $0x4] ss:$12 sps:$4 sm:$0xff]  }
 0x456   : > { %2483 = vmatprep.subr.bf16.mxu0 %v6952_v26  ;;  %4628 = vmatprep.subr.bf16.mxu1 %v8028_v24 }
 0x459   : > { %2484 = vmatpush1.bf16.msra.mxu0 %v6956_v10  ;;  %4629 = vmatpush3.bf16.msra.mxu1 %v6731_v1 }
 0x45a   : > { %2485 = vmatprep.subr.bf16.mxu0 %v6960_v49  ;;  %4630 = vmatprep.subr.bf16.mxu1 %v8028_v24 }
 0x45d   : > { %2486 = vmatpush1.bf16.msra.mxu0 %v6736_v57  ;;  %4631 = vmatpush3.bf16.msra.mxu1 %v6739_v61 }
 0x45e   : > { %2487 = vmatprep.subr.bf16.mxu0 %v6742_v32  ;;  %4632 = vmatprep.subr.bf16.mxu1 %v8028_v24 }
 0x461   : > { %2488 = vmatpush1.bf16.msra.mxu0 %v6746_v30  ;;  %4633 = vmatpush3.bf16.msra.mxu1 %v6749_v20 }
 0x462   : > { %2909 = vmatprep.subr.bf16.mxu0 %v6970_v56  ;;  %4638 = vmatprep.subr.bf16.mxu1 %v8028_v24 }
 0x517   : > { %v2072_v1 = vpop.f32.mrb[28].mxu0  ;;  %v6974_v40 = vpop.f32.mrb[20].mxu1 }
 0x518   : > { %v2073_v57 = vadd.f32 %v2072_v1, %v8046_v13  ;;  %v2074_v61 = vpop.f32.mrb[29].mxu0  ;;  %v4616_v9 = vpop.f32.mrb[21].mxu1 }
 0x519   : > { %v2076_v32 = vpop.f32.mrb[30].mxu0  ;;  %v2116_v38 = vpop.f32.mrb[22].mxu1 }
 0x51a   : > { %v2120_v62 = vrot.slane %v2073_v57, 5  ;;  %v2121_v51 = vrot.slane %v2073_v57, 6  ;;  %v2122_v30 = vrot.slane %v2073_v57, 7  ;;  %v2123_v46 = vrot.slane %v2073_v57, 1  ;;  %v2077_v20 = vpop.f32.mrb[31].mxu0  ;;  %v4617_v43 = vpop.f32.mrb[23].mxu1 }
 0x51b   : > { %v2124_v42 = vrot.slane %v2073_v57, 2  ;;  %v2125_v5 = vrot.slane %v2073_v57, 3  ;;  %v2126_v16 = vrot.slane %v2073_v57, 4  ;;  %v2138_v63 = vadd.f32 %v2073_v57, %v8050_v36 }
 0x51c   : > { %v2135_v31 = vadd.f32 %v2120_v62, %v8048_v52  ;;  %v2136_v8 = vadd.f32 %v2121_v51, %v8049_v23  ;;  %v2137_v35 = vadd.f32 %v2122_v30, %v8047_v37  ;;  %v2139_v0 = vadd.f32 %v2123_v46, %v6253_v22 }
 0x51d   : > { %v2140_v29 = vadd.f32 %v2124_v42, %v6256_v25  ;;  %v2141_v55 = vadd.f32 %v2125_v5, %v6258_v27  ;;  %v2142_v48 = vadd.f32 %v2126_v16, %v6260_v28  ;;  %v2146_v1 = vsub.f32 0.0, %v2138_v63 }
 0x51e   : > { %v2143_v9 = vsub.f32 0.0, %v2135_v31  ;;  %v2144_v32 = vsub.f32 0.0, %v2136_v8  ;;  %v2145_v38 = vsub.f32 0.0, %v2137_v35  ;;  %v2147_v20 = vsub.f32 0.0, %v2139_v0 }
 0x51f   : > { %v2148_v57 = vsub.f32 0.0, %v2140_v29  ;;  %v2149_v43 = vsub.f32 0.0, %v2141_v55  ;;  %v2150_v62 = vsub.f32 0.0, %v2142_v48  ;;  %v2157_v36 = vmul.f32 1.442695, %v2146_v1 }
 0x520   : > { %v2151_v51 = vmul.f32 1.442695, %v2143_v9  ;;  %v2153_v23 = vmul.f32 1.442695, %v2144_v32  ;;  %v2155_v30 = vmul.f32 1.442695, %v2145_v38  ;;  %v2075_v46 = vadd.f32 %v2074_v61, %v8033_v21 }
 0x521   : > { %5117 = vpow2.f32 %v2157_v36  ;;  %v2159_v42 = vmul.f32 1.442695, %v2147_v20  ;;  %v2161_v5 = vmul.f32 1.442695, %v2148_v57  ;;  %v2163_v16 = vmul.f32 1.442695, %v2149_v43 }
 0x522   : > { %5119 = vpow2.f32 %v2151_v51  ;;  %v2165_v63 = vmul.f32 1.442695, %v2150_v62  ;;  %v2192_v31 = vrot.slane %v2075_v46, 5  ;;  %v2193_v8 = vrot.slane %v2075_v46, 6  ;;  %v8064_v20 = vld [vmem:[#allocation21_spill] sm:$0xff] }
 0x523   : > { %5121 = vpow2.f32 %v2153_v23  ;;  %v2194_v35 = vrot.slane %v2075_v46, 7  ;;  %v2195_v29 = vrot.slane %v2075_v46, 1  ;;  %v2196_v61 = vrot.slane %v2075_v46, 2 }
 0x524   : > { %5123 = vpow2.f32 %v2155_v30  ;;  %v2207_v0 = vadd.f32 %v2192_v31, %v6245_v17  ;;  %v2208_v36 = vadd.f32 %v2193_v8, %v6275_v45  ;;  %v2197_v38 = vrot.slane %v2075_v46, 3 }
 0x525   : > { %5125 = vpow2.f32 %v2159_v42  ;;  %v2209_v23 = vadd.f32 %v2194_v35, %v6283_v60  ;;  %v2210_v57 = vadd.f32 %v2075_v46, %v8064_v20  ;;  %v2198_v51 = vrot.slane %v2075_v46, 4 }
 0x526   : > { %5127 = vpow2.f32 %v2161_v5  ;;  %v2215_v55 = vsub.f32 0.0, %v2207_v0  ;;  %v2211_v30 = vadd.f32 %v2195_v29, %v8051_v6 }
 0x527   : > { %5129 = vpow2.f32 %v2163_v16  ;;  %v2212_v16 = vadd.f32 %v2196_v61, %v6310_v4  ;;  %v2217_v35 = vsub.f32 0.0, %v2209_v23 }
 0x528   : > { %5131 = vpow2.f32 %v2165_v63  ;;  %v2223_v1 = vmul.f32 1.442695, %v2215_v55  ;;  %v2216_v63 = vsub.f32 0.0, %v2208_v36  ;;  %v2219_v29 = vsub.f32 0.0, %v2211_v30 }
 0x529   : > { %v2220_v61 = vsub.f32 0.0, %v2212_v16  ;;  %v2227_v23 = vmul.f32 1.442695, %v2217_v35 }
 0x52a   : > { %5133 = vpow2.f32 %v2223_v1  ;;  %v8066_v1 = vld [vmem:[#allocation25_spill] sm:$0xff]  ;;  %v2225_v36 = vmul.f32 1.442695, %v2216_v63 }
 0x52b   : > { %v5118_v48 = vpop.eup %5117  ;;  %v2233_v30 = vmul.f32 1.442695, %v2220_v61 }
 0x52c   : > { %v5120_v9 = vpop.eup %5119  ;;  %v2170_v32 = vadd.f32 1.0, %v5118_v48  ;;  %v8065_v48 = vld [vmem:[#allocation24_spill] sm:$0xff] }
 0x52d   : > { %v5122_v43 = vpop.eup %5121  ;;  %v2167_v62 = vadd.f32 1.0, %v5120_v9  ;;  %v2213_v20 = vadd.f32 %v2197_v38, %v8065_v48  ;;  %v2218_v9 = vsub.f32 0.0, %v2210_v57 }
 0x52e   : > { %v5124_v42 = vpop.eup %5123  ;;  %v2168_v5 = vadd.f32 1.0, %v5122_v43  ;;  %5135 = vrcp.f32 %v2170_v32  ;;  %v2214_v43 = vadd.f32 %v2198_v51, %v8066_v1 }
 0x52f   : > { %v5126_v31 = vpop.eup %5125  ;;  %v2169_v8 = vadd.f32 1.0, %v5124_v42  ;;  %5137 = vrcp.f32 %v2167_v62  ;;  %v8067_v62 = vld [vmem:[#allocation23_spill] sm:$0xff]  ;;  %v2221_v38 = vsub.f32 0.0, %v2213_v20  ;;  %v2229_v57 = vmul.f32 1.442695, %v2218_v9 }
 0x530   : > { %v5128_v0 = vpop.eup %5127  ;;  %v2171_v55 = vadd.f32 1.0, %v5126_v31  ;;  %5139 = vrcp.f32 %v2168_v5  ;;  %v2114_v5 = vadd.f32 %v6974_v40, %v8067_v62  ;;  %v2231_v31 = vmul.f32 1.442695, %v2219_v29 }
 0x531   : > { %v5130_v46 = vpop.eup %5129  ;;  %v2172_v60 = vadd.f32 1.0, %v5128_v0  ;;  %5141 = vrcp.f32 %v2169_v8  ;;  %v2222_v8 = vsub.f32 0.0, %v2214_v43  ;;  %v2235_v16 = vmul.f32 1.442695, %v2221_v38 }
 0x532   : > { %v5132_v32 = vpop.eup %5131  ;;  %v2173_v6 = vadd.f32 1.0, %v5130_v46  ;;  %5143 = vrcp.f32 %v2171_v55  ;;  %v2264_v55 = vrot.slane %v2114_v5, 5  ;;  %v2265_v35 = vrot.slane %v2114_v5, 6 }
 0x533   : > { %v2174_v42 = vadd.f32 1.0, %v5132_v32  ;;  %5145 = vrcp.f32 %v2172_v60  ;;  %v2237_v46 = vmul.f32 1.442695, %v2222_v8  ;;  %v2266_v20 = vrot.slane %v2114_v5, 7 }
 0x534   : > { %5147 = vrcp.f32 %v2173_v6  ;;  %v5134_v51 = vpop.eup %5133  ;;  %v2267_v43 = vrot.slane %v2114_v5, 1 }
 0x535   : > { %5149 = vrcp.f32 %v2174_v42  ;;  %v2239_v63 = vadd.f32 1.0, %v5134_v51 }
 0x536   : > { %5151 = vpow2.f32 %v2225_v36  ;;  %v2268_v36 = vrot.slane %v2114_v5, 2 }
 0x537   : > { %5153 = vpow2.f32 %v2227_v23 }
 0x538   : > { %v5136_v0 = vpop.eup %5135  ;;  %5155 = vpow2.f32 %v2229_v57  ;;  %v2269_v57 = vrot.slane %v2114_v5, 3 }
 0x539   : > { %v5138_v60 = vpop.eup %5137  ;;  %v2282_v6 = vmul.f32 %v5136_v0, %v2114_v5  ;;  %5157 = vpow2.f32 %v2231_v31  ;;  %v2270_v0 = vrot.slane %v2114_v5, 4 }
 0x53a   : > { %v5140_v40 = vpop.eup %5139  ;;  %v2279_v9 = vmul.f32 %v5138_v60, %v2264_v55  ;;  %5159 = vpow2.f32 %v2233_v30  ;;  %v8068_v30 = vld [vmem:[#allocation26_spill] sm:$0xff] }
 0x53b   : > { %v5142_v29 = vpop.eup %5141  ;;  %v2280_v32 = vmul.f32 %v5140_v40, %v2265_v35  ;;  %5161 = vrcp.f32 %v2239_v63 }
 0x53c   : > { %v5144_v61 = vpop.eup %5143  ;;  %v2281_v42 = vmul.f32 %v5142_v29, %v2266_v20  ;;  %v2287_v23 = vadd.f32 %v2279_v9, %v8053_v54  ;;  %5163 = vpow2.f32 %v2235_v16  ;;  %v2290_v20 = vadd.f32 %v2282_v6, %v6337_v59  ;;  %v8071_v6 = vld [vmem:[#allocation30_spill] sm:$0xff] }
 0x53d   : > { %v5146_v38 = vpop.eup %5145  ;;  %v2283_v51 = vmul.f32 %v5144_v61, %v2267_v43  ;;  %v2288_v31 = vadd.f32 %v2280_v32, %v8054_v53  ;;  %5165 = vpow2.f32 %v2237_v46  ;;  %v8069_v32 = vld [vmem:[#allocation31_spill] sm:$0xff] }
 0x53e   : > { %v5148_v8 = vpop.eup %5147  ;;  %v2284_v55 = vmul.f32 %v5146_v38, %v2268_v36  ;;  %v2289_v60 = vadd.f32 %v2281_v42, %v8068_v30  ;;  %v2295_v62 = vmul.f32 -2.0, %v2287_v23  ;;  %v8070_v42 = vld [vmem:[#allocation33_spill] sm:$0xff] }
 0x53f   : > { %v5150_v35 = vpop.eup %5149  ;;  %v2296_v63 = vmul.f32 -2.0, %v2288_v31  ;;  %v2285_v40 = vmul.f32 %v5148_v8, %v2269_v57  ;;  %v2291_v46 = vadd.f32 %v2283_v51, %v8069_v32  ;;  %v2375_v57 = vrot.slane %v6824_v34, 7 }
 0x540   : > { %v5152_v1 = vpop.eup %5151  ;;  %v2297_v9 = vmul.f32 -2.0, %v2289_v60  ;;  %v2303_v16 = vmul.f32 1.442695, %v2295_v62  ;;  %v2286_v29 = vmul.f32 %v5150_v35, %v2270_v0  ;;  %v2292_v23 = vadd.f32 %v2284_v55, %v8070_v42 }
 0x541   : > { %v5154_v54 = vpop.eup %5153  ;;  %v2305_v43 = vmul.f32 1.442695, %v2296_v63  ;;  %v2240_v61 = vadd.f32 1.0, %v5152_v1  ;;  %v2293_v8 = vadd.f32 %v2285_v40, %v8071_v6  ;;  %v2298_v0 = vmul.f32 -2.0, %v2290_v20  ;;  %v8072_v1 = vld [vmem:[#allocation32_spill] sm:$0xff] }
 0x542   : > { %v5156_v53 = vpop.eup %5155  ;;  %5167 = vpow2.f32 %v2303_v16  ;;  %v2307_v5 = vmul.f32 1.442695, %v2297_v9  ;;  %v2241_v36 = vadd.f32 1.0, %v5154_v54  ;;  %v2294_v35 = vadd.f32 %v2286_v29, %v8072_v1 }
 0x543   : > { %v5158_v38 = vpop.eup %5157  ;;  %5169 = vpow2.f32 %v2305_v43  ;;  %v2242_v31 = vadd.f32 1.0, %v5156_v53  ;;  %v2299_v54 = vmul.f32 -2.0, %v2291_v46  ;;  %v2300_v55 = vmul.f32 -2.0, %v2292_v23 }
 0x544   : > { %v5160_v62 = vpop.eup %5159  ;;  %5171 = vpow2.f32 %v2307_v5  ;;  %v2243_v60 = vadd.f32 1.0, %v5158_v38  ;;  %v2301_v16 = vmul.f32 -2.0, %v2293_v8  ;;  %v2309_v20 = vmul.f32 1.442695, %v2298_v0 }
 0x545   : > { %v7005_v51 = vpop.eup %5161  ;;  %5173 = vrcp.f32 %v2240_v61  ;;  %v2244_v63 = vadd.f32 1.0, %v5160_v62  ;;  %v2302_v5 = vmul.f32 -2.0, %v2294_v35  ;;  %v2311_v29 = vmul.f32 1.442695, %v2299_v54 }
 0x546   : > { %v5164_v9 = vpop.eup %5163  ;;  %5175 = vrcp.f32 %v2241_v36  ;;  %v7008_v34 = vmul.f32 %v7005_v51, %v2375_v57  ;;  %v2313_v61 = vmul.f32 1.442695, %v2300_v55  ;;  %v2315_v46 = vmul.f32 1.442695, %v2301_v16 }
 0x547   : > { %v5166_v53 = vpop.eup %5165  ;;  %5177 = vrcp.f32 %v2242_v31  ;;  %v2245_v40 = vadd.f32 1.0, %v5164_v9  ;;  %v2317_v36 = vmul.f32 1.442695, %v2302_v5  ;;  %v8073_v31 = vld [vmem:[#allocation34_spill] sm:$0xff]  ;;  %v2378_v55 = vrot.slane %v6860_v11, 7 }
 0x548   : > { %v2246_v43 = vadd.f32 1.0, %v5166_v53  ;;  %5179 = vrcp.f32 %v2243_v60  ;;  %v2376_v9 = vrot.slane %v8073_v31, 7  ;;  %v8074_v60 = vld [vmem:[#allocation35_spill] sm:$0xff]  ;;  %v2379_v16 = vrot.slane %v6863_v14, 7 }
 0x549   : > { %5181 = vrcp.f32 %v2244_v63  ;;  %v2377_v35 = vrot.slane %v8074_v60, 7  ;;  %v2380_v5 = vrot.slane %v6867_v15, 7  ;;  %v2381_v11 = vrot.slane %v6873_v7, 7 }
 0x54a   : > { %5183 = vrcp.f32 %v2245_v40  ;;  %v2382_v14 = vrot.slane %v6880_v19, 7 }
 0x54b   : > { %5185 = vrcp.f32 %v2246_v43 }
 0x54c   : > { %v5168_v38 = vpop.eup %5167  ;;  %5187 = vpow2.f32 %v2309_v20 }
 0x54d   : > { %v5170_v23 = vpop.eup %5169  ;;  %5189 = vpow2.f32 %v2311_v29  ;;  %v2319_v57 = vadd.f32 1.0, %v5168_v38 }
 0x54e   : > { %v5172_v62 = vpop.eup %5171  ;;  %5191 = vpow2.f32 %v2313_v61  ;;  %v2320_v8 = vadd.f32 1.0, %v5170_v23 }
 0x54f   : > { %v5174_v0 = vpop.eup %5173  ;;  %5193 = vpow2.f32 %v2315_v46  ;;  %v2321_v63 = vadd.f32 1.0, %v5172_v62 }
 0x550   : > { %v5176_v54 = vpop.eup %5175  ;;  %5195 = vpow2.f32 %v2317_v36  ;;  %v2392_v53 = vmul.f32 %v5174_v0, %v2376_v9  ;;  %v2352_v32 = vsub.f32 1.0, %v5174_v0 }
 0x551   : > { %v7013_v40 = vpop.eup %5177  ;;  %5197 = vrcp.f32 %v2319_v57  ;;  %v2393_v20 = vmul.f32 %v5176_v54, %v2377_v35 }
 0x552   : > { %v7016_v43 = vpop.eup %5179  ;;  %5199 = vrcp.f32 %v2320_v8  ;;  %v7020_v29 = vmul.f32 %v7013_v40, %v2378_v55 }
 0x553   : > { %v7022_v61 = vpop.eup %5181  ;;  %5201 = vrcp.f32 %v2321_v63  ;;  %v7026_v46 = vmul.f32 %v7016_v43, %v2379_v16 }
 0x554   : > { %v7028_v38 = vpop.eup %5183  ;;  %v7032_v36 = vmul.f32 %v7022_v61, %v2380_v5  ;;  %v2356_v0 = vsub.f32 1.0, %v7022_v61 }
 0x555   : > { %v7034_v15 = vpop.eup %5185  ;;  %v7037_v23 = vmul.f32 %v7028_v38, %v2381_v11 }
 0x556   : > { %v5188_v57 = vpop.eup %5187  ;;  %v7040_v62 = vmul.f32 %v7034_v15, %v2382_v14 }
 0x557   : > { %v5190_v7 = vpop.eup %5189  ;;  %v2322_v31 = vadd.f32 1.0, %v5188_v57  ;;  %v2351_v57 = vsub.f32 1.0, %v7005_v51 }
 0x558   : > { %v5192_v9 = vpop.eup %5191  ;;  %v2323_v8 = vadd.f32 1.0, %v5190_v7 }
 0x559   : > { %v5194_v60 = vpop.eup %5193  ;;  %v2324_v35 = vadd.f32 1.0, %v5192_v9  ;;  %5203 = vrcp.f32 %v2322_v31  ;;  %v2353_v31 = vsub.f32 1.0, %v5176_v54  ;;  %v2357_v54 = vsub.f32 1.0, %v7028_v38 }
 0x55a   : > { %v5196_v19 = vpop.eup %5195  ;;  %v2325_v63 = vadd.f32 1.0, %v5194_v60  ;;  %5205 = vrcp.f32 %v2323_v8 }
 0x55b   : > { %v5198_v55 = vpop.eup %5197  ;;  %v2326_v16 = vadd.f32 1.0, %v5196_v19  ;;  %5207 = vrcp.f32 %v2324_v35 }
 0x55c   : > { %v5200_v5 = vpop.eup %5199  ;;  %v2328_v11 = vmul.f32 2.0, %v5198_v55  ;;  %5209 = vrcp.f32 %v2325_v63  ;;  %v2354_v63 = vsub.f32 1.0, %v7013_v40  ;;  %v2358_v40 = vsub.f32 1.0, %v7034_v15 }
 0x55d   : > { %v5202_v1 = vpop.eup %5201  ;;  %v2330_v6 = vmul.f32 2.0, %v5200_v5  ;;  %5211 = vrcp.f32 %v2326_v16 }
 0x55e   : > { %v2332_v14 = vmul.f32 2.0, %v5202_v1  ;;  %v4398_v42 = vadd.f32 -1.0, %v2328_v11  ;;  %v2355_v1 = vsub.f32 1.0, %v7016_v43  ;;  %v2420_v11 = vld [vmem:[%s6052_s7 + $0x4] sm:$0x2] }
 0x55f   : > { %v4399_v7 = vadd.f32 -1.0, %v2330_v6  ;;  %v7139_v43 = vld [vmem:[#allocation8 + $0x20] ss:$12 sps:$4 sm:$0xff]  }
 0x560   : > { %v4400_v9 = vadd.f32 -1.0, %v2332_v14  ;;  %v2359_v59 = vmul.f32 %v4398_v42, %v2351_v57 }
 0x561   : > { %v2360_v60 = vmul.f32 %v4399_v7, %v2352_v32 }
 0x562   : > { %v2361_v8 = vmul.f32 %v4400_v9, %v2353_v31  ;;  %v7044_v19 = vadd.f32 %v7008_v34, %v2359_v59  ;;  %v2423_v31 = vld [vmem:[%s6052_s7 + $0x8] sm:$0x2] }
 0x563   : > { %v5204_v35 = vpop.eup %5203  ;;  %v7048_v55 = vadd.f32 %v2392_v53, %v2360_v60 }
 0x564   : > { %v5206_v51 = vpop.eup %5205  ;;  %v2334_v6 = vmul.f32 2.0, %v5204_v35  ;;  %v7051_v42 = vadd.f32 %v2393_v20, %v2361_v8  ;;  %v2407_v59 = vpack.c.bf16 %v7044_v19, %v7044_v19  ;;  %v2417_v20 = vld [vmem:[%s6052_s7] sm:$0x2] }
 0x565   : > { %8075 = vst [vmem:[#allocation13_spill] sm:$0xff] %v7048_v55  ;;  %v5208_v32 = vpop.eup %5207  ;;  %v2336_v34 = vmul.f32 2.0, %v5206_v51  ;;  %v2408_v53 = vpack.c.bf16 %v7048_v55, %v7048_v55 }
 0x566   : > { %8076 = vst [vmem:[#allocation17_spill] sm:$0xff] %v7051_v42  ;;  %v5210_v61 = vpop.eup %5209  ;;  %v2338_v16 = vmul.f32 2.0, %v5208_v32  ;;  %v4401_v5 = vadd.f32 -1.0, %v2334_v6  ;;  %v2409_v38 = vpack.c.bf16 %v7051_v42, %v7051_v42  ;;  %v2418_v15 = vsel %vm7061_vm2, %v2407_v59, %v2417_v20 }
 0x567   : > { %v5212_v14 = vpop.eup %5211  ;;  %v2340_v57 = vmul.f32 2.0, %v5210_v61  ;;  %v4402_v7 = vadd.f32 -1.0, %v2336_v34  ;;  %2419 = vst [vmem:[%s6052_s7] sm:$0x2] %v2418_v15  ;;  %v2421_v9 = vsel %vm7061_vm2, %v2408_v53, %v2420_v11  ;;  %v2449_v60 = vunpack.c.l.b16 %v2407_v59 }
 0x568   : > { %v2342_v8 = vmul.f32 2.0, %v5212_v14  ;;  %v4403_v35 = vadd.f32 -1.0, %v2338_v16  ;;  %v2362_v51 = vmul.f32 %v4401_v5, %v2354_v63  ;;  %2422 = vst [vmem:[%s6052_s7 + $0x4] sm:$0x2] %v2421_v9  ;;  %v2424_v6 = vsel %vm7061_vm2, %v2409_v38, %v2423_v31 }
 0x569   : > { %v4404_v32 = vadd.f32 -1.0, %v2340_v57  ;;  %v2363_v20 = vmul.f32 %v4402_v7, %v2355_v1  ;;  %2425 = vst [vmem:[%s6052_s7 + $0x8] sm:$0x2] %v2424_v6  ;;  %v2450_v42 = vunpack.c.l.b16 %v2408_v53  ;;  %v2451_v61 = vunpack.c.l.b16 %v2409_v38 }
 0x56a   : > { %v4405_v34 = vadd.f32 -1.0, %v2342_v8  ;;  %v2364_v15 = vmul.f32 %v4403_v35, %v2356_v0  ;;  %v7080_v55 = vadd.f32 %v7020_v29, %v2362_v51  ;;  %v2457_v59 = vrot.slane %v2449_v60, 3  ;;  %v2435_v35 = vld [vmem:[%s6052_s7 + $0x18] sm:$0x2] }
 0x56b   : > { %v2365_v11 = vmul.f32 %v4404_v32, %v2357_v54  ;;  %v7083_v63 = vadd.f32 %v7026_v46, %v2363_v20  ;;  %v2458_v16 = vrot.slane %v2450_v42, 2  ;;  %v2460_v5 = vrot.slane %v2451_v61, 1  ;;  %v2426_v46 = vld [vmem:[%s6052_s7 + $0xc] sm:$0x2]  ;;  %v2438_v20 = vld [vmem:[%s6052_s7 + $0x1c] sm:$0x2] }
 0x56c   : > { %v2366_v1 = vmul.f32 %v4405_v34, %v2358_v40  ;;  %v7086_v14 = vadd.f32 %v7032_v36, %v2364_v15  ;;  %v2410_v0 = vpack.c.bf16 %v7080_v55, %v7080_v55 }
 0x56d   : > { %v7091_v29 = vadd.f32 %v7037_v23, %v2365_v11  ;;  %v2411_v54 = vpack.c.bf16 %v7083_v63, %v7083_v63  ;;  %v2459_v42 = vsel %vm1145_vm4, %v2458_v16, %v2457_v59  ;;  %v2429_v23 = vld [vmem:[%s6052_s7 + $0x10] sm:$0x2] }
 0x56e   : > { %v7098_v53 = vadd.f32 %v7040_v62, %v2366_v1  ;;  %v2412_v36 = vpack.c.bf16 %v7086_v14, %v7086_v14  ;;  %v2427_v40 = vsel %vm7061_vm2, %v2410_v0, %v2426_v46  ;;  %v2452_v38 = vunpack.c.l.b16 %v2410_v0  ;;  %v2432_v62 = vld [vmem:[%s6052_s7 + $0x14] sm:$0x2] }
 0x56f   : > { %v2413_v57 = vpack.c.bf16 %v7091_v29, %v7091_v29  ;;  %2428 = vst [vmem:[%s6052_s7 + $0xc] sm:$0x2] %v2427_v40  ;;  %v2430_v7 = vsel %vm7061_vm2, %v2411_v54, %v2429_v23  ;;  %v2453_v9 = vunpack.c.l.b16 %v2411_v54  ;;  %v2461_v31 = vsel %vm1148_vm6, %v2460_v5, %v2459_v42 }
 0x570   : > { %v2414_v60 = vpack.c.bf16 %v7098_v53, %v7098_v53  ;;  %2431 = vst [vmem:[%s6052_s7 + $0x10] sm:$0x2] %v2430_v7  ;;  %v2433_v8 = vsel %vm7061_vm2, %v2412_v36, %v2432_v62  ;;  %v2454_v51 = vunpack.c.l.b16 %v2412_v36  ;;  %v2462_v6 = vsel %vm1151_vm7, %v2452_v38, %v2461_v31 }
 0x571   : > { %2434 = vst [vmem:[%s6052_s7 + $0x14] sm:$0x2] %v2433_v8  ;;  %v2436_v32 = vsel %vm7061_vm2, %v2413_v57, %v2435_v35  ;;  %v2455_v61 = vunpack.c.l.b16 %v2413_v57  ;;  %v2463_v34 = vrot.slane %v2453_v9, 7 }
 0x572   : > { %2437 = vst [vmem:[%s6052_s7 + $0x18] sm:$0x2] %v2436_v32  ;;  %v2439_v15 = vsel %vm7061_vm2, %v2414_v60, %v2438_v20  ;;  %v2456_v59 = vunpack.c.l.b16 %v2414_v60  ;;  %v2465_v11 = vrot.slane %v2454_v51, 6 }
 0x573   : > { %2440 = vst [vmem:[%s6052_s7 + $0x1c] sm:$0x2] %v2439_v15  ;;  %v2464_v16 = vsel %vm1154_vm8, %v2463_v34, %v2462_v6  ;;  %v2467_v5 = vrot.slane %v2455_v61, 5  ;;  %v8079_v6 = vld [vmem:[#allocation16_spill] sm:$0xff]  ;;  %v8080_v61 = vld [vmem:[#allocation18_spill] sm:$0xff] }
 0x574   : > { %v2466_v1 = vsel %vm1157_vm9, %v2465_v11, %v2464_v16  ;;  %v2469_v0 = vrot.slane %v2456_v59, 4 }
 0x575   : > { %v2468_v54 = vsel %vm1160_vm10, %v2467_v5, %v2466_v1 }
 0x576   : > { %v2470_v46 = vsel %vm1163_vm11, %v2469_v0, %v2468_v54 }
 0x577   : > { %v2471_v42 = vpack.c.b16 %v2470_v46, %v2470_v46 }
 0x579   : > { %2506 = vmatmul.mubr.bf16.vlgmr.msra.gmra.mrb[32].mxu0 %v2471_v42  ;;  %4635 = vmatmul.mubr.bf16.vlgmr.msra.gmra.mrb[24].mxu1 %v2471_v42 }
 0x57a   : > { %2910 = vmatpush1.bf16.msra.mxu0 %v6911_v2  ;;  %4639 = vmatpush3.bf16.msra.mxu1 %v6914_v3  ;;  %v7145_v2 = vld [vmem:[#allocation8 + $0x38] ss:$12 sps:$4 sm:$0xff]   ;;  %v7151_v3 = vld [vmem:[#allocation8 + $0x50] ss:$12 sps:$4 sm:$0xff]  }
 0x57b   : > { %2911 = vmatprep.subr.bf16.mxu0 %v6917_v12  ;;  %4640 = vmatprep.subr.bf16.mxu1 %v8028_v24  ;;  %v7157_v12 = vld [vmem:[#allocation8 + $0x68] ss:$12 sps:$4 sm:$0xff]  }
 0x57c   : > { %2941 = vmatprep.mubr.bf16.mxu0 %v8029_v47  ;;  %4654 = vmatprep.mubr.msk.bf16.mxu1 %vm5838_vm1, %v8028_v24 }
 0x57e   : > { %2912 = vmatpush1.bf16.msra.mxu0 %v6924_v18  ;;  %4641 = vmatpush3.bf16.msra.mxu1 %v7139_v43  ;;  %v7163_v18 = vld [vmem:[#allocation8 + $0x80] ss:$12 sps:$4 sm:$0xff]  }
 0x57f   : > { %2913 = vmatprep.subr.bf16.mxu0 %v6928_v39  ;;  %4642 = vmatprep.subr.bf16.mxu1 %v8028_v24  ;;  %v7168_v39 = vld [vmem:[#allocation8 + $0x90] ss:$12 sps:$4 sm:$0xff]  }
 0x582   : > { %2914 = vmatpush1.bf16.msra.mxu0 %v6932_v44  ;;  %4643 = vmatpush3.bf16.msra.mxu1 %v7145_v2  ;;  %v7171_v44 = vld [vmem:[#allocation8 + $0x98] ss:$12 sps:$4 sm:$0xff]  }
 0x583   : > { %2915 = vmatprep.subr.bf16.mxu0 %v6936_v33  ;;  %4644 = vmatprep.subr.bf16.mxu1 %v8028_v24  ;;  %v7174_v33 = vld [vmem:[#allocation8 + $0xac] ss:$12 sps:$4 sm:$0xff]  }
 0x586   : > { %2916 = vmatpush1.bf16.msra.mxu0 %v6940_v41  ;;  %4645 = vmatpush3.bf16.msra.mxu1 %v7151_v3  ;;  %v7178_v41 = vld [vmem:[#allocation8 + $0xa8] ss:$12 sps:$4 sm:$0xff]  }
 0x587   : > { %2917 = vmatprep.subr.bf16.mxu0 %v6944_v58  ;;  %4646 = vmatprep.subr.bf16.mxu1 %v8028_v24  ;;  %v7181_v58 = vld [vmem:[#allocation8 + $0xb0] ss:$12 sps:$4 sm:$0xff]  }
 0x58a   : > { %2918 = vmatpush1.bf16.msra.mxu0 %v6948_v50  ;;  %4647 = vmatpush3.bf16.msra.mxu1 %v7157_v12 }
 0x58b   : > { %2919 = vmatprep.subr.bf16.mxu0 %v6952_v26  ;;  %4648 = vmatprep.subr.bf16.mxu1 %v8028_v24 }
 0x58e   : > { %2920 = vmatpush1.bf16.msra.mxu0 %v6956_v10  ;;  %4649 = vmatpush3.bf16.msra.mxu1 %v7163_v18 }
 0x58f   : > { %2921 = vmatprep.subr.bf16.mxu0 %v6960_v49  ;;  %4650 = vmatprep.subr.bf16.mxu1 %v8028_v24 }
 0x592   : > { %2922 = vmatpush1.bf16.msra.mxu0 %v7168_v39  ;;  %4651 = vmatpush3.bf16.msra.mxu1 %v7171_v44 }
 0x593   : > { %2923 = vmatprep.subr.bf16.mxu0 %v7174_v33  ;;  %4652 = vmatprep.subr.bf16.mxu1 %v8028_v24 }
 0x596   : > { %2924 = vmatpush1.bf16.msra.mxu0 %v7178_v41  ;;  %4653 = vmatpush3.bf16.msra.mxu1 %v7181_v58 }
 0x597   : > { %3344 = vmatprep.subr.bf16.mxu0 %v6970_v56  ;;  %4658 = vmatprep.subr.bf16.mxu1 %v8028_v24 }
 0x64c   : > { %v2507_v50 = vpop.f32.mrb[32].mxu0  ;;  %v7186_v26 = vpop.f32.mrb[24].mxu1 }
 0x64d   : > { %v2508_v10 = vadd.f32 %v2507_v50, %v8046_v13  ;;  %v2509_v49 = vpop.f32.mrb[33].mxu0  ;;  %v4636_v36 = vpop.f32.mrb[25].mxu1 }
 0x64e   : > { %v2511_v40 = vpop.f32.mrb[34].mxu0  ;;  %v2551_v23 = vpop.f32.mrb[26].mxu1 }
 0x64f   : > { %v2555_v38 = vrot.slane %v2508_v10, 4  ;;  %v2556_v57 = vrot.slane %v2508_v10, 5  ;;  %v2557_v7 = vrot.slane %v2508_v10, 6  ;;  %v2558_v62 = vrot.slane %v2508_v10, 7  ;;  %v2512_v9 = vpop.f32.mrb[35].mxu0  ;;  %v4637_v31 = vpop.f32.mrb[27].mxu1 }
 0x650   : > { %v2559_v60 = vrot.slane %v2508_v10, 1  ;;  %v2560_v8 = vrot.slane %v2508_v10, 2  ;;  %v2561_v56 = vrot.slane %v2508_v10, 3  ;;  %v2574_v35 = vadd.f32 %v2508_v10, %v6253_v22 }
 0x651   : > { %v2570_v51 = vadd.f32 %v2555_v38, %v8048_v52  ;;  %v2571_v32 = vadd.f32 %v2556_v57, %v8079_v6  ;;  %v2572_v20 = vadd.f32 %v2557_v7, %v8047_v37  ;;  %v2573_v34 = vadd.f32 %v2558_v62, %v8080_v61 }
 0x652   : > { %v2575_v15 = vadd.f32 %v2559_v60, %v6256_v25  ;;  %v2576_v59 = vadd.f32 %v2560_v8, %v6258_v27  ;;  %v2577_v11 = vadd.f32 %v2561_v56, %v6260_v28  ;;  %v2582_v16 = vsub.f32 0.0, %v2574_v35 }
 0x653   : > { %v2578_v5 = vsub.f32 0.0, %v2570_v51  ;;  %v2579_v1 = vsub.f32 0.0, %v2571_v32  ;;  %v2580_v0 = vsub.f32 0.0, %v2572_v20  ;;  %v2581_v54 = vsub.f32 0.0, %v2573_v34  ;;  %v8081_v34 = vld [vmem:[#allocation20_spill] sm:$0xff] }
 0x654   : > { %v2583_v46 = vsub.f32 0.0, %v2575_v15  ;;  %v2584_v42 = vsub.f32 0.0, %v2576_v59  ;;  %v2585_v50 = vsub.f32 0.0, %v2577_v11  ;;  %v2594_v10 = vmul.f32 1.442695, %v2582_v16 }
 0x655   : > { %v2586_v36 = vmul.f32 1.442695, %v2578_v5  ;;  %v2588_v40 = vmul.f32 1.442695, %v2579_v1  ;;  %v2590_v23 = vmul.f32 1.442695, %v2580_v0  ;;  %v2510_v38 = vadd.f32 %v2509_v49, %v8033_v21 }
 0x656   : > { %v2592_v57 = vmul.f32 1.442695, %v2581_v54  ;;  %5213 = vpow2.f32 %v2594_v10  ;;  %v2596_v7 = vmul.f32 1.442695, %v2583_v46  ;;  %v2598_v62 = vmul.f32 1.442695, %v2584_v42 }
 0x657   : > { %5215 = vpow2.f32 %v2586_v36  ;;  %v2600_v9 = vmul.f32 1.442695, %v2585_v50  ;;  %v2627_v31 = vrot.slane %v2510_v38, 4  ;;  %v2628_v60 = vrot.slane %v2510_v38, 5  ;;  %v8082_v1 = vld [vmem:[#allocation21_spill] sm:$0xff]  ;;  %v8083_v50 = vld [vmem:[#allocation22_spill] sm:$0xff] }
 0x658   : > { %5217 = vpow2.f32 %v2588_v40  ;;  %v2629_v8 = vrot.slane %v2510_v38, 6  ;;  %v2630_v35 = vrot.slane %v2510_v38, 7  ;;  %v2631_v49 = vrot.slane %v2510_v38, 1 }
 0x659   : > { %5219 = vpow2.f32 %v2590_v23  ;;  %v2642_v56 = vadd.f32 %v2627_v31, %v6245_v17  ;;  %v2643_v32 = vadd.f32 %v2628_v60, %v6275_v45  ;;  %v2632_v5 = vrot.slane %v2510_v38, 2 }
 0x65a   : > { %5221 = vpow2.f32 %v2592_v57  ;;  %v2644_v15 = vadd.f32 %v2629_v8, %v8081_v34  ;;  %v2645_v0 = vadd.f32 %v2630_v35, %v8082_v1  ;;  %v2633_v42 = vrot.slane %v2510_v38, 3 }
 0x65b   : > { %5223 = vpow2.f32 %v2596_v7  ;;  %v2650_v51 = vsub.f32 0.0, %v2642_v56  ;;  %v2646_v10 = vadd.f32 %v2510_v38, %v8083_v50  ;;  %v2647_v23 = vadd.f32 %v2631_v49, %v6310_v4 }
 0x65c   : > { %5225 = vpow2.f32 %v2598_v62  ;;  %v2651_v57 = vsub.f32 0.0, %v2643_v32  ;;  %v2648_v8 = vadd.f32 %v2632_v5, %v8065_v48  ;;  %v2653_v56 = vsub.f32 0.0, %v2645_v0 }
 0x65d   : > { %5227 = vpow2.f32 %v2600_v9  ;;  %v2658_v59 = vmul.f32 1.442695, %v2650_v51  ;;  %v2652_v9 = vsub.f32 0.0, %v2644_v15  ;;  %v2654_v38 = vsub.f32 0.0, %v2646_v10 }
 0x65e   : > { %v2655_v49 = vsub.f32 0.0, %v2647_v23  ;;  %v2660_v32 = vmul.f32 1.442695, %v2651_v57  ;;  %v2656_v5 = vsub.f32 0.0, %v2648_v8  ;;  %v2664_v0 = vmul.f32 1.442695, %v2653_v56 }
 0x65f   : > { %5229 = vpow2.f32 %v2658_v59  ;;  %v2662_v15 = vmul.f32 1.442695, %v2652_v9 }
 0x660   : > { %v5214_v20 = vpop.eup %5213  ;;  %v2668_v10 = vmul.f32 1.442695, %v2655_v49  ;;  %v2670_v23 = vmul.f32 1.442695, %v2656_v5 }
 0x661   : > { %v5216_v11 = vpop.eup %5215  ;;  %v2606_v16 = vadd.f32 1.0, %v5214_v20  ;;  %v8084_v20 = vld [vmem:[#allocation25_spill] sm:$0xff] }
 0x662   : > { %v5218_v54 = vpop.eup %5217  ;;  %v2602_v46 = vadd.f32 1.0, %v5216_v11  ;;  %v2649_v59 = vadd.f32 %v2633_v42, %v8084_v20 }
 0x663   : > { %v5220_v36 = vpop.eup %5219  ;;  %v2603_v40 = vadd.f32 1.0, %v5218_v54  ;;  %5231 = vrcp.f32 %v2606_v16 }
 0x664   : > { %v5222_v7 = vpop.eup %5221  ;;  %v2604_v62 = vadd.f32 1.0, %v5220_v36  ;;  %5233 = vrcp.f32 %v2602_v46  ;;  %v8085_v46 = vld [vmem:[#allocation23_spill] sm:$0xff] }
 0x665   : > { %v5224_v31 = vpop.eup %5223  ;;  %v2605_v60 = vadd.f32 1.0, %v5222_v7  ;;  %5235 = vrcp.f32 %v2603_v40  ;;  %v2549_v36 = vadd.f32 %v7186_v26, %v8085_v46  ;;  %v2666_v40 = vmul.f32 1.442695, %v2654_v38 }
 0x666   : > { %v5226_v35 = vpop.eup %5225  ;;  %v2607_v51 = vadd.f32 1.0, %v5224_v31  ;;  %5237 = vrcp.f32 %v2604_v62  ;;  %v2657_v7 = vsub.f32 0.0, %v2649_v59 }
 0x667   : > { %v5228_v11 = vpop.eup %5227  ;;  %v2608_v16 = vadd.f32 1.0, %v5226_v35  ;;  %5239 = vrcp.f32 %v2605_v60  ;;  %v2699_v31 = vrot.slane %v2549_v36, 4  ;;  %v2700_v9 = vrot.slane %v2549_v36, 5 }
 0x668   : > { %v2609_v54 = vadd.f32 1.0, %v5228_v11  ;;  %5241 = vrcp.f32 %v2607_v51  ;;  %v2672_v51 = vmul.f32 1.442695, %v2657_v7  ;;  %v2701_v8 = vrot.slane %v2549_v36, 6 }
 0x669   : > { %5243 = vrcp.f32 %v2608_v16  ;;  %v5230_v42 = vpop.eup %5229  ;;  %v2702_v59 = vrot.slane %v2549_v36, 7  ;;  %v2703_v49 = vrot.slane %v2549_v36, 1  ;;  %v2705_v46 = vrot.slane %v2549_v36, 3 }
 0x66a   : > { %5245 = vrcp.f32 %v2609_v54  ;;  %v2674_v57 = vadd.f32 1.0, %v5230_v42  ;;  %v8086_v54 = vld [vmem:[#allocation27_spill] sm:$0xff] }
 0x66b   : > { %5247 = vpow2.f32 %v2660_v32 }
 0x66c   : > { %5249 = vpow2.f32 %v2662_v15 }
 0x66d   : > { %v5232_v62 = vpop.eup %5231  ;;  %5251 = vpow2.f32 %v2664_v0  ;;  %v2704_v0 = vrot.slane %v2549_v36, 2 }
 0x66e   : > { %v5234_v60 = vpop.eup %5233  ;;  %v2718_v35 = vmul.f32 %v5232_v62, %v2549_v36  ;;  %5253 = vpow2.f32 %v2666_v40  ;;  %v8087_v62 = vld [vmem:[#allocation29_spill] sm:$0xff] }
 0x66f   : > { %v5236_v26 = vpop.eup %5235  ;;  %v2714_v56 = vmul.f32 %v5234_v60, %v2699_v31  ;;  %5255 = vpow2.f32 %v2668_v10 }
 0x670   : > { %v5238_v38 = vpop.eup %5237  ;;  %v2715_v11 = vmul.f32 %v5236_v26, %v2700_v9  ;;  %5257 = vrcp.f32 %v2674_v57 }
 0x671   : > { %v5240_v16 = vpop.eup %5239  ;;  %v2716_v32 = vmul.f32 %v5238_v38, %v2701_v8  ;;  %v2722_v15 = vadd.f32 %v2714_v56, %v8086_v54  ;;  %5259 = vpow2.f32 %v2670_v23  ;;  %v8088_v8 = vld [vmem:[#allocation28_spill] sm:$0xff] }
 0x672   : > { %v5242_v5 = vpop.eup %5241  ;;  %v2717_v42 = vmul.f32 %v5240_v16, %v2702_v59  ;;  %v2723_v40 = vadd.f32 %v2715_v11, %v8087_v62  ;;  %5261 = vpow2.f32 %v2672_v51  ;;  %v8089_v59 = vld [vmem:[#allocation31_spill] sm:$0xff] }
 0x673   : > { %v5244_v7 = vpop.eup %5243  ;;  %v2719_v31 = vmul.f32 %v5242_v5, %v2703_v49  ;;  %v2724_v10 = vadd.f32 %v2716_v32, %v8068_v30  ;;  %v2730_v60 = vmul.f32 -2.0, %v2722_v15  ;;  %v2726_v16 = vadd.f32 %v2718_v35, %v8089_v59  ;;  %v8090_v32 = vld [vmem:[#allocation33_spill] sm:$0xff]  ;;  %v8092_v35 = vld [vmem:[#allocation32_spill] sm:$0xff] }
 0x674   : > { %v5246_v9 = vpop.eup %5245  ;;  %v2731_v57 = vmul.f32 -2.0, %v2723_v40  ;;  %v2720_v26 = vmul.f32 %v5244_v7, %v2704_v0  ;;  %v2725_v38 = vadd.f32 %v2717_v42, %v8088_v8  ;;  %v2810_v0 = vrot.slane %v7044_v19, 7  ;;  %v8091_v42 = vld [vmem:[#allocation30_spill] sm:$0xff] }
 0x675   : > { %v5248_v20 = vpop.eup %5247  ;;  %v2732_v56 = vmul.f32 -2.0, %v2724_v10  ;;  %v2738_v23 = vmul.f32 1.442695, %v2730_v60  ;;  %v2721_v54 = vmul.f32 %v5246_v9, %v2705_v46  ;;  %v2727_v15 = vadd.f32 %v2719_v31, %v8090_v32 }
 0x676   : > { %v5250_v48 = vpop.eup %5249  ;;  %v2740_v11 = vmul.f32 1.442695, %v2731_v57  ;;  %v2675_v51 = vadd.f32 1.0, %v5248_v20  ;;  %v2728_v7 = vadd.f32 %v2720_v26, %v8091_v42  ;;  %v2733_v46 = vmul.f32 -2.0, %v2725_v38 }
 0x677   : > { %v5252_v62 = vpop.eup %5251  ;;  %5263 = vpow2.f32 %v2738_v23  ;;  %v2742_v36 = vmul.f32 1.442695, %v2732_v56  ;;  %v2676_v49 = vadd.f32 1.0, %v5250_v48  ;;  %v2729_v9 = vadd.f32 %v2721_v54, %v8092_v35 }
 0x678   : > { %v5254_v5 = vpop.eup %5253  ;;  %5265 = vpow2.f32 %v2740_v11  ;;  %v2677_v40 = vadd.f32 1.0, %v5252_v62  ;;  %v2734_v48 = vmul.f32 -2.0, %v2726_v16  ;;  %v2735_v31 = vmul.f32 -2.0, %v2727_v15 }
 0x679   : > { %v5256_v10 = vpop.eup %5255  ;;  %5267 = vpow2.f32 %v2742_v36  ;;  %v2678_v60 = vadd.f32 1.0, %v5254_v5  ;;  %v2736_v26 = vmul.f32 -2.0, %v2728_v7  ;;  %v2737_v11 = vmul.f32 -2.0, %v2729_v9  ;;  %v8094_v9 = vld [vmem:[#allocation17_spill] sm:$0xff] }
 0x67a   : > { %v7217_v20 = vpop.eup %5257  ;;  %5269 = vrcp.f32 %v2675_v51  ;;  %v2679_v57 = vadd.f32 1.0, %v5256_v10  ;;  %v2744_v36 = vmul.f32 1.442695, %v2733_v46  ;;  %v2746_v54 = vmul.f32 1.442695, %v2734_v48 }
 0x67b   : > { %v5260_v56 = vpop.eup %5259  ;;  %5271 = vrcp.f32 %v2676_v49  ;;  %v7220_v19 = vmul.f32 %v7217_v20, %v2810_v0  ;;  %v2748_v51 = vmul.f32 1.442695, %v2735_v31  ;;  %v2750_v16 = vmul.f32 1.442695, %v2736_v26 }
 0x67c   : > { %v5262_v62 = vpop.eup %5261  ;;  %v2680_v23 = vadd.f32 1.0, %v5260_v56  ;;  %5273 = vrcp.f32 %v2677_v40  ;;  %v2752_v49 = vmul.f32 1.442695, %v2737_v11  ;;  %v8093_v56 = vld [vmem:[#allocation13_spill] sm:$0xff]  ;;  %v2812_v46 = vrot.slane %v8094_v9, 7 }
 0x67d   : > { %v2681_v38 = vadd.f32 1.0, %v5262_v62  ;;  %5275 = vrcp.f32 %v2678_v60  ;;  %v2811_v40 = vrot.slane %v8093_v56, 7  ;;  %v2813_v31 = vrot.slane %v7080_v55, 7 }
 0x67e   : > { %5277 = vrcp.f32 %v2679_v57  ;;  %v2814_v26 = vrot.slane %v7083_v63, 7  ;;  %v2816_v55 = vrot.slane %v7091_v29, 7  ;;  %v2817_v63 = vrot.slane %v7098_v53, 7 }
 0x67f   : > { %5279 = vrcp.f32 %v2680_v23 }
 0x680   : > { %5281 = vrcp.f32 %v2681_v38 }
 0x681   : > { %v5264_v5 = vpop.eup %5263  ;;  %5283 = vpow2.f32 %v2744_v36  ;;  %v2815_v36 = vrot.slane %v7086_v14, 7 }
 0x682   : > { %v5266_v15 = vpop.eup %5265  ;;  %5285 = vpow2.f32 %v2746_v54  ;;  %v2754_v0 = vadd.f32 1.0, %v5264_v5 }
 0x683   : > { %v5268_v10 = vpop.eup %5267  ;;  %5287 = vpow2.f32 %v2748_v51  ;;  %v2755_v7 = vadd.f32 1.0, %v5266_v15 }
 0x684   : > { %v5270_v60 = vpop.eup %5269  ;;  %5289 = vpow2.f32 %v2750_v16  ;;  %v2756_v57 = vadd.f32 1.0, %v5268_v10 }
 0x685   : > { %v5272_v48 = vpop.eup %5271  ;;  %5291 = vpow2.f32 %v2752_v49  ;;  %v2827_v62 = vmul.f32 %v5270_v60, %v2811_v40 }
 0x686   : > { %v7225_v23 = vpop.eup %5273  ;;  %5293 = vrcp.f32 %v2754_v0  ;;  %v2828_v38 = vmul.f32 %v5272_v48, %v2812_v46  ;;  %v2788_v59 = vsub.f32 1.0, %v5272_v48 }
 0x687   : > { %v7228_v11 = vpop.eup %5275  ;;  %5295 = vrcp.f32 %v2755_v7  ;;  %v7232_v54 = vmul.f32 %v7225_v23, %v2813_v31 }
 0x688   : > { %v7234_v51 = vpop.eup %5277  ;;  %5297 = vrcp.f32 %v2756_v57  ;;  %v7238_v16 = vmul.f32 %v7228_v11, %v2814_v26 }
 0x689   : > { %v7240_v5 = vpop.eup %5279  ;;  %v7244_v49 = vmul.f32 %v7234_v51, %v2815_v36  ;;  %v2791_v48 = vsub.f32 1.0, %v7234_v51  ;;  %v7343_v51 = vld [vmem:[#allocation8] ss:$12 sps:$4 sm:$0xff]  }
 0x68a   : > { %v7246_v14 = vpop.eup %5281  ;;  %v7249_v15 = vmul.f32 %v7240_v5, %v2816_v55 }
 0x68b   : > { %v5284_v0 = vpop.eup %5283  ;;  %v7252_v10 = vmul.f32 %v7246_v14, %v2817_v63 }
 0x68c   : > { %v5286_v29 = vpop.eup %5285  ;;  %v2757_v56 = vadd.f32 1.0, %v5284_v0 }
 0x68d   : > { %v5288_v40 = vpop.eup %5287  ;;  %v2758_v7 = vadd.f32 1.0, %v5286_v29  ;;  %v2786_v29 = vsub.f32 1.0, %v7217_v20 }
 0x68e   : > { %v5290_v9 = vpop.eup %5289  ;;  %v2759_v46 = vadd.f32 1.0, %v5288_v40  ;;  %5299 = vrcp.f32 %v2757_v56  ;;  %v2787_v40 = vsub.f32 1.0, %v5270_v60 }
 0x68f   : > { %v5292_v53 = vpop.eup %5291  ;;  %v2760_v57 = vadd.f32 1.0, %v5290_v9  ;;  %5301 = vrcp.f32 %v2758_v7 }
 0x690   : > { %v5294_v31 = vpop.eup %5293  ;;  %v2761_v26 = vadd.f32 1.0, %v5292_v53  ;;  %5303 = vrcp.f32 %v2759_v46 }
 0x691   : > { %v5296_v36 = vpop.eup %5295  ;;  %v2763_v55 = vmul.f32 2.0, %v5294_v31  ;;  %5305 = vrcp.f32 %v2760_v57  ;;  %v2789_v31 = vsub.f32 1.0, %v7225_v23  ;;  %v2792_v23 = vsub.f32 1.0, %v7240_v5 }
 0x692   : > { %v5298_v35 = vpop.eup %5297  ;;  %v2765_v42 = vmul.f32 2.0, %v5296_v36  ;;  %5307 = vrcp.f32 %v2761_v26 }
 0x693   : > { %v2767_v63 = vmul.f32 2.0, %v5298_v35  ;;  %v4406_v0 = vadd.f32 -1.0, %v2763_v55  ;;  %v2790_v35 = vsub.f32 1.0, %v7228_v11  ;;  %v2793_v11 = vsub.f32 1.0, %v7246_v14 }
 0x694   : > { %v4407_v32 = vadd.f32 -1.0, %v2765_v42  ;;  %v2853_v42 = vld [vmem:[%s6052_s7] sm:$0x4] }
 0x695   : > { %v4408_v56 = vadd.f32 -1.0, %v2767_v63  ;;  %v2794_v7 = vmul.f32 %v4406_v0, %v2786_v29 }
 0x696   : > { %v2795_v9 = vmul.f32 %v4407_v32, %v2787_v40  ;;  %v2856_v32 = vld [vmem:[%s6052_s7 + $0x4] sm:$0x4] }
 0x697   : > { %v2796_v53 = vmul.f32 %v4408_v56, %v2788_v59  ;;  %v7256_v46 = vadd.f32 %v7220_v19, %v2794_v7 }
 0x698   : > { %v5300_v57 = vpop.eup %5299  ;;  %v7260_v26 = vadd.f32 %v2827_v62, %v2795_v9 }
 0x699   : > { %v5302_v20 = vpop.eup %5301  ;;  %v2769_v60 = vmul.f32 2.0, %v5300_v57  ;;  %v7264_v36 = vadd.f32 %v2828_v38, %v2796_v53  ;;  %v2842_v59 = vpack.c.bf16 %v7256_v46, %v7256_v46  ;;  %v2859_v38 = vld [vmem:[%s6052_s7 + $0x8] sm:$0x4] }
 0x69a   : > { %8095 = vst [vmem:[#allocation15_spill] sm:$0xff] %v7260_v26  ;;  %v5304_v19 = vpop.eup %5303  ;;  %v2771_v55 = vmul.f32 2.0, %v5302_v20  ;;  %v2843_v62 = vpack.c.bf16 %v7260_v26, %v7260_v26 }
 0x69b   : > { %8096 = vst [vmem:[#allocation14_spill] sm:$0xff] %v7264_v36  ;;  %v5306_v63 = vpop.eup %5305  ;;  %v2773_v0 = vmul.f32 2.0, %v5304_v19  ;;  %v4409_v29 = vadd.f32 -1.0, %v2769_v60  ;;  %v2844_v5 = vpack.c.bf16 %v7264_v36, %v7264_v36  ;;  %v2854_v14 = vsel %vm7275_vm5, %v2842_v59, %v2853_v42 }
 0x69c   : > { %v5308_v40 = vpop.eup %5307  ;;  %v2775_v56 = vmul.f32 2.0, %v5306_v63  ;;  %v4410_v7 = vadd.f32 -1.0, %v2771_v55  ;;  %2855 = vst [vmem:[%s6052_s7] sm:$0x4] %v2854_v14  ;;  %v2857_v9 = vsel %vm7275_vm5, %v2843_v62, %v2856_v32  ;;  %v2885_v53 = vunpack.c.l.b16 %v2842_v59 }
 0x69d   : > { %v2777_v57 = vmul.f32 2.0, %v5308_v40  ;;  %v4411_v20 = vadd.f32 -1.0, %v2773_v0  ;;  %v2797_v19 = vmul.f32 %v4409_v29, %v2789_v31  ;;  %2858 = vst [vmem:[%s6052_s7 + $0x4] sm:$0x4] %v2857_v9  ;;  %v2860_v60 = vsel %vm7275_vm5, %v2844_v5, %v2859_v38  ;;  %v2862_v0 = vld [vmem:[%s6052_s7 + $0xc] sm:$0x4] }
 0x69e   : > { %v4412_v36 = vadd.f32 -1.0, %v2775_v56  ;;  %v2798_v26 = vmul.f32 %v4410_v7, %v2790_v35  ;;  %2861 = vst [vmem:[%s6052_s7 + $0x8] sm:$0x4] %v2860_v60  ;;  %v2886_v42 = vunpack.c.l.b16 %v2843_v62  ;;  %v2887_v63 = vunpack.c.l.b16 %v2844_v5  ;;  %v2871_v56 = vld [vmem:[%s6052_s7 + $0x18] sm:$0x4] }
 0x69f   : > { %v4413_v55 = vadd.f32 -1.0, %v2777_v57  ;;  %v2799_v14 = vmul.f32 %v4411_v20, %v2791_v48  ;;  %v7292_v32 = vadd.f32 %v7232_v54, %v2797_v19  ;;  %v2893_v59 = vrot.slane %v2885_v53, 4  ;;  %v2865_v54 = vld [vmem:[%s6052_s7 + $0x10] sm:$0x4]  ;;  %v2874_v53 = vld [vmem:[%s6052_s7 + $0x1c] sm:$0x4] }
 0x6a0   : > { %v2800_v40 = vmul.f32 %v4412_v36, %v2792_v23  ;;  %v7295_v31 = vadd.f32 %v7238_v16, %v2798_v26  ;;  %v2894_v38 = vrot.slane %v2886_v42, 3  ;;  %v2896_v35 = vrot.slane %v2887_v63, 2  ;;  %v2868_v26 = vld [vmem:[%s6052_s7 + $0x14] sm:$0x4] }
 0x6a1   : > { %v2801_v29 = vmul.f32 %v4413_v55, %v2793_v11  ;;  %v7299_v62 = vadd.f32 %v7244_v49, %v2799_v14  ;;  %v2845_v48 = vpack.c.bf16 %v7292_v32, %v7292_v32 }
 0x6a2   : > { %v7305_v36 = vadd.f32 %v7249_v15, %v2800_v40  ;;  %v2846_v16 = vpack.c.bf16 %v7295_v31, %v7295_v31  ;;  %v2895_v23 = vsel %vm1145_vm4, %v2894_v38, %v2893_v59 }
 0x6a3   : > { %v7312_v11 = vadd.f32 %v7252_v10, %v2801_v29  ;;  %v2847_v49 = vpack.c.bf16 %v7299_v62, %v7299_v62  ;;  %v2863_v5 = vsel %vm7275_vm5, %v2845_v48, %v2862_v0  ;;  %v2888_v15 = vunpack.c.l.b16 %v2845_v48 }
 0x6a4   : > { %v2848_v7 = vpack.c.bf16 %v7305_v36, %v7305_v36  ;;  %2864 = vst [vmem:[%s6052_s7 + $0xc] sm:$0x4] %v2863_v5  ;;  %v2866_v9 = vsel %vm7275_vm5, %v2846_v16, %v2865_v54  ;;  %v2897_v10 = vsel %vm1148_vm6, %v2896_v35, %v2895_v23  ;;  %v2889_v63 = vunpack.c.l.b16 %v2846_v16  ;;  %v7346_v23 = vld [vmem:[#allocation8 + $0x8] ss:$12 sps:$4 sm:$0xff]   ;;  %v7356_v5 = vld [vmem:[#allocation8 + $0x18] ss:$12 sps:$4 sm:$0xff]  }
 0x6a5   : > { %v2849_v57 = vpack.c.bf16 %v7312_v11, %v7312_v11  ;;  %2867 = vst [vmem:[%s6052_s7 + $0x10] sm:$0x4] %v2866_v9  ;;  %v2869_v20 = vsel %vm7275_vm5, %v2847_v49, %v2868_v26  ;;  %v2890_v19 = vunpack.c.l.b16 %v2847_v49  ;;  %v2898_v60 = vrot.slane %v2888_v15, 1  ;;  %v7349_v49 = vld [vmem:[#allocation8 + $0x1c] ss:$12 sps:$4 sm:$0xff]  }
 0x6a6   : > { %2870 = vst [vmem:[%s6052_s7 + $0x14] sm:$0x4] %v2869_v20  ;;  %v2872_v42 = vsel %vm7275_vm5, %v2848_v7, %v2871_v56  ;;  %v2891_v55 = vunpack.c.l.b16 %v2848_v7  ;;  %v7360_v56 = vld [vmem:[#allocation8 + $0x34] ss:$12 sps:$4 sm:$0xff]   ;;  %v7364_v15 = vld [vmem:[#allocation8 + $0x30] ss:$12 sps:$4 sm:$0xff]  }
 0x6a7   : > { %2873 = vst [vmem:[%s6052_s7 + $0x18] sm:$0x4] %v2872_v42  ;;  %v2875_v14 = vsel %vm7275_vm5, %v2849_v57, %v2874_v53  ;;  %v2892_v59 = vunpack.c.l.b16 %v2849_v57  ;;  %v2899_v40 = vsel %vm1151_vm7, %v2898_v60, %v2897_v10  ;;  %v2901_v0 = vrot.slane %v2890_v19, 7  ;;  %v7368_v7 = vld [vmem:[#allocation8 + $0x4c] ss:$12 sps:$4 sm:$0xff]  }
 0x6a8   : > { %2876 = vst [vmem:[%s6052_s7 + $0x1c] sm:$0x4] %v2875_v14  ;;  %v2900_v38 = vsel %vm1154_vm8, %v2889_v63, %v2899_v40  ;;  %v2903_v35 = vrot.slane %v2891_v55, 6  ;;  %v7372_v9 = vld [vmem:[#allocation8 + $0x48] ss:$12 sps:$4 sm:$0xff]  }
 0x6a9   : > { %v2902_v29 = vsel %vm1157_vm9, %v2901_v0, %v2900_v38  ;;  %v2905_v48 = vrot.slane %v2892_v59, 5  ;;  %v7380_v53 = vld [vmem:[#allocation8 + $0x60] ss:$12 sps:$4 sm:$0xff]   ;;  %v7388_v10 = vld [vmem:[#allocation8 + $0x78] ss:$12 sps:$4 sm:$0xff]  }
 0x6aa   : > { %v2904_v54 = vsel %vm1160_vm10, %v2903_v35, %v2902_v29 }
 0x6ab   : > { %v2906_v16 = vsel %vm1163_vm11, %v2905_v48, %v2904_v54 }
 0x6ac   : > { %v2907_v26 = vpack.c.b16 %v2906_v16, %v2906_v16 }
 0x6ae   : > { %2942 = vmatmul.mubr.bf16.vlgmr.msra.gmra.mrb[36].mxu0 %v2907_v26  ;;  %4655 = vmatmul.mubr.bf16.vlgmr.msra.gmra.mrb[28].mxu1 %v2907_v26 }
 0x6af   : > { %3345 = vmatpush1.bf16.msra.mxu0 %v7343_v51  ;;  %4659 = vmatpush3.bf16.msra.mxu1 %v7346_v23 }
 0x6b0   : > { %3346 = vmatprep.subr.bf16.mxu0 %v7349_v49  ;;  %4660 = vmatprep.subr.bf16.mxu1 %v8028_v24 }
 0x6b1   : > { %3376 = vmatprep.mubr.bf16.mxu0 %v8029_v47  ;;  %4674 = vmatprep.mubr.msk.bf16.mxu1 %vm5838_vm1, %v8028_v24 }
 0x6b3   : > { %3347 = vmatpush1.bf16.msra.mxu0 %v7356_v5  ;;  %4661 = vmatpush3.bf16.msra.mxu1 %v7139_v43  ;;  %v7376_v43 = vld [vmem:[#allocation8 + $0x64] ss:$12 sps:$4 sm:$0xff]  }
 0x6b4   : > { %3348 = vmatprep.subr.bf16.mxu0 %v7360_v56  ;;  %4662 = vmatprep.subr.bf16.mxu1 %v8028_v24 }
 0x6b7   : > { %3349 = vmatpush1.bf16.msra.mxu0 %v7364_v15  ;;  %4663 = vmatpush3.bf16.msra.mxu1 %v7145_v2  ;;  %v7384_v2 = vld [vmem:[#allocation8 + $0x7c] ss:$12 sps:$4 sm:$0xff]  }
 0x6b8   : > { %3350 = vmatprep.subr.bf16.mxu0 %v7368_v7  ;;  %4664 = vmatprep.subr.bf16.mxu1 %v8028_v24 }
 0x6bb   : > { %3351 = vmatpush1.bf16.msra.mxu0 %v7372_v9  ;;  %4665 = vmatpush3.bf16.msra.mxu1 %v7151_v3  ;;  %v7392_v3 = vld [vmem:[#allocation8 + $0x94] ss:$12 sps:$4 sm:$0xff]  }
 0x6bc   : > { %3352 = vmatprep.subr.bf16.mxu0 %v7376_v43  ;;  %4666 = vmatprep.subr.bf16.mxu1 %v8028_v24 }
 0x6bf   : > { %3353 = vmatpush1.bf16.msra.mxu0 %v7380_v53  ;;  %4667 = vmatpush3.bf16.msra.mxu1 %v7157_v12  ;;  %v5658_v12 = vld [vmem:[#allocation8 + $0x4] ss:$12 sps:$4 sm:$0xff]  }
 0x6c0   : > { %3354 = vmatprep.subr.bf16.mxu0 %v7384_v2  ;;  %4668 = vmatprep.subr.bf16.mxu1 %v8028_v24 }
 0x6c3   : > { %3355 = vmatpush1.bf16.msra.mxu0 %v7388_v10  ;;  %4669 = vmatpush3.bf16.msra.mxu1 %v7163_v18 }
 0x6c4   : > { %3356 = vmatprep.subr.bf16.mxu0 %v7392_v3  ;;  %4670 = vmatprep.subr.bf16.mxu1 %v8028_v24 }
 0x6c7   : > { %3357 = vmatpush1.bf16.msra.mxu0 %v7168_v39  ;;  %4671 = vmatpush3.bf16.msra.mxu1 %v7171_v44 }
 0x6c8   : > { %3358 = vmatprep.subr.bf16.mxu0 %v7174_v33  ;;  %4672 = vmatprep.subr.bf16.mxu1 %v8028_v24 }
 0x6cb   : > { %3359 = vmatpush1.bf16.msra.mxu0 %v7178_v41  ;;  %4673 = vmatpush3.bf16.msra.mxu1 %v7181_v58 }
 0x6cc   : > { %3780 = vmatprep.subr.bf16.mxu0 %v5658_v12  ;;  %4678 = vmatprep.subr.bf16.mxu1 %v8028_v24 }
 0x781   : > { %v2943_v18 = vpop.f32.mrb[36].mxu0  ;;  %v7403_v57 = vpop.f32.mrb[28].mxu1 }
 0x782   : > { %v2944_v20 = vadd.f32 %v2943_v18, %v8046_v13  ;;  %v2945_v39 = vpop.f32.mrb[37].mxu0  ;;  %v4656_v19 = vpop.f32.mrb[29].mxu1 }
 0x783   : > { %v2947_v44 = vpop.f32.mrb[38].mxu0  ;;  %v2987_v60 = vpop.f32.mrb[30].mxu1 }
 0x784   : > { %v2991_v33 = vrot.slane %v2944_v20, 3  ;;  %v2992_v42 = vrot.slane %v2944_v20, 4  ;;  %v2993_v63 = vrot.slane %v2944_v20, 5  ;;  %v2994_v55 = vrot.slane %v2944_v20, 6  ;;  %v2948_v41 = vpop.f32.mrb[39].mxu0  ;;  %v4657_v14 = vpop.f32.mrb[31].mxu1 }
 0x785   : > { %v2995_v58 = vrot.slane %v2944_v20, 7  ;;  %v2996_v59 = vrot.slane %v2944_v20, 1  ;;  %v2997_v40 = vrot.slane %v2944_v20, 2  ;;  %v3011_v0 = vadd.f32 %v2944_v20, %v6256_v25 }
 0x786   : > { %v3006_v38 = vadd.f32 %v2991_v33, %v8048_v52  ;;  %v3007_v35 = vadd.f32 %v2992_v42, %v8079_v6  ;;  %v3008_v29 = vadd.f32 %v2993_v63, %v8047_v37  ;;  %v3009_v48 = vadd.f32 %v2994_v55, %v8080_v61 }
 0x787   : > { %v3010_v54 = vadd.f32 %v2995_v58, %v6253_v22  ;;  %v3012_v16 = vadd.f32 %v2996_v59, %v6258_v27  ;;  %v3013_v26 = vadd.f32 %v2997_v40, %v6260_v28  ;;  %v3019_v12 = vsub.f32 0.0, %v3011_v0 }
 0x788   : > { %v3014_v18 = vsub.f32 0.0, %v3006_v38  ;;  %v3015_v19 = vsub.f32 0.0, %v3007_v35  ;;  %v3016_v44 = vsub.f32 0.0, %v3008_v29  ;;  %v3017_v60 = vsub.f32 0.0, %v3009_v48 }
 0x789   : > { %v3018_v20 = vsub.f32 0.0, %v3010_v54  ;;  %v3020_v41 = vsub.f32 0.0, %v3012_v16  ;;  %v3021_v33 = vsub.f32 0.0, %v3013_v26  ;;  %v3032_v14 = vmul.f32 1.442695, %v3019_v12 }
 0x78a   : > { %v3022_v42 = vmul.f32 1.442695, %v3014_v18  ;;  %v3024_v25 = vmul.f32 1.442695, %v3015_v19  ;;  %v3026_v63 = vmul.f32 1.442695, %v3016_v44  ;;  %v2946_v55 = vadd.f32 %v2945_v39, %v8033_v21 }
 0x78b   : > { %v3028_v61 = vmul.f32 1.442695, %v3017_v60  ;;  %5309 = vpow2.f32 %v3032_v14  ;;  %v3030_v58 = vmul.f32 1.442695, %v3018_v20  ;;  %v3034_v59 = vmul.f32 1.442695, %v3020_v41 }
 0x78c   : > { %5311 = vpow2.f32 %v3022_v42  ;;  %v3036_v40 = vmul.f32 1.442695, %v3021_v33  ;;  %v3063_v0 = vrot.slane %v2946_v55, 3  ;;  %v3064_v38 = vrot.slane %v2946_v55, 4 }
 0x78d   : > { %5313 = vpow2.f32 %v3024_v25  ;;  %v3065_v35 = vrot.slane %v2946_v55, 5  ;;  %v3066_v48 = vrot.slane %v2946_v55, 6  ;;  %v3067_v54 = vrot.slane %v2946_v55, 7 }
 0x78e   : > { %5315 = vpow2.f32 %v3026_v63  ;;  %v3078_v29 = vadd.f32 %v3063_v0, %v6245_v17  ;;  %v3079_v16 = vadd.f32 %v3064_v38, %v6275_v45  ;;  %v3068_v44 = vrot.slane %v2946_v55, 1 }
 0x78f   : > { %5317 = vpow2.f32 %v3028_v61  ;;  %v3080_v25 = vadd.f32 %v3065_v35, %v8081_v34  ;;  %v3081_v61 = vadd.f32 %v3066_v48, %v8082_v1  ;;  %v3069_v41 = vrot.slane %v2946_v55, 2 }
 0x790   : > { %5319 = vpow2.f32 %v3030_v58  ;;  %v3086_v39 = vsub.f32 0.0, %v3078_v29  ;;  %v3082_v33 = vadd.f32 %v3067_v54, %v8083_v50  ;;  %v3083_v63 = vadd.f32 %v2946_v55, %v6310_v4  ;;  %v8099_v29 = vld [vmem:[#allocation24_spill] sm:$0xff] }
 0x791   : > { %5321 = vpow2.f32 %v3034_v59  ;;  %v3087_v58 = vsub.f32 0.0, %v3079_v16  ;;  %v3088_v0 = vsub.f32 0.0, %v3080_v25  ;;  %v3084_v48 = vadd.f32 %v3068_v44, %v8099_v29 }
 0x792   : > { %5323 = vpow2.f32 %v3036_v40  ;;  %v3094_v12 = vmul.f32 1.442695, %v3086_v39  ;;  %v3089_v39 = vsub.f32 0.0, %v3081_v61  ;;  %v3090_v54 = vsub.f32 0.0, %v3082_v33 }
 0x793   : > { %v3091_v55 = vsub.f32 0.0, %v3083_v63  ;;  %v3096_v16 = vmul.f32 1.442695, %v3087_v58  ;;  %v3098_v25 = vmul.f32 1.442695, %v3088_v0  ;;  %v3092_v44 = vsub.f32 0.0, %v3084_v48 }
 0x794   : > { %5325 = vpow2.f32 %v3094_v12  ;;  %v8100_v12 = vld [vmem:[#allocation25_spill] sm:$0xff]  ;;  %v3100_v61 = vmul.f32 1.442695, %v3089_v39 }
 0x795   : > { %v5310_v26 = vpop.eup %5309  ;;  %v3104_v33 = vmul.f32 1.442695, %v3091_v55  ;;  %v3106_v63 = vmul.f32 1.442695, %v3092_v44 }
 0x796   : > { %v5312_v18 = vpop.eup %5311  ;;  %v3043_v19 = vadd.f32 1.0, %v5310_v26 }
 0x797   : > { %v5314_v60 = vpop.eup %5313  ;;  %v3038_v20 = vadd.f32 1.0, %v5312_v18 }
 0x798   : > { %v5316_v14 = vpop.eup %5315  ;;  %v3039_v42 = vadd.f32 1.0, %v5314_v60  ;;  %5327 = vrcp.f32 %v3043_v19  ;;  %v3085_v60 = vadd.f32 %v3069_v41, %v8100_v12 }
 0x799   : > { %v5318_v59 = vpop.eup %5317  ;;  %v3040_v40 = vadd.f32 1.0, %v5316_v14  ;;  %5329 = vrcp.f32 %v3038_v20  ;;  %v8101_v20 = vld [vmem:[#allocation23_spill] sm:$0xff] }
 0x79a   : > { %v5320_v38 = vpop.eup %5319  ;;  %v3041_v35 = vadd.f32 1.0, %v5318_v59  ;;  %5331 = vrcp.f32 %v3039_v42  ;;  %v2985_v42 = vadd.f32 %v7403_v57, %v8101_v20  ;;  %v3102_v59 = vmul.f32 1.442695, %v3090_v54 }
 0x79b   : > { %v5322_v26 = vpop.eup %5321  ;;  %v3042_v18 = vadd.f32 1.0, %v5320_v38  ;;  %5333 = vrcp.f32 %v3040_v40  ;;  %v3093_v40 = vsub.f32 0.0, %v3085_v60 }
 0x79c   : > { %v5324_v19 = vpop.eup %5323  ;;  %v3044_v50 = vadd.f32 1.0, %v5322_v26  ;;  %5335 = vrcp.f32 %v3041_v35  ;;  %v3135_v35 = vrot.slane %v2985_v42, 3  ;;  %v3136_v0 = vrot.slane %v2985_v42, 4 }
 0x79d   : > { %v3045_v14 = vadd.f32 1.0, %v5324_v19  ;;  %5337 = vrcp.f32 %v3042_v18  ;;  %v3108_v18 = vmul.f32 1.442695, %v3093_v40  ;;  %v3137_v48 = vrot.slane %v2985_v42, 5 }
 0x79e   : > { %5339 = vrcp.f32 %v3044_v50  ;;  %v5326_v41 = vpop.eup %5325  ;;  %v3138_v60 = vrot.slane %v2985_v42, 6  ;;  %v3141_v12 = vrot.slane %v2985_v42, 2 }
 0x79f   : > { %5341 = vrcp.f32 %v3045_v14  ;;  %v3110_v58 = vadd.f32 1.0, %v5326_v41  ;;  %v3140_v41 = vrot.slane %v2985_v42, 1 }
 0x7a0   : > { %5343 = vpow2.f32 %v3096_v16  ;;  %v3139_v16 = vrot.slane %v2985_v42, 7 }
 0x7a1   : > { %5345 = vpow2.f32 %v3098_v25  ;;  %v8102_v25 = vld [vmem:[#allocation27_spill] sm:$0xff] }
 0x7a2   : > { %v5328_v38 = vpop.eup %5327  ;;  %5347 = vpow2.f32 %v3100_v61 }
 0x7a3   : > { %v5330_v26 = vpop.eup %5329  ;;  %v3155_v50 = vmul.f32 %v5328_v38, %v2985_v42  ;;  %5349 = vpow2.f32 %v3102_v59  ;;  %v8103_v38 = vld [vmem:[#allocation29_spill] sm:$0xff] }
 0x7a4   : > { %v5332_v57 = vpop.eup %5331  ;;  %v3150_v39 = vmul.f32 %v5330_v26, %v3135_v35  ;;  %5351 = vpow2.f32 %v3104_v33 }
 0x7a5   : > { %v5334_v54 = vpop.eup %5333  ;;  %v3151_v19 = vmul.f32 %v5332_v57, %v3136_v0  ;;  %5353 = vrcp.f32 %v3110_v58 }
 0x7a6   : > { %v5336_v55 = vpop.eup %5335  ;;  %v3152_v14 = vmul.f32 %v5334_v54, %v3137_v48  ;;  %v3158_v61 = vadd.f32 %v3150_v39, %v8102_v25  ;;  %5355 = vpow2.f32 %v3106_v63 }
 0x7a7   : > { %v5338_v44 = vpop.eup %5337  ;;  %v3153_v20 = vmul.f32 %v5336_v55, %v3138_v60  ;;  %v3159_v59 = vadd.f32 %v3151_v19, %v8103_v38  ;;  %5357 = vpow2.f32 %v3108_v18  ;;  %v8104_v19 = vld [vmem:[#allocation31_spill] sm:$0xff] }
 0x7a8   : > { %v5340_v40 = vpop.eup %5339  ;;  %v3154_v35 = vmul.f32 %v5338_v44, %v3139_v16  ;;  %v3160_v33 = vadd.f32 %v3152_v14, %v8068_v30  ;;  %v3166_v26 = vmul.f32 -2.0, %v3158_v61  ;;  %v8105_v14 = vld [vmem:[#allocation33_spill] sm:$0xff] }
 0x7a9   : > { %v5342_v0 = vpop.eup %5341  ;;  %v3167_v58 = vmul.f32 -2.0, %v3159_v59  ;;  %v3156_v57 = vmul.f32 %v5340_v40, %v3140_v41  ;;  %v3161_v48 = vadd.f32 %v3153_v20, %v8088_v8  ;;  %v3163_v61 = vadd.f32 %v3155_v50, %v8105_v14  ;;  %v8106_v20 = vld [vmem:[#allocation30_spill] sm:$0xff] }
 0x7aa   : > { %v5344_v29 = vpop.eup %5343  ;;  %v3168_v39 = vmul.f32 -2.0, %v3160_v33  ;;  %v3174_v63 = vmul.f32 1.442695, %v3166_v26  ;;  %v3157_v54 = vmul.f32 %v5342_v0, %v3141_v12  ;;  %v3162_v18 = vadd.f32 %v3154_v35, %v8104_v19 }
 0x7ab   : > { %v5346_v25 = vpop.eup %5345  ;;  %v3176_v60 = vmul.f32 1.442695, %v3167_v58  ;;  %v3111_v55 = vadd.f32 1.0, %v5344_v29  ;;  %v3246_v41 = vrot.slane %v7256_v46, 7  ;;  %v3164_v40 = vadd.f32 %v3156_v57, %v8106_v20  ;;  %v8107_v29 = vld [vmem:[#allocation32_spill] sm:$0xff] }
 0x7ac   : > { %v5348_v38 = vpop.eup %5347  ;;  %5359 = vpow2.f32 %v3174_v63  ;;  %v3178_v42 = vmul.f32 1.442695, %v3168_v39  ;;  %v3112_v16 = vadd.f32 1.0, %v5346_v25  ;;  %v3169_v12 = vmul.f32 -2.0, %v3161_v48 }
 0x7ad   : > { %v5350_v44 = vpop.eup %5349  ;;  %5361 = vpow2.f32 %v3176_v60  ;;  %v3113_v59 = vadd.f32 1.0, %v5348_v38  ;;  %v3165_v0 = vadd.f32 %v3157_v54, %v8107_v29  ;;  %v3170_v25 = vmul.f32 -2.0, %v3162_v18 }
 0x7ae   : > { %v5352_v33 = vpop.eup %5351  ;;  %5363 = vpow2.f32 %v3178_v42  ;;  %v3114_v26 = vadd.f32 1.0, %v5350_v44  ;;  %v3171_v50 = vmul.f32 -2.0, %v3163_v61  ;;  %v3172_v57 = vmul.f32 -2.0, %v3164_v40 }
 0x7af   : > { %v7434_v35 = vpop.eup %5353  ;;  %5365 = vrcp.f32 %v3111_v55  ;;  %v3115_v58 = vadd.f32 1.0, %v5352_v33  ;;  %v3173_v60 = vmul.f32 -2.0, %v3165_v0  ;;  %v3180_v42 = vmul.f32 1.442695, %v3169_v12  ;;  %v8109_v0 = vld [vmem:[#allocation14_spill] sm:$0xff] }
 0x7b0   : > { %v5356_v39 = vpop.eup %5355  ;;  %5367 = vrcp.f32 %v3112_v16  ;;  %v7437_v46 = vmul.f32 %v7434_v35, %v3246_v41  ;;  %v3182_v54 = vmul.f32 1.442695, %v3170_v25  ;;  %v3184_v55 = vmul.f32 1.442695, %v3171_v50 }
 0x7b1   : > { %v5358_v38 = vpop.eup %5357  ;;  %v3116_v63 = vadd.f32 1.0, %v5356_v39  ;;  %5369 = vrcp.f32 %v3113_v59  ;;  %v3186_v18 = vmul.f32 1.442695, %v3172_v57  ;;  %v3188_v16 = vmul.f32 1.442695, %v3173_v60  ;;  %v8108_v39 = vld [vmem:[#allocation15_spill] sm:$0xff] }
 0x7b2   : > { %v3117_v48 = vadd.f32 1.0, %v5358_v38  ;;  %5371 = vrcp.f32 %v3114_v26  ;;  %v3247_v59 = vrot.slane %v8108_v39, 7  ;;  %v3248_v12 = vrot.slane %v8109_v0, 7 }
 0x7b3   : > { %5373 = vrcp.f32 %v3115_v58  ;;  %v3249_v50 = vrot.slane %v7292_v32, 7  ;;  %v3250_v57 = vrot.slane %v7295_v31, 7  ;;  %v3252_v32 = vrot.slane %v7305_v36, 7 }
 0x7b4   : > { %5375 = vrcp.f32 %v3116_v63  ;;  %v3253_v31 = vrot.slane %v7312_v11, 7 }
 0x7b5   : > { %5377 = vrcp.f32 %v3117_v48 }
 0x7b6   : > { %v5360_v44 = vpop.eup %5359  ;;  %5379 = vpow2.f32 %v3180_v42  ;;  %v3251_v42 = vrot.slane %v7299_v62, 7 }
 0x7b7   : > { %v5362_v61 = vpop.eup %5361  ;;  %5381 = vpow2.f32 %v3182_v54  ;;  %v3190_v41 = vadd.f32 1.0, %v5360_v44 }
 0x7b8   : > { %v5364_v33 = vpop.eup %5363  ;;  %5383 = vpow2.f32 %v3184_v55  ;;  %v3191_v40 = vadd.f32 1.0, %v5362_v61 }
 0x7b9   : > { %v5366_v26 = vpop.eup %5365  ;;  %5385 = vpow2.f32 %v3186_v18  ;;  %v3192_v58 = vadd.f32 1.0, %v5364_v33 }
 0x7ba   : > { %v5368_v25 = vpop.eup %5367  ;;  %5387 = vpow2.f32 %v3188_v16  ;;  %v3263_v38 = vmul.f32 %v5366_v26, %v3247_v59  ;;  %v3223_v19 = vsub.f32 1.0, %v5366_v26 }
 0x7bb   : > { %v7442_v63 = vpop.eup %5369  ;;  %5389 = vrcp.f32 %v3190_v41  ;;  %v3264_v48 = vmul.f32 %v5368_v25, %v3248_v12 }
 0x7bc   : > { %v7445_v60 = vpop.eup %5371  ;;  %5391 = vrcp.f32 %v3191_v40  ;;  %v7449_v54 = vmul.f32 %v7442_v63, %v3249_v50 }
 0x7bd   : > { %v7451_v55 = vpop.eup %5373  ;;  %5393 = vrcp.f32 %v3192_v58  ;;  %v7455_v18 = vmul.f32 %v7445_v60, %v3250_v57 }
 0x7be   : > { %v7457_v44 = vpop.eup %5375  ;;  %v7461_v16 = vmul.f32 %v7451_v55, %v3251_v42  ;;  %v3227_v26 = vsub.f32 1.0, %v7451_v55 }
 0x7bf   : > { %v7463_v62 = vpop.eup %5377  ;;  %v7466_v61 = vmul.f32 %v7457_v44, %v3252_v32 }
 0x7c0   : > { %v5380_v41 = vpop.eup %5379  ;;  %v7469_v33 = vmul.f32 %v7463_v62, %v3253_v31 }
 0x7c1   : > { %v5382_v36 = vpop.eup %5381  ;;  %v3193_v39 = vadd.f32 1.0, %v5380_v41  ;;  %v3222_v41 = vsub.f32 1.0, %v7434_v35 }
 0x7c2   : > { %v5384_v59 = vpop.eup %5383  ;;  %v3194_v40 = vadd.f32 1.0, %v5382_v36 }
 0x7c3   : > { %v5386_v0 = vpop.eup %5385  ;;  %v3195_v12 = vadd.f32 1.0, %v5384_v59  ;;  %5395 = vrcp.f32 %v3193_v39  ;;  %v3224_v39 = vsub.f32 1.0, %v5368_v25  ;;  %v3228_v25 = vsub.f32 1.0, %v7457_v44 }
 0x7c4   : > { %v5388_v11 = vpop.eup %5387  ;;  %v3196_v58 = vadd.f32 1.0, %v5386_v0  ;;  %5397 = vrcp.f32 %v3194_v40 }
 0x7c5   : > { %v5390_v50 = vpop.eup %5389  ;;  %v3197_v57 = vadd.f32 1.0, %v5388_v11  ;;  %5399 = vrcp.f32 %v3195_v12 }
 0x7c6   : > { %v5392_v42 = vpop.eup %5391  ;;  %v3199_v32 = vmul.f32 2.0, %v5390_v50  ;;  %5401 = vrcp.f32 %v3196_v58  ;;  %v3225_v58 = vsub.f32 1.0, %v7442_v63  ;;  %v3229_v63 = vsub.f32 1.0, %v7463_v62 }
 0x7c7   : > { %v5394_v29 = vpop.eup %5393  ;;  %v3201_v20 = vmul.f32 2.0, %v5392_v42  ;;  %5403 = vrcp.f32 %v3197_v57 }
 0x7c8   : > { %v3203_v31 = vmul.f32 2.0, %v5394_v29  ;;  %v4414_v14 = vadd.f32 -1.0, %v3199_v32  ;;  %v3226_v29 = vsub.f32 1.0, %v7445_v60  ;;  %v3291_v32 = vld [vmem:[%s6052_s7 + $0x4] sm:$0x4] }
 0x7c9   : > { %v4415_v36 = vadd.f32 -1.0, %v3201_v20  ;;  %v5659_v60 = vld [vmem:[#allocation8 + $0x20] ss:$12 sps:$4 sm:$0xff]  }
 0x7ca   : > { %v4416_v59 = vadd.f32 -1.0, %v3203_v31  ;;  %v3230_v8 = vmul.f32 %v4414_v14, %v3222_v41 }
 0x7cb   : > { %v3231_v0 = vmul.f32 %v4415_v36, %v3223_v19 }
 0x7cc   : > { %v3232_v40 = vmul.f32 %v4416_v59, %v3224_v39  ;;  %v7473_v11 = vadd.f32 %v7437_v46, %v3230_v8  ;;  %v3294_v39 = vld [vmem:[%s6052_s7 + $0x8] sm:$0x4] }
 0x7cd   : > { %v5396_v12 = vpop.eup %5395  ;;  %v7477_v50 = vadd.f32 %v3263_v38, %v3231_v0 }
 0x7ce   : > { %v5398_v35 = vpop.eup %5397  ;;  %v3205_v20 = vmul.f32 2.0, %v5396_v12  ;;  %v7480_v14 = vadd.f32 %v3264_v48, %v3232_v40  ;;  %v3278_v8 = vpack.c.bf16 %v7473_v11, %v7473_v11  ;;  %v3288_v48 = vld [vmem:[%s6052_s7] sm:$0x4] }
 0x7cf   : > { %8110 = vst [vmem:[#allocation36_spill] sm:$0xff] %v7477_v50  ;;  %v5400_v19 = vpop.eup %5399  ;;  %v3207_v46 = vmul.f32 2.0, %v5398_v35  ;;  %v3279_v38 = vpack.c.bf16 %v7477_v50, %v7477_v50 }
 0x7d0   : > { %8111 = vst [vmem:[#allocation26_spill] sm:$0xff] %v7480_v14  ;;  %v5402_v55 = vpop.eup %5401  ;;  %v3209_v57 = vmul.f32 2.0, %v5400_v19  ;;  %v4417_v42 = vadd.f32 -1.0, %v3205_v20  ;;  %v3280_v44 = vpack.c.bf16 %v7480_v14, %v7480_v14  ;;  %v3289_v62 = vsel %vm7490_vm13, %v3278_v8, %v3288_v48 }
 0x7d1   : > { %v5404_v31 = vpop.eup %5403  ;;  %v3211_v41 = vmul.f32 2.0, %v5402_v55  ;;  %v4418_v36 = vadd.f32 -1.0, %v3207_v46  ;;  %3290 = vst [vmem:[%s6052_s7] sm:$0x4] %v3289_v62  ;;  %v3292_v59 = vsel %vm7490_vm13, %v3279_v38, %v3291_v32  ;;  %v3320_v0 = vunpack.c.l.b16 %v3278_v8 }
 0x7d2   : > { %v3213_v40 = vmul.f32 2.0, %v5404_v31  ;;  %v4419_v12 = vadd.f32 -1.0, %v3209_v57  ;;  %v3233_v35 = vmul.f32 %v4417_v42, %v3225_v58  ;;  %3293 = vst [vmem:[%s6052_s7 + $0x4] sm:$0x4] %v3292_v59  ;;  %v3295_v20 = vsel %vm7490_vm13, %v3280_v44, %v3294_v39 }
 0x7d3   : > { %v4420_v19 = vadd.f32 -1.0, %v3211_v41  ;;  %v3234_v48 = vmul.f32 %v4418_v36, %v3226_v29  ;;  %3296 = vst [vmem:[%s6052_s7 + $0x8] sm:$0x4] %v3295_v20  ;;  %v3321_v14 = vunpack.c.l.b16 %v3279_v38  ;;  %v3322_v55 = vunpack.c.l.b16 %v3280_v44 }
 0x7d4   : > { %v4421_v46 = vadd.f32 -1.0, %v3213_v40  ;;  %v3235_v62 = vmul.f32 %v4419_v12, %v3227_v26  ;;  %v7509_v50 = vadd.f32 %v7449_v54, %v3233_v35  ;;  %v3328_v8 = vrot.slane %v3320_v0, 5  ;;  %v3306_v12 = vld [vmem:[%s6052_s7 + $0x18] sm:$0x4] }
 0x7d5   : > { %v3236_v32 = vmul.f32 %v4420_v19, %v3228_v25  ;;  %v7512_v58 = vadd.f32 %v7455_v18, %v3234_v48  ;;  %v3329_v57 = vrot.slane %v3321_v14, 4  ;;  %v3331_v42 = vrot.slane %v3322_v55, 3  ;;  %v3297_v18 = vld [vmem:[%s6052_s7 + $0xc] sm:$0x4]  ;;  %v3309_v19 = vld [vmem:[%s6052_s7 + $0x1c] sm:$0x4] }
 0x7d6   : > { %v3237_v29 = vmul.f32 %v4421_v46, %v3229_v63  ;;  %v7515_v31 = vadd.f32 %v7461_v16, %v3235_v62  ;;  %v3281_v26 = vpack.c.bf16 %v7509_v50, %v7509_v50 }
 0x7d7   : > { %v7520_v54 = vadd.f32 %v7466_v61, %v3236_v32  ;;  %v3282_v25 = vpack.c.bf16 %v7512_v58, %v7512_v58  ;;  %v3330_v14 = vsel %vm1145_vm4, %v3329_v57, %v3328_v8  ;;  %v3300_v61 = vld [vmem:[%s6052_s7 + $0x10] sm:$0x4] }
 0x7d8   : > { %v7527_v38 = vadd.f32 %v7469_v33, %v3237_v29  ;;  %v3283_v16 = vpack.c.bf16 %v7515_v31, %v7515_v31  ;;  %v3298_v63 = vsel %vm7490_vm13, %v3281_v26, %v3297_v18  ;;  %v3323_v44 = vunpack.c.l.b16 %v3281_v26  ;;  %v3303_v33 = vld [vmem:[%s6052_s7 + $0x14] sm:$0x4] }
 0x7d9   : > { %v3284_v41 = vpack.c.bf16 %v7520_v54, %v7520_v54  ;;  %3299 = vst [vmem:[%s6052_s7 + $0xc] sm:$0x4] %v3298_v63  ;;  %v3301_v36 = vsel %vm7490_vm13, %v3282_v25, %v3300_v61  ;;  %v3324_v59 = vunpack.c.l.b16 %v3282_v25  ;;  %v3332_v39 = vsel %vm1148_vm6, %v3331_v42, %v3330_v14 }
 0x7da   : > { %v3285_v0 = vpack.c.bf16 %v7527_v38, %v7527_v38  ;;  %3302 = vst [vmem:[%s6052_s7 + $0x10] sm:$0x4] %v3301_v36  ;;  %v3304_v40 = vsel %vm7490_vm13, %v3283_v16, %v3303_v33  ;;  %v3333_v35 = vrot.slane %v3323_v44, 2  ;;  %v3325_v62 = vunpack.c.l.b16 %v3283_v16 }
 0x7db   : > { %3305 = vst [vmem:[%s6052_s7 + $0x14] sm:$0x4] %v3304_v40  ;;  %v3307_v20 = vsel %vm7490_vm13, %v3284_v41, %v3306_v12  ;;  %v3326_v48 = vunpack.c.l.b16 %v3284_v41  ;;  %v3335_v55 = vrot.slane %v3324_v59, 1 }
 0x7dc   : > { %3308 = vst [vmem:[%s6052_s7 + $0x18] sm:$0x4] %v3307_v20  ;;  %v3310_v46 = vsel %vm7490_vm13, %v3285_v0, %v3309_v19  ;;  %v3327_v8 = vunpack.c.l.b16 %v3285_v0  ;;  %v3334_v32 = vsel %vm1151_vm7, %v3333_v35, %v3332_v39  ;;  %v8114_v19 = vld [vmem:[#allocation18_spill] sm:$0xff] }
 0x7dd   : > { %3311 = vst [vmem:[%s6052_s7 + $0x1c] sm:$0x4] %v3310_v46  ;;  %v3336_v57 = vsel %vm1154_vm8, %v3335_v55, %v3334_v32  ;;  %v3338_v42 = vrot.slane %v3326_v48, 7  ;;  %v8115_v46 = vld [vmem:[#allocation19_spill] sm:$0xff] }
 0x7de   : > { %v3337_v29 = vsel %vm1157_vm9, %v3325_v62, %v3336_v57  ;;  %v3340_v26 = vrot.slane %v3327_v8, 6 }
 0x7df   : > { %v3339_v25 = vsel %vm1160_vm10, %v3338_v42, %v3337_v29 }
 0x7e0   : > { %v3341_v18 = vsel %vm1163_vm11, %v3340_v26, %v3339_v25 }
 0x7e1   : > { %v3342_v14 = vpack.c.b16 %v3341_v18, %v3341_v18 }
 0x7e3   : > { %3377 = vmatmul.mubr.bf16.vlgmr.msra.gmra.mrb[40].mxu0 %v3342_v14  ;;  %4675 = vmatmul.mubr.bf16.vlgmr.msra.gmra.mrb[32].mxu1 %v3342_v14 }
 0x7e4   : > { %3781 = vmatpush1.bf16.msra.mxu0 %v7343_v51  ;;  %4679 = vmatpush3.bf16.msra.mxu1 %v7346_v23  ;;  %v5660_v51 = vld [vmem:[#allocation8 + $0x38] ss:$12 sps:$4 sm:$0xff]   ;;  %v5662_v23 = vld [vmem:[#allocation8 + $0x68] ss:$12 sps:$4 sm:$0xff]  }
 0x7e5   : > { %3782 = vmatprep.subr.bf16.mxu0 %v7349_v49  ;;  %4680 = vmatprep.subr.bf16.mxu1 %v8028_v24  ;;  %v5663_v49 = vld [vmem:[#allocation8 + $0x80] ss:$12 sps:$4 sm:$0xff]  }
 0x7e6   : > { %3812 = vmatprep.mubr.bf16.mxu0 %v8029_v47  ;;  %4694 = vmatprep.mubr.msk.bf16.mxu1 %vm5838_vm1, %v8028_v24  ;;  %v5661_v47 = vld [vmem:[#allocation8 + $0x50] ss:$12 sps:$4 sm:$0xff]   ;;  %vm3722_vm1 = vsmask.f32 3328 }
 0x7e7   : > { %vm7672_vm14 = vmand %vm1151_vm7, %vm3722_vm1 }
 0x7e8   : > { %3783 = vmatpush1.bf16.msra.mxu0 %v7356_v5  ;;  %4681 = vmatpush3.bf16.msra.mxu1 %v5659_v60  ;;  %v5664_v5 = vld [vmem:[#allocation8 + $0x90] ss:$12 sps:$4 sm:$0xff]  }
 0x7e9   : > { %3784 = vmatprep.subr.bf16.mxu0 %v7360_v56  ;;  %4682 = vmatprep.subr.bf16.mxu1 %v8028_v24  ;;  %v5665_v56 = vld [vmem:[#allocation8 + $0x98] ss:$12 sps:$4 sm:$0xff]  }
 0x7ec   : > { %3785 = vmatpush1.bf16.msra.mxu0 %v7364_v15  ;;  %4683 = vmatpush3.bf16.msra.mxu1 %v5660_v51  ;;  %v5666_v15 = vld [vmem:[#allocation8 + $0xac] ss:$12 sps:$4 sm:$0xff]  }
 0x7ed   : > { %3786 = vmatprep.subr.bf16.mxu0 %v7368_v7  ;;  %4684 = vmatprep.subr.bf16.mxu1 %v8028_v24  ;;  %v5667_v7 = vld [vmem:[#allocation8 + $0xa8] ss:$12 sps:$4 sm:$0xff]  }
 0x7f0   : > { %3787 = vmatpush1.bf16.msra.mxu0 %v7372_v9  ;;  %4685 = vmatpush3.bf16.msra.mxu1 %v5661_v47  ;;  %v5668_v9 = vld [vmem:[#allocation8 + $0xb0] ss:$12 sps:$4 sm:$0xff]  }
 0x7f1   : > { %3788 = vmatprep.subr.bf16.mxu0 %v7376_v43  ;;  %4686 = vmatprep.subr.bf16.mxu1 %v8028_v24 }
 0x7f4   : > { %3789 = vmatpush1.bf16.msra.mxu0 %v7380_v53  ;;  %4687 = vmatpush3.bf16.msra.mxu1 %v5662_v23 }
 0x7f5   : > { %3790 = vmatprep.subr.bf16.mxu0 %v7384_v2  ;;  %4688 = vmatprep.subr.bf16.mxu1 %v8028_v24 }
 0x7f8   : > { %3791 = vmatpush1.bf16.msra.mxu0 %v7388_v10  ;;  %4689 = vmatpush3.bf16.msra.mxu1 %v5663_v49 }
 0x7f9   : > { %3792 = vmatprep.subr.bf16.mxu0 %v7392_v3  ;;  %4690 = vmatprep.subr.bf16.mxu1 %v8028_v24 }
 0x7fc   : > { %3793 = vmatpush1.bf16.msra.mxu0 %v5664_v5  ;;  %4691 = vmatpush3.bf16.msra.mxu1 %v5665_v56 }
 0x7fd   : > { %3794 = vmatprep.subr.bf16.mxu0 %v5666_v15  ;;  %4692 = vmatprep.subr.bf16.mxu1 %v8028_v24 }
 0x800   : > { %3795 = vmatpush1.bf16.msra.mxu0 %v5667_v7  ;;  %4693 = vmatpush3.bf16.msra.mxu1 %v5668_v9 }
 0x8b6   : > { %v3378_v43 = vpop.f32.mrb[40].mxu0  ;;  %v7583_v53 = vpop.f32.mrb[32].mxu1 }
 0x8b7   : > { %v3379_v2 = vadd.f32 %v3378_v43, %v8046_v13  ;;  %v3380_v10 = vpop.f32.mrb[41].mxu0  ;;  %v4676_v3 = vpop.f32.mrb[33].mxu1 }
 0x8b8   : > { %v3382_v16 = vpop.f32.mrb[42].mxu0  ;;  %v3422_v63 = vpop.f32.mrb[34].mxu1  ;;  %v3381_v49 = vadd.f32 %v3380_v10, %v8033_v21 }
 0x8b9   : > { %v3426_v61 = vrot.slane %v3379_v2, 2  ;;  %v3427_v44 = vrot.slane %v3379_v2, 3  ;;  %v3428_v41 = vrot.slane %v3379_v2, 4  ;;  %v3429_v36 = vrot.slane %v3379_v2, 5  ;;  %v3383_v33 = vpop.f32.mrb[43].mxu0  ;;  %v4677_v59 = vpop.f32.mrb[35].mxu1 }
 0x8ba   : > { %v3430_v24 = vrot.slane %v3379_v2, 6  ;;  %v3431_v39 = vrot.slane %v3379_v2, 7  ;;  %v3432_v0 = vrot.slane %v3379_v2, 1  ;;  %v3447_v40 = vadd.f32 %v3379_v2, %v6258_v27 }
 0x8bb   : > { %v3441_v12 = vadd.f32 %v3426_v61, %v8048_v52  ;;  %v3442_v35 = vadd.f32 %v3427_v44, %v8079_v6  ;;  %v3443_v20 = vadd.f32 %v3428_v41, %v8047_v37  ;;  %v3444_v48 = vadd.f32 %v3429_v36, %v8114_v19 }
 0x8bc   : > { %v3445_v55 = vadd.f32 %v3430_v24, %v6253_v22  ;;  %v3446_v62 = vadd.f32 %v3431_v39, %v8115_v46  ;;  %v3448_v8 = vadd.f32 %v3432_v0, %v6260_v28  ;;  %v3455_v32 = vsub.f32 0.0, %v3447_v40 }
 0x8bd   : > { %v3449_v57 = vsub.f32 0.0, %v3441_v12  ;;  %v3450_v42 = vsub.f32 0.0, %v3442_v35  ;;  %v3451_v29 = vsub.f32 0.0, %v3443_v20  ;;  %v3452_v26 = vsub.f32 0.0, %v3444_v48  ;;  %v8116_v35 = vld [vmem:[#allocation22_spill] sm:$0xff] }
 0x8be   : > { %v3453_v25 = vsub.f32 0.0, %v3445_v55  ;;  %v3454_v18 = vsub.f32 0.0, %v3446_v62  ;;  %v3456_v14 = vsub.f32 0.0, %v3448_v8  ;;  %v3469_v60 = vmul.f32 1.442695, %v3455_v32 }
 0x8bf   : > { %v3457_v51 = vmul.f32 1.442695, %v3449_v57  ;;  %v3459_v47 = vmul.f32 1.442695, %v3450_v42  ;;  %v3461_v23 = vmul.f32 1.442695, %v3451_v29 }
 0x8c0   : > { %v3463_v5 = vmul.f32 1.442695, %v3452_v26  ;;  %5405 = vpow2.f32 %v3469_v60  ;;  %v3465_v56 = vmul.f32 1.442695, %v3453_v25  ;;  %v3467_v15 = vmul.f32 1.442695, %v3454_v18 }
 0x8c1   : > { %5407 = vpow2.f32 %v3457_v51  ;;  %v3471_v7 = vmul.f32 1.442695, %v3456_v14  ;;  %v3498_v9 = vrot.slane %v3381_v49, 2  ;;  %v3499_v43 = vrot.slane %v3381_v49, 3  ;;  %v8117_v42 = vld [vmem:[#allocation24_spill] sm:$0xff] }
 0x8c2   : > { %5409 = vpow2.f32 %v3459_v47  ;;  %v3500_v2 = vrot.slane %v3381_v49, 4  ;;  %v3501_v16 = vrot.slane %v3381_v49, 5  ;;  %v3502_v63 = vrot.slane %v3381_v49, 6 }
 0x8c3   : > { %5411 = vpow2.f32 %v3461_v23  ;;  %v3513_v3 = vadd.f32 %v3498_v9, %v6245_v17  ;;  %v3503_v61 = vrot.slane %v3381_v49, 7  ;;  %v3514_v44 = vadd.f32 %v3499_v43, %v6275_v45  ;;  %v8118_v23 = vld [vmem:[#allocation25_spill] sm:$0xff] }
 0x8c4   : > { %5413 = vpow2.f32 %v3463_v5  ;;  %v3515_v36 = vadd.f32 %v3500_v2, %v8081_v34  ;;  %v3516_v39 = vadd.f32 %v3501_v16, %v8082_v1  ;;  %v3504_v12 = vrot.slane %v3381_v49, 1 }
 0x8c5   : > { %5415 = vpow2.f32 %v3465_v56  ;;  %v3521_v10 = vsub.f32 0.0, %v3513_v3  ;;  %v3517_v20 = vadd.f32 %v3502_v63, %v8116_v35  ;;  %v3518_v62 = vadd.f32 %v3503_v61, %v6310_v4  ;;  %v8119_v3 = vld [vmem:[#allocation23_spill] sm:$0xff] }
 0x8c6   : > { %5417 = vpow2.f32 %v3467_v15  ;;  %v3522_v8 = vsub.f32 0.0, %v3514_v44  ;;  %v3519_v29 = vadd.f32 %v3381_v49, %v8117_v42  ;;  %v3523_v26 = vsub.f32 0.0, %v3515_v36 }
 0x8c7   : > { %5419 = vpow2.f32 %v3471_v7  ;;  %v3529_v33 = vmul.f32 1.442695, %v3521_v10  ;;  %v3524_v14 = vsub.f32 0.0, %v3516_v39  ;;  %v3525_v47 = vsub.f32 0.0, %v3517_v20 }
 0x8c8   : > { %v3520_v5 = vadd.f32 %v3504_v12, %v8118_v23  ;;  %v3526_v7 = vsub.f32 0.0, %v3518_v62  ;;  %v3531_v9 = vmul.f32 1.442695, %v3522_v8  ;;  %v3527_v2 = vsub.f32 0.0, %v3519_v29 }
 0x8c9   : > { %5421 = vpow2.f32 %v3529_v33  ;;  %v3533_v49 = vmul.f32 1.442695, %v3523_v26  ;;  %v3420_v16 = vadd.f32 %v7583_v53, %v8119_v3  ;;  %v3535_v63 = vmul.f32 1.442695, %v3524_v14  ;;  %v8120_v26 = vld [vmem:[#allocation27_spill] sm:$0xff] }
 0x8ca   : > { %v5406_v41 = vpop.eup %5405  ;;  %v3537_v10 = vmul.f32 1.442695, %v3525_v47  ;;  %v3528_v61 = vsub.f32 0.0, %v3520_v5  ;;  %v3539_v44 = vmul.f32 1.442695, %v3526_v7 }
 0x8cb   : > { %v5408_v59 = vpop.eup %5407  ;;  %v3479_v24 = vadd.f32 1.0, %v5406_v41  ;;  %v3541_v36 = vmul.f32 1.442695, %v3527_v2  ;;  %v3572_v53 = vrot.slane %v3420_v16, 4  ;;  %v3573_v62 = vrot.slane %v3420_v16, 5 }
 0x8cc   : > { %v5410_v0 = vpop.eup %5409  ;;  %v3473_v40 = vadd.f32 1.0, %v5408_v59  ;;  %v3570_v59 = vrot.slane %v3420_v16, 2  ;;  %v3575_v14 = vrot.slane %v3420_v16, 7 }
 0x8cd   : > { %v5412_v48 = vpop.eup %5411  ;;  %v3474_v55 = vadd.f32 1.0, %v5410_v0  ;;  %5423 = vrcp.f32 %v3479_v24  ;;  %v3571_v0 = vrot.slane %v3420_v16, 3 }
 0x8ce   : > { %v5414_v32 = vpop.eup %5413  ;;  %v3475_v57 = vadd.f32 1.0, %v5412_v48  ;;  %5425 = vrcp.f32 %v3473_v40  ;;  %v3543_v40 = vmul.f32 1.442695, %v3528_v61 }
 0x8cf   : > { %v5416_v25 = vpop.eup %5415  ;;  %v3476_v18 = vadd.f32 1.0, %v5414_v32  ;;  %5427 = vrcp.f32 %v3474_v55 }
 0x8d0   : > { %v5418_v60 = vpop.eup %5417  ;;  %v3477_v51 = vadd.f32 1.0, %v5416_v25  ;;  %5429 = vrcp.f32 %v3475_v57  ;;  %v3574_v57 = vrot.slane %v3420_v16, 6 }
 0x8d1   : > { %v5420_v56 = vpop.eup %5419  ;;  %v3478_v15 = vadd.f32 1.0, %v5418_v60  ;;  %5431 = vrcp.f32 %v3476_v18 }
 0x8d2   : > { %v3480_v43 = vadd.f32 1.0, %v5420_v56  ;;  %5433 = vrcp.f32 %v3477_v51  ;;  %v8121_v51 = vld [vmem:[#allocation29_spill] sm:$0xff]  ;;  %v3576_v56 = vrot.slane %v3420_v16, 1 }
 0x8d3   : > { %5435 = vrcp.f32 %v3478_v15  ;;  %v5422_v41 = vpop.eup %5421 }
 0x8d4   : > { %5437 = vrcp.f32 %v3480_v43  ;;  %v3545_v24 = vadd.f32 1.0, %v5422_v41 }
 0x8d5   : > { %5439 = vpow2.f32 %v3531_v9 }
 0x8d6   : > { %5441 = vpow2.f32 %v3533_v49 }
 0x8d7   : > { %v5424_v33 = vpop.eup %5423  ;;  %5443 = vpow2.f32 %v3535_v63 }
 0x8d8   : > { %v5426_v39 = vpop.eup %5425  ;;  %5445 = vpow2.f32 %v3537_v10  ;;  %v3591_v12 = vmul.f32 %v5424_v33, %v3420_v16  ;;  %v8122_v10 = vld [vmem:[#allocation28_spill] sm:$0xff] }
 0x8d9   : > { %v5428_v20 = vpop.eup %5427  ;;  %v3585_v48 = vmul.f32 %v5426_v39, %v3570_v59  ;;  %5447 = vpow2.f32 %v3539_v44  ;;  %v8123_v39 = vld [vmem:[#allocation31_spill] sm:$0xff] }
 0x8da   : > { %v5430_v55 = vpop.eup %5429  ;;  %v3586_v8 = vmul.f32 %v5428_v20, %v3571_v0  ;;  %5449 = vpow2.f32 %v3541_v36 }
 0x8db   : > { %v5432_v32 = vpop.eup %5431  ;;  %v3587_v29 = vmul.f32 %v5430_v55, %v3572_v53  ;;  %v3593_v25 = vadd.f32 %v3585_v48, %v8120_v26  ;;  %5451 = vrcp.f32 %v3545_v24  ;;  %v8124_v53 = vld [vmem:[#allocation33_spill] sm:$0xff] }
 0x8dc   : > { %v5434_v18 = vpop.eup %5433  ;;  %v3588_v60 = vmul.f32 %v5432_v32, %v3573_v62  ;;  %v3594_v47 = vadd.f32 %v3586_v8, %v8121_v51  ;;  %5453 = vpow2.f32 %v3543_v40  ;;  %v8125_v8 = vld [vmem:[#allocation30_spill] sm:$0xff] }
 0x8dd   : > { %v5436_v5 = vpop.eup %5435  ;;  %v3589_v15 = vmul.f32 %v5434_v18, %v3574_v57  ;;  %v3595_v7 = vadd.f32 %v3587_v29, %v8068_v30  ;;  %v3601_v9 = vmul.f32 -2.0, %v3593_v25  ;;  %v3599_v32 = vadd.f32 %v3591_v12, %v8125_v8  ;;  %v8126_v18 = vld [vmem:[#allocation32_spill] sm:$0xff] }
 0x8de   : > { %v5438_v43 = vpop.eup %5437  ;;  %v3590_v2 = vmul.f32 %v5436_v5, %v3575_v14  ;;  %v3602_v49 = vmul.f32 -2.0, %v3594_v47  ;;  %v3596_v61 = vadd.f32 %v3588_v60, %v8122_v10  ;;  %v3681_v47 = vrot.slane %v7473_v11, 7 }
 0x8df   : > { %v5440_v63 = vpop.eup %5439  ;;  %v3603_v44 = vmul.f32 -2.0, %v3595_v7  ;;  %v3609_v41 = vmul.f32 1.442695, %v3601_v9  ;;  %v3592_v36 = vmul.f32 %v5438_v43, %v3576_v56  ;;  %v3597_v0 = vadd.f32 %v3589_v15, %v8123_v39 }
 0x8e0   : > { %v5442_v33 = vpop.eup %5441  ;;  %v3611_v59 = vmul.f32 1.442695, %v3602_v49  ;;  %v3546_v24 = vadd.f32 1.0, %v5440_v63  ;;  %v3598_v48 = vadd.f32 %v3590_v2, %v8124_v53  ;;  %v3604_v29 = vmul.f32 -2.0, %v3596_v61 }
 0x8e1   : > { %v5444_v40 = vpop.eup %5443  ;;  %5455 = vpow2.f32 %v3609_v41  ;;  %v3613_v16 = vmul.f32 1.442695, %v3603_v44  ;;  %v3547_v20 = vadd.f32 1.0, %v5442_v33  ;;  %v3600_v14 = vadd.f32 %v3592_v36, %v8126_v18 }
 0x8e2   : > { %v5446_v55 = vpop.eup %5445  ;;  %5457 = vpow2.f32 %v3611_v59  ;;  %v3548_v62 = vadd.f32 1.0, %v5444_v40  ;;  %v3605_v56 = vmul.f32 -2.0, %v3597_v0  ;;  %v3606_v9 = vmul.f32 -2.0, %v3598_v48  ;;  %v8127_v40 = vld [vmem:[#allocation36_spill] sm:$0xff] }
 0x8e3   : > { %v5448_v57 = vpop.eup %5447  ;;  %5459 = vpow2.f32 %v3613_v16  ;;  %v3549_v25 = vadd.f32 1.0, %v5446_v55  ;;  %v3607_v12 = vmul.f32 -2.0, %v3599_v32  ;;  %v3608_v63 = vmul.f32 -2.0, %v3600_v14  ;;  %v8128_v55 = vld [vmem:[#allocation26_spill] sm:$0xff] }
 0x8e4   : > { %v5450_v60 = vpop.eup %5449  ;;  %5461 = vrcp.f32 %v3546_v24  ;;  %v3550_v5 = vadd.f32 1.0, %v5448_v57  ;;  %v3615_v61 = vmul.f32 1.442695, %v3604_v29  ;;  %v3617_v11 = vmul.f32 1.442695, %v3605_v56 }
 0x8e5   : > { %v7614_v15 = vpop.eup %5451  ;;  %5463 = vrcp.f32 %v3547_v20  ;;  %v3551_v7 = vadd.f32 1.0, %v5450_v60  ;;  %v3619_v44 = vmul.f32 1.442695, %v3606_v9  ;;  %v3621_v41 = vmul.f32 1.442695, %v3607_v12 }
 0x8e6   : > { %v5454_v43 = vpop.eup %5453  ;;  %5465 = vrcp.f32 %v3548_v62  ;;  %v7617_v2 = vmul.f32 %v7614_v15, %v3681_v47  ;;  %v3623_v33 = vmul.f32 1.442695, %v3608_v63  ;;  %v3682_v16 = vrot.slane %v8127_v40, 7 }
 0x8e7   : > { %v3552_v49 = vadd.f32 1.0, %v5454_v43  ;;  %5467 = vrcp.f32 %v3549_v25  ;;  %v3683_v62 = vrot.slane %v8128_v55, 7  ;;  %v3684_v29 = vrot.slane %v7509_v50, 7 }
 0x8e8   : > { %5469 = vrcp.f32 %v3550_v5  ;;  %v3685_v60 = vrot.slane %v7512_v58, 7  ;;  %v3686_v56 = vrot.slane %v7515_v31, 7  ;;  %v3687_v50 = vrot.slane %v7520_v54, 7 }
 0x8e9   : > { %5471 = vrcp.f32 %v3551_v7  ;;  %v3688_v58 = vrot.slane %v7527_v38, 7 }
 0x8ea   : > { %5473 = vrcp.f32 %v3552_v49 }
 0x8eb   : > { %v5456_v36 = vpop.eup %5455  ;;  %5475 = vpow2.f32 %v3615_v61 }
 0x8ec   : > { %v5458_v59 = vpop.eup %5457  ;;  %5477 = vpow2.f32 %v3617_v11  ;;  %v3625_v24 = vadd.f32 1.0, %v5456_v36 }
 0x8ed   : > { %v5460_v0 = vpop.eup %5459  ;;  %5479 = vpow2.f32 %v3619_v44  ;;  %v3626_v20 = vadd.f32 1.0, %v5458_v59 }
 0x8ee   : > { %v5462_v48 = vpop.eup %5461  ;;  %5481 = vpow2.f32 %v3621_v41  ;;  %v3627_v32 = vadd.f32 1.0, %v5460_v0 }
 0x8ef   : > { %v5464_v57 = vpop.eup %5463  ;;  %5483 = vpow2.f32 %v3623_v33  ;;  %v3698_v25 = vmul.f32 %v5462_v48, %v3682_v16 }
 0x8f0   : > { %v7622_v14 = vpop.eup %5465  ;;  %5485 = vrcp.f32 %v3625_v24  ;;  %v3699_v47 = vmul.f32 %v5464_v57, %v3683_v62 }
 0x8f1   : > { %v7625_v5 = vpop.eup %5467  ;;  %5487 = vrcp.f32 %v3626_v20  ;;  %v7629_v7 = vmul.f32 %v7622_v14, %v3684_v29 }
 0x8f2   : > { %v7631_v9 = vpop.eup %5469  ;;  %5489 = vrcp.f32 %v3627_v32  ;;  %v7635_v43 = vmul.f32 %v7625_v5, %v3685_v60  ;;  %v3657_v60 = vsub.f32 1.0, %v7614_v15  ;;  %v3724_v15 = vld [vmem:[%s6052_s7] sm:$0x8] }
 0x8f3   : > { %v7637_v12 = vpop.eup %5471  ;;  %v7641_v49 = vmul.f32 %v7631_v9, %v3686_v56 }
 0x8f4   : > { %v7643_v31 = vpop.eup %5473  ;;  %v7646_v63 = vmul.f32 %v7637_v12, %v3687_v50  ;;  %v3658_v50 = vsub.f32 1.0, %v5462_v48 }
 0x8f5   : > { %v5476_v61 = vpop.eup %5475  ;;  %v7649_v11 = vmul.f32 %v7643_v31, %v3688_v58 }
 0x8f6   : > { %v5478_v54 = vpop.eup %5477  ;;  %v3628_v44 = vadd.f32 1.0, %v5476_v61  ;;  %v3659_v61 = vsub.f32 1.0, %v5464_v57  ;;  %v3662_v57 = vsub.f32 1.0, %v7631_v9 }
 0x8f7   : > { %v5480_v41 = vpop.eup %5479  ;;  %v3629_v36 = vadd.f32 1.0, %v5478_v54 }
 0x8f8   : > { %v5482_v33 = vpop.eup %5481  ;;  %v3630_v59 = vadd.f32 1.0, %v5480_v41  ;;  %5491 = vrcp.f32 %v3628_v44 }
 0x8f9   : > { %v5484_v38 = vpop.eup %5483  ;;  %v3631_v24 = vadd.f32 1.0, %v5482_v33  ;;  %5493 = vrcp.f32 %v3629_v36 }
 0x8fa   : > { %v5486_v0 = vpop.eup %5485  ;;  %v3632_v40 = vadd.f32 1.0, %v5484_v38  ;;  %5495 = vrcp.f32 %v3630_v59  ;;  %v3660_v59 = vsub.f32 1.0, %v7622_v14  ;;  %v3661_v38 = vsub.f32 1.0, %v7625_v5 }
 0x8fb   : > { %v5488_v16 = vpop.eup %5487  ;;  %v3634_v20 = vmul.f32 2.0, %v5486_v0  ;;  %5497 = vrcp.f32 %v3631_v24  ;;  %v3663_v14 = vsub.f32 1.0, %v7637_v12  ;;  %v3664_v5 = vsub.f32 1.0, %v7643_v31 }
 0x8fc   : > { %v5490_v55 = vpop.eup %5489  ;;  %v3636_v62 = vmul.f32 2.0, %v5488_v16  ;;  %5499 = vrcp.f32 %v3632_v40  ;;  %v3727_v16 = vld [vmem:[%s6052_s7 + $0x4] sm:$0x8] }
 0x8fd   : > { %v3638_v32 = vmul.f32 2.0, %v5490_v55  ;;  %v4422_v29 = vadd.f32 -1.0, %v3634_v20 }
 0x8fe   : > { %v4423_v56 = vadd.f32 -1.0, %v3636_v62 }
 0x8ff   : > { %v4424_v58 = vadd.f32 -1.0, %v3638_v32  ;;  %v3665_v54 = vmul.f32 %v4422_v29, %v3657_v60 }
 0x900   : > { %v3666_v44 = vmul.f32 %v4423_v56, %v3658_v50 }
 0x901   : > { %v3667_v41 = vmul.f32 %v4424_v58, %v3659_v61  ;;  %v7653_v36 = vadd.f32 %v7617_v2, %v3665_v54 }
 0x902   : > { %v5492_v33 = vpop.eup %5491  ;;  %v7657_v24 = vadd.f32 %v3698_v25, %v3666_v44 }
 0x903   : > { %v5494_v48 = vpop.eup %5493  ;;  %v3640_v0 = vmul.f32 2.0, %v5492_v33  ;;  %v7661_v40 = vadd.f32 %v3699_v47, %v3667_v41  ;;  %v3713_v2 = vpack.c.bf16 %v7653_v36, %v7653_v36  ;;  %v3730_v47 = vld [vmem:[%s6052_s7 + $0x8] sm:$0x8] }
 0x904   : > { %v5496_v20 = vpop.eup %5495  ;;  %v3642_v55 = vmul.f32 2.0, %v5494_v48  ;;  %v3714_v25 = vpack.c.bf16 %v7657_v24, %v7657_v24 }
 0x905   : > { %v5498_v62 = vpop.eup %5497  ;;  %v3644_v32 = vmul.f32 2.0, %v5496_v20  ;;  %v4425_v29 = vadd.f32 -1.0, %v3640_v0  ;;  %v3715_v12 = vpack.c.bf16 %v7661_v40, %v7661_v40  ;;  %v3725_v31 = vsel %vm7672_vm14, %v3713_v2, %v3724_v15 }
 0x906   : > { %v5500_v60 = vpop.eup %5499  ;;  %v3646_v56 = vmul.f32 2.0, %v5498_v62  ;;  %v4426_v50 = vadd.f32 -1.0, %v3642_v55  ;;  %3726 = vst [vmem:[%s6052_s7] sm:$0x8] %v3725_v31  ;;  %v3728_v58 = vsel %vm7672_vm14, %v3714_v25, %v3727_v16  ;;  %v3756_v61 = vunpack.c.l.b16 %v3713_v2 }
 0x907   : > { %v3648_v54 = vmul.f32 2.0, %v5500_v60  ;;  %v4427_v44 = vadd.f32 -1.0, %v3644_v32  ;;  %v3668_v41 = vmul.f32 %v4425_v29, %v3660_v59  ;;  %3729 = vst [vmem:[%s6052_s7 + $0x4] sm:$0x8] %v3728_v58  ;;  %v3731_v33 = vsel %vm7672_vm14, %v3715_v12, %v3730_v47  ;;  %v3733_v32 = vld [vmem:[%s6052_s7 + $0xc] sm:$0x8] }
 0x908   : > { %v4428_v48 = vadd.f32 -1.0, %v3646_v56  ;;  %v3669_v0 = vmul.f32 %v4426_v50, %v3661_v38  ;;  %3732 = vst [vmem:[%s6052_s7 + $0x8] sm:$0x8] %v3731_v33  ;;  %v3757_v15 = vunpack.c.l.b16 %v3714_v25  ;;  %v3758_v20 = vunpack.c.l.b16 %v3715_v12  ;;  %v3742_v50 = vld [vmem:[%s6052_s7 + $0x18] sm:$0x8] }
 0x909   : > { %v4429_v55 = vadd.f32 -1.0, %v3648_v54  ;;  %v3670_v62 = vmul.f32 %v4427_v44, %v3662_v57  ;;  %v7689_v16 = vadd.f32 %v7629_v7, %v3668_v41  ;;  %v3764_v2 = vrot.slane %v3756_v61, 6  ;;  %v3736_v7 = vld [vmem:[%s6052_s7 + $0x10] sm:$0x8]  ;;  %v3745_v54 = vld [vmem:[%s6052_s7 + $0x1c] sm:$0x8] }
 0x90a   : > { %v3671_v31 = vmul.f32 %v4428_v48, %v3663_v14  ;;  %v7692_v59 = vadd.f32 %v7635_v43, %v3669_v0  ;;  %v3765_v47 = vrot.slane %v3757_v15, 5  ;;  %v3767_v38 = vrot.slane %v3758_v20, 4  ;;  %v3739_v14 = vld [vmem:[%s6052_s7 + $0x14] sm:$0x8] }
 0x90b   : > { %v3672_v29 = vmul.f32 %v4429_v55, %v3664_v5  ;;  %v7696_v25 = vadd.f32 %v7641_v49, %v3670_v62  ;;  %v3716_v57 = vpack.c.bf16 %v7689_v16, %v7689_v16 }
 0x90c   : > { %v7702_v12 = vadd.f32 %v7646_v63, %v3671_v31  ;;  %v3717_v43 = vpack.c.bf16 %v7692_v59, %v7692_v59  ;;  %v3766_v60 = vsel %vm1145_vm4, %v3765_v47, %v3764_v2 }
 0x90d   : > { %v7709_v5 = vadd.f32 %v7649_v11, %v3672_v29  ;;  %v3718_v49 = vpack.c.bf16 %v7696_v25, %v7696_v25  ;;  %v3734_v56 = vsel %vm7672_vm14, %v3716_v57, %v3733_v32  ;;  %v3759_v63 = vunpack.c.l.b16 %v3716_v57 }
 0x90e   : > { %v3719_v58 = vpack.c.bf16 %v7702_v12, %v7702_v12  ;;  %3735 = vst [vmem:[%s6052_s7 + $0xc] sm:$0x8] %v3734_v56  ;;  %v3737_v61 = vsel %vm7672_vm14, %v3717_v43, %v3736_v7  ;;  %v3760_v11 = vunpack.c.l.b16 %v3717_v43  ;;  %v3768_v44 = vsel %vm1148_vm6, %v3767_v38, %v3766_v60 }
 0x90f   : > { %v3720_v41 = vpack.c.bf16 %v7709_v5, %v7709_v5  ;;  %3738 = vst [vmem:[%s6052_s7 + $0x10] sm:$0x8] %v3737_v61  ;;  %v3740_v33 = vsel %vm7672_vm14, %v3718_v49, %v3739_v14  ;;  %v3761_v48 = vunpack.c.l.b16 %v3718_v49  ;;  %v3769_v0 = vrot.slane %v3759_v63, 3 }
 0x910   : > { %3741 = vst [vmem:[%s6052_s7 + $0x14] sm:$0x8] %v3740_v33  ;;  %v3743_v15 = vsel %vm7672_vm14, %v3719_v58, %v3742_v50  ;;  %v3771_v20 = vrot.slane %v3760_v11, 2  ;;  %v3762_v32 = vunpack.c.l.b16 %v3719_v58 }
 0x911   : > { %3744 = vst [vmem:[%s6052_s7 + $0x18] sm:$0x8] %v3743_v15  ;;  %v3746_v55 = vsel %vm7672_vm14, %v3720_v41, %v3745_v54  ;;  %v3763_v62 = vunpack.c.l.b16 %v3720_v41  ;;  %v3770_v2 = vsel %vm1151_vm7, %v3769_v0, %v3768_v44  ;;  %v3773_v31 = vrot.slane %v3761_v48, 1 }
 0x912   : > { %3747 = vst [vmem:[%s6052_s7 + $0x1c] sm:$0x8] %v3746_v55  ;;  %v3772_v47 = vsel %vm1154_vm8, %v3771_v20, %v3770_v2 }
 0x913   : > { %v3774_v38 = vsel %vm1157_vm9, %v3773_v31, %v3772_v47  ;;  %v3776_v29 = vrot.slane %v3763_v62, 7 }
 0x914   : > { %v3775_v57 = vsel %vm1160_vm10, %v3762_v32, %v3774_v38 }
 0x915   : > { %v3777_v7 = vsel %vm1163_vm11, %v3776_v29, %v3775_v57  ;;  %vm4157_vm11 = vsmask.f32 7950 }
 0x916   : > { %v3778_v43 = vpack.c.b16 %v3777_v7, %v3777_v7  ;;  %vm7800_vm15 = vmand %vm1151_vm7, %vm4157_vm11 }
 0x918   : > { %3813 = vmatmul.mubr.bf16.vlgmr.msra.gmra.mrb[44].mxu0 %v3778_v43  ;;  %4695 = vmatmul.mubr.bf16.vlgmr.msra.gmra.mrb[36].mxu1 %v3778_v43 }
 0x9eb   : > { %v3814_v9 = vpop.f32.mrb[44].mxu0  ;;  %v7740_v14 = vpop.f32.mrb[36].mxu1 }
 0x9ec   : > { %v3815_v60 = vadd.f32 %v3814_v9, %v8046_v13  ;;  %v3816_v49 = vpop.f32.mrb[45].mxu0  ;;  %v4696_v56 = vpop.f32.mrb[37].mxu1 }
 0x9ed   : > { %v3818_v50 = vpop.f32.mrb[46].mxu0  ;;  %v3858_v63 = vpop.f32.mrb[38].mxu1 }
 0x9ee   : > { %v3862_v58 = vrot.slane %v3815_v60, 1  ;;  %v3863_v61 = vrot.slane %v3815_v60, 2  ;;  %v3864_v54 = vrot.slane %v3815_v60, 3  ;;  %v3865_v11 = vrot.slane %v3815_v60, 4  ;;  %v3819_v44 = vpop.f32.mrb[47].mxu0  ;;  %v4697_v41 = vpop.f32.mrb[39].mxu1 }
 0x9ef   : > { %v3866_v33 = vrot.slane %v3815_v60, 5  ;;  %v3867_v48 = vrot.slane %v3815_v60, 6  ;;  %v3868_v0 = vrot.slane %v3815_v60, 7  ;;  %v3884_v15 = vadd.f32 %v3815_v60, %v6260_v28 }
 0x9f0   : > { %v3877_v20 = vadd.f32 %v3862_v58, %v8048_v52  ;;  %v3878_v55 = vadd.f32 %v3863_v61, %v8079_v6  ;;  %v3879_v13 = vadd.f32 %v3864_v54, %v8047_v37  ;;  %v3880_v62 = vadd.f32 %v3865_v11, %v8114_v19 }
 0x9f1   : > { %v3881_v2 = vadd.f32 %v3866_v33, %v6253_v22  ;;  %v3882_v31 = vadd.f32 %v3867_v48, %v8115_v46  ;;  %v3883_v32 = vadd.f32 %v3868_v0, %v6258_v27  ;;  %v3892_v47 = vsub.f32 0.0, %v3884_v15 }
 0x9f2   : > { %v3885_v38 = vsub.f32 0.0, %v3877_v20  ;;  %v3886_v29 = vsub.f32 0.0, %v3878_v55  ;;  %v3887_v57 = vsub.f32 0.0, %v3879_v13  ;;  %v3888_v7 = vsub.f32 0.0, %v3880_v62 }
 0x9f3   : > { %v3889_v28 = vsub.f32 0.0, %v3881_v2  ;;  %v3890_v43 = vsub.f32 0.0, %v3882_v31  ;;  %v3891_v52 = vsub.f32 0.0, %v3883_v32  ;;  %v3907_v9 = vmul.f32 1.442695, %v3892_v47 }
 0x9f4   : > { %v3893_v6 = vmul.f32 1.442695, %v3885_v38  ;;  %v3895_v60 = vmul.f32 1.442695, %v3886_v29  ;;  %v3897_v37 = vmul.f32 1.442695, %v3887_v57  ;;  %v3817_v19 = vadd.f32 %v3816_v49, %v8033_v21 }
 0x9f5   : > { %v3899_v56 = vmul.f32 1.442695, %v3888_v7  ;;  %5501 = vpow2.f32 %v3907_v9  ;;  %v3901_v22 = vmul.f32 1.442695, %v3889_v28  ;;  %v3903_v27 = vmul.f32 1.442695, %v3890_v43 }
 0x9f6   : > { %5503 = vpow2.f32 %v3893_v6  ;;  %v3905_v46 = vmul.f32 1.442695, %v3891_v52  ;;  %v3934_v50 = vrot.slane %v3817_v19, 1  ;;  %v3935_v63 = vrot.slane %v3817_v19, 2 }
 0x9f7   : > { %5505 = vpow2.f32 %v3895_v60  ;;  %v3936_v61 = vrot.slane %v3817_v19, 3  ;;  %v3937_v54 = vrot.slane %v3817_v19, 4  ;;  %v3938_v21 = vrot.slane %v3817_v19, 5 }
 0x9f8   : > { %5507 = vpow2.f32 %v3897_v37  ;;  %v3949_v58 = vadd.f32 %v3934_v50, %v6245_v17  ;;  %v3939_v44 = vrot.slane %v3817_v19, 6  ;;  %v3950_v41 = vadd.f32 %v3935_v63, %v6275_v45 }
 0x9f9   : > { %5509 = vpow2.f32 %v3899_v56  ;;  %v3940_v15 = vrot.slane %v3817_v19, 7  ;;  %v3951_v20 = vadd.f32 %v3936_v61, %v8081_v34  ;;  %v3952_v62 = vadd.f32 %v3937_v54, %v8082_v1 }
 0x9fa   : > { %5511 = vpow2.f32 %v3901_v22  ;;  %v3957_v11 = vsub.f32 0.0, %v3949_v58  ;;  %v3953_v31 = vadd.f32 %v3938_v21, %v8116_v35  ;;  %v3954_v45 = vadd.f32 %v3939_v44, %v6310_v4 }
 0x9fb   : > { %5513 = vpow2.f32 %v3903_v27  ;;  %v3958_v38 = vsub.f32 0.0, %v3950_v41  ;;  %v3955_v34 = vadd.f32 %v3940_v15, %v8117_v42  ;;  %v3959_v7 = vsub.f32 0.0, %v3951_v20 }
 0x9fc   : > { %5515 = vpow2.f32 %v3905_v46  ;;  %v3965_v33 = vmul.f32 1.442695, %v3957_v11  ;;  %v7761_v43 = vadd.f32 %v7740_v14, %v8119_v3  ;;  %v3960_v35 = vsub.f32 0.0, %v3952_v62 }
 0x9fd   : > { %v3956_v4 = vadd.f32 %v3817_v19, %v8118_v23  ;;  %v3961_v6 = vsub.f32 0.0, %v3953_v31  ;;  %v3962_v37 = vsub.f32 0.0, %v3954_v45  ;;  %v3967_v56 = vmul.f32 1.442695, %v3958_v38 }
 0x9fe   : > { %5517 = vpow2.f32 %v3965_v33  ;;  %v3963_v42 = vsub.f32 0.0, %v3955_v34  ;;  %v3969_v22 = vmul.f32 1.442695, %v3959_v7  ;;  %v3971_v27 = vmul.f32 1.442695, %v3960_v35 }
 0x9ff   : > { %v5502_v49 = vpop.eup %5501  ;;  %v3964_v46 = vsub.f32 0.0, %v3956_v4  ;;  %v3973_v50 = vmul.f32 1.442695, %v3961_v6  ;;  %v4006_v14 = vrot.slane %v7761_v43, 1  ;;  %v3975_v63 = vmul.f32 1.442695, %v3962_v37 }
 0xa00   : > { %v5504_v48 = vpop.eup %5503  ;;  %v3916_v0 = vadd.f32 1.0, %v5502_v49  ;;  %v4007_v23 = vrot.slane %v7761_v43, 2  ;;  %v4008_v19 = vrot.slane %v7761_v43, 3  ;;  %v3977_v61 = vmul.f32 1.442695, %v3963_v42 }
 0xa01   : > { %v5506_v55 = vpop.eup %5505  ;;  %v3909_v13 = vadd.f32 1.0, %v5504_v48  ;;  %v4009_v11 = vrot.slane %v7761_v43, 4  ;;  %v4010_v41 = vrot.slane %v7761_v43, 5  ;;  %v3979_v48 = vmul.f32 1.442695, %v3964_v46 }
 0xa02   : > { %v5508_v17 = vpop.eup %5507  ;;  %v3910_v2 = vadd.f32 1.0, %v5506_v55  ;;  %5519 = vrcp.f32 %v3916_v0  ;;  %v4011_v15 = vrot.slane %v7761_v43, 6  ;;  %v4012_v62 = vrot.slane %v7761_v43, 7 }
 0xa03   : > { %v5510_v32 = vpop.eup %5509  ;;  %v3911_v47 = vadd.f32 1.0, %v5508_v17  ;;  %5521 = vrcp.f32 %v3909_v13 }
 0xa04   : > { %v5512_v29 = vpop.eup %5511  ;;  %v3912_v57 = vadd.f32 1.0, %v5510_v32  ;;  %5523 = vrcp.f32 %v3910_v2 }
 0xa05   : > { %v5514_v28 = vpop.eup %5513  ;;  %v3913_v1 = vadd.f32 1.0, %v5512_v29  ;;  %5525 = vrcp.f32 %v3911_v47 }
 0xa06   : > { %v5516_v52 = vpop.eup %5515  ;;  %v3914_v9 = vadd.f32 1.0, %v5514_v28  ;;  %5527 = vrcp.f32 %v3912_v57 }
 0xa07   : > { %v3915_v60 = vadd.f32 1.0, %v5516_v52  ;;  %5529 = vrcp.f32 %v3913_v1 }
 0xa08   : > { %5531 = vrcp.f32 %v3914_v9  ;;  %v5518_v3 = vpop.eup %5517 }
 0xa09   : > { %5533 = vrcp.f32 %v3915_v60  ;;  %v3981_v49 = vadd.f32 1.0, %v5518_v3 }
 0xa0a   : > { %5535 = vpow2.f32 %v3967_v56 }
 0xa0b   : > { %5537 = vpow2.f32 %v3969_v22 }
 0xa0c   : > { %v5520_v58 = vpop.eup %5519  ;;  %5539 = vpow2.f32 %v3971_v27 }
 0xa0d   : > { %v5522_v54 = vpop.eup %5521  ;;  %v4028_v21 = vmul.f32 %v5520_v58, %v7761_v43  ;;  %5541 = vpow2.f32 %v3973_v50  ;;  %v4117_v58 = vrot.slane %v7653_v36, 7 }
 0xa0e   : > { %v5524_v44 = vpop.eup %5523  ;;  %v4021_v33 = vmul.f32 %v5522_v54, %v4006_v14  ;;  %5543 = vpow2.f32 %v3975_v63 }
 0xa0f   : > { %v5526_v0 = vpop.eup %5525  ;;  %v4022_v20 = vmul.f32 %v5524_v44, %v4007_v23  ;;  %v4036_v55 = vadd.f32 %v4028_v21, %v8126_v18  ;;  %5545 = vpow2.f32 %v3977_v61 }
 0xa10   : > { %v5528_v13 = vpop.eup %5527  ;;  %v4023_v17 = vmul.f32 %v5526_v0, %v4008_v19  ;;  %v4029_v2 = vadd.f32 %v4021_v33, %v8120_v26  ;;  %5547 = vrcp.f32 %v3981_v49 }
 0xa11   : > { %v5530_v31 = vpop.eup %5529  ;;  %v4024_v32 = vmul.f32 %v5528_v13, %v4009_v11  ;;  %v4030_v47 = vadd.f32 %v4022_v20, %v8121_v51  ;;  %v4044_v45 = vmul.f32 -2.0, %v4036_v55  ;;  %5549 = vpow2.f32 %v3979_v48 }
 0xa12   : > { %v5532_v38 = vpop.eup %5531  ;;  %v4025_v29 = vmul.f32 %v5530_v31, %v4010_v41  ;;  %v4031_v57 = vadd.f32 %v4023_v17, %v8068_v30  ;;  %v4037_v34 = vmul.f32 -2.0, %v4029_v2 }
 0xa13   : > { %v5534_v18 = vpop.eup %5533  ;;  %v4026_v7 = vmul.f32 %v5532_v38, %v4011_v15  ;;  %v4032_v28 = vadd.f32 %v4024_v32, %v8122_v10  ;;  %v4038_v1 = vmul.f32 -2.0, %v4030_v47  ;;  %v4059_v43 = vmul.f32 1.442695, %v4044_v45 }
 0xa14   : > { %v4027_v26 = vmul.f32 %v5534_v18, %v4012_v62  ;;  %v4033_v35 = vadd.f32 %v4025_v29, %v8123_v39  ;;  %v4039_v52 = vmul.f32 -2.0, %v4031_v57  ;;  %v4045_v9 = vmul.f32 1.442695, %v4037_v34  ;;  %v5536_v51 = vpop.eup %5535 }
 0xa15   : > { %v4034_v4 = vadd.f32 %v4026_v7, %v8124_v53  ;;  %v4040_v6 = vmul.f32 -2.0, %v4032_v28  ;;  %v4047_v60 = vmul.f32 1.442695, %v4038_v1  ;;  %5551 = vpow2.f32 %v4059_v43  ;;  %v5538_v30 = vpop.eup %5537 }
 0xa16   : > { %v4035_v37 = vadd.f32 %v4027_v26, %v8125_v8  ;;  %v4041_v56 = vmul.f32 -2.0, %v4033_v35  ;;  %5553 = vpow2.f32 %v4045_v9  ;;  %v4049_v42 = vmul.f32 1.442695, %v4039_v52  ;;  %v5540_v10 = vpop.eup %5539 }
 0xa17   : > { %v4042_v22 = vmul.f32 -2.0, %v4034_v4  ;;  %5555 = vpow2.f32 %v4047_v60  ;;  %v4051_v27 = vmul.f32 1.442695, %v4040_v6  ;;  %v5542_v46 = vpop.eup %5541  ;;  %v3982_v14 = vadd.f32 1.0, %v5536_v51 }
 0xa18   : > { %v4043_v39 = vmul.f32 -2.0, %v4035_v37  ;;  %5557 = vpow2.f32 %v4049_v42  ;;  %v4053_v50 = vmul.f32 1.442695, %v4041_v56  ;;  %v5544_v3 = vpop.eup %5543  ;;  %v3983_v23 = vadd.f32 1.0, %v5538_v30 }
 0xa19   : > { %5559 = vpow2.f32 %v4051_v27  ;;  %v4055_v53 = vmul.f32 1.442695, %v4042_v22  ;;  %v5546_v63 = vpop.eup %5545  ;;  %v3984_v61 = vadd.f32 1.0, %v5540_v10  ;;  %v3985_v11 = vadd.f32 1.0, %v5542_v46 }
 0xa1a   : > { %5561 = vpow2.f32 %v4053_v50  ;;  %v4057_v8 = vmul.f32 1.442695, %v4043_v39  ;;  %v7781_v19 = vpop.eup %5547  ;;  %v3986_v49 = vadd.f32 1.0, %v5544_v3  ;;  %v4118_v32 = vrot.slane %v7657_v24, 7 }
 0xa1b   : > { %5563 = vpow2.f32 %v4055_v53  ;;  %v5550_v54 = vpop.eup %5549  ;;  %v7784_v21 = vmul.f32 %v7781_v19, %v4117_v58  ;;  %v3987_v45 = vadd.f32 1.0, %v5546_v63  ;;  %v4119_v29 = vrot.slane %v7661_v40, 7 }
 0xa1c   : > { %5565 = vpow2.f32 %v4057_v8  ;;  %v3988_v34 = vadd.f32 1.0, %v5550_v54  ;;  %v4120_v7 = vrot.slane %v7689_v16, 7  ;;  %v4121_v43 = vrot.slane %v7692_v59, 7 }
 0xa1d   : > { %5567 = vrcp.f32 %v3982_v14  ;;  %v4122_v35 = vrot.slane %v7696_v25, 7  ;;  %v4123_v16 = vrot.slane %v7702_v12, 7  ;;  %v4124_v59 = vrot.slane %v7709_v5, 7 }
 0xa1e   : > { %5569 = vrcp.f32 %v3983_v23  ;;  %v4093_v25 = vsub.f32 1.0, %v7781_v19 }
 0xa1f   : > { %v5552_v44 = vpop.eup %5551  ;;  %5571 = vrcp.f32 %v3984_v61 }
 0xa20   : > { %v5554_v41 = vpop.eup %5553  ;;  %v4068_v36 = vadd.f32 1.0, %v5552_v44  ;;  %5573 = vrcp.f32 %v3985_v11 }
 0xa21   : > { %v5556_v33 = vpop.eup %5555  ;;  %v4061_v48 = vadd.f32 1.0, %v5554_v41  ;;  %5575 = vrcp.f32 %v3986_v49 }
 0xa22   : > { %v5558_v0 = vpop.eup %5557  ;;  %v4062_v15 = vadd.f32 1.0, %v5556_v33  ;;  %5577 = vrcp.f32 %v4068_v36 }
 0xa23   : > { %v5560_v20 = vpop.eup %5559  ;;  %v4063_v55 = vadd.f32 1.0, %v5558_v0  ;;  %5579 = vrcp.f32 %v4061_v48 }
 0xa24   : > { %v5562_v13 = vpop.eup %5561  ;;  %v4064_v62 = vadd.f32 1.0, %v5560_v20  ;;  %5581 = vrcp.f32 %v4062_v15 }
 0xa25   : > { %v5564_v17 = vpop.eup %5563  ;;  %v4065_v2 = vadd.f32 1.0, %v5562_v13  ;;  %5583 = vrcp.f32 %v4063_v55 }
 0xa26   : > { %v5566_v31 = vpop.eup %5565  ;;  %v4066_v47 = vadd.f32 1.0, %v5564_v17  ;;  %5585 = vrcp.f32 %v4064_v62 }
 0xa27   : > { %v5568_v38 = vpop.eup %5567  ;;  %v4067_v57 = vadd.f32 1.0, %v5566_v31  ;;  %5587 = vrcp.f32 %v4065_v2 }
 0xa28   : > { %v5570_v18 = vpop.eup %5569  ;;  %5589 = vrcp.f32 %v4066_v47  ;;  %v4134_v28 = vmul.f32 %v5568_v38, %v4118_v32  ;;  %v4094_v46 = vsub.f32 1.0, %v5568_v38 }
 0xa29   : > { %v5572_v1 = vpop.eup %5571  ;;  %5591 = vrcp.f32 %v4067_v57  ;;  %v4135_v26 = vmul.f32 %v5570_v18, %v4119_v29  ;;  %v4095_v39 = vsub.f32 1.0, %v5570_v18 }
 0xa2a   : > { %v5574_v24 = vpop.eup %5573  ;;  %5593 = vrcp.f32 %v3987_v45  ;;  %v4136_v52 = vmul.f32 %v5572_v1, %v4120_v7  ;;  %v4096_v14 = vsub.f32 1.0, %v5572_v1 }
 0xa2b   : > { %v5576_v9 = vpop.eup %5575  ;;  %5595 = vrcp.f32 %v3988_v34  ;;  %v4137_v40 = vmul.f32 %v5574_v24, %v4121_v43  ;;  %v4097_v63 = vsub.f32 1.0, %v5574_v24 }
 0xa2c   : > { %v5578_v51 = vpop.eup %5577  ;;  %v4138_v4 = vmul.f32 %v5576_v9, %v4122_v35  ;;  %v4098_v23 = vsub.f32 1.0, %v5576_v9 }
 0xa2d   : > { %v5580_v6 = vpop.eup %5579  ;;  %v4084_v42 = vmul.f32 2.0, %v5578_v51  ;;  %v4165_v51 = vld [vmem:[%s6052_s7 + $0x8] sm:$0x8] }
 0xa2e   : > { %v5582_v60 = vpop.eup %5581  ;;  %v4070_v30 = vmul.f32 2.0, %v5580_v6  ;;  %v4171_v6 = vld [vmem:[%s6052_s7 + $0x10] sm:$0x8] }
 0xa2f   : > { %v5584_v37 = vpop.eup %5583  ;;  %v4072_v56 = vmul.f32 2.0, %v5582_v60  ;;  %v4437_v49 = vadd.f32 -1.0, %v4084_v42 }
 0xa30   : > { %v5586_v10 = vpop.eup %5585  ;;  %v4074_v22 = vmul.f32 2.0, %v5584_v37  ;;  %v4430_v27 = vadd.f32 -1.0, %v4070_v30 }
 0xa31   : > { %v5588_v50 = vpop.eup %5587  ;;  %v4076_v3 = vmul.f32 2.0, %v5586_v10  ;;  %v4431_v53 = vadd.f32 -1.0, %v4072_v56  ;;  %v4177_v56 = vld [vmem:[%s6052_s7 + $0x18] sm:$0x8] }
 0xa32   : > { %v5590_v58 = vpop.eup %5589  ;;  %v4078_v12 = vmul.f32 2.0, %v5588_v50  ;;  %v4432_v8 = vadd.f32 -1.0, %v4074_v22  ;;  %v4101_v61 = vmul.f32 %v4430_v27, %v4093_v25  ;;  %v4180_v27 = vld [vmem:[%s6052_s7 + $0x1c] sm:$0x8] }
 0xa33   : > { %v5592_v5 = vpop.eup %5591  ;;  %v4080_v54 = vmul.f32 2.0, %v5590_v58  ;;  %v4433_v11 = vadd.f32 -1.0, %v4076_v3  ;;  %v4102_v19 = vmul.f32 %v4431_v53, %v4094_v46 }
 0xa34   : > { %v5594_v44 = vpop.eup %5593  ;;  %v4082_v41 = vmul.f32 2.0, %v5592_v5  ;;  %v4434_v36 = vadd.f32 -1.0, %v4078_v12  ;;  %v4103_v33 = vmul.f32 %v4432_v8, %v4095_v39  ;;  %v4141_v48 = vadd.f32 %v7784_v21, %v4101_v61 }
 0xa35   : > { %v5596_v0 = vpop.eup %5595  ;;  %v4435_v15 = vadd.f32 -1.0, %v4080_v54  ;;  %v4099_v20 = vsub.f32 1.0, %v5594_v44  ;;  %v4104_v55 = vmul.f32 %v4433_v11, %v4096_v14  ;;  %v4139_v13 = vmul.f32 %v5594_v44, %v4123_v16 }
 0xa36   : > { %v4436_v62 = vadd.f32 -1.0, %v4082_v41  ;;  %v4100_v17 = vsub.f32 1.0, %v5596_v0  ;;  %v4105_v2 = vmul.f32 %v4434_v36, %v4097_v63  ;;  %v4140_v31 = vmul.f32 %v5596_v0, %v4124_v59  ;;  %4206 = vst [vmem:[#allocation2 - $0x7] sm:$0x80] %v4141_v48  ;;  %v4174_v59 = vld [vmem:[%s6052_s7 + $0x14] sm:$0x8] }
 0xa37   : > { %v4106_v32 = vmul.f32 %v4435_v15, %v4098_v23  ;;  %v4142_v47 = vadd.f32 %v4134_v28, %v4102_v19  ;;  %v4143_v45 = vadd.f32 %v4135_v26, %v4103_v33  ;;  %v4144_v38 = vadd.f32 %v4136_v52, %v4104_v55  ;;  %v4159_v26 = vld [vmem:[%s6052_s7] sm:$0x8] }
 0xa38   : > { %v4107_v29 = vmul.f32 %v4436_v62, %v4099_v20  ;;  %v4108_v21 = vmul.f32 %v4437_v49, %v4100_v17  ;;  %v7795_v57 = vadd.f32 %v4137_v40, %v4105_v2  ;;  %v4149_v34 = vpack.c.bf16 %v4141_v48, %v4141_v48  ;;  %v4162_v40 = vld [vmem:[%s6052_s7 + $0x4] sm:$0x8] }
 0xa39   : > { %v7804_v7 = vadd.f32 %v4138_v4, %v4106_v32  ;;  %v4150_v28 = vpack.c.bf16 %v4142_v47, %v4142_v47  ;;  %v4151_v1 = vpack.c.bf16 %v4143_v45, %v4143_v45  ;;  %v4152_v43 = vpack.c.bf16 %v4144_v38, %v4144_v38  ;;  %v4168_v4 = vld [vmem:[%s6052_s7 + $0xc] sm:$0x8] }
 0xa3a   : > { %v7808_v24 = vadd.f32 %v4139_v13, %v4107_v29  ;;  %v7810_v35 = vadd.f32 %v4140_v31, %v4108_v21  ;;  %v4153_v52 = vpack.c.bf16 %v7795_v57, %v7795_v57  ;;  %v4160_v9 = vsel %vm7800_vm15, %v4149_v34, %v4159_v26 }
 0xa3b   : > { %v4154_v60 = vpack.c.bf16 %v7804_v7, %v7804_v7  ;;  %4161 = vst [vmem:[%s6052_s7] sm:$0x8] %v4160_v9  ;;  %v4163_v16 = vsel %vm7800_vm15, %v4150_v28, %v4162_v40  ;;  %v4166_v30 = vsel %vm7800_vm15, %v4151_v1, %v4165_v51  ;;  %v4169_v37 = vsel %vm7800_vm15, %v4152_v43, %v4168_v4 }
 0xa3c   : > { %v4155_v42 = vpack.c.bf16 %v7808_v24, %v7808_v24  ;;  %v4156_v25 = vpack.c.bf16 %v7810_v35, %v7810_v35  ;;  %4164 = vst [vmem:[%s6052_s7 + $0x4] sm:$0x8] %v4163_v16  ;;  %4167 = vst [vmem:[%s6052_s7 + $0x8] sm:$0x8] %v4166_v30  ;;  %v4172_v10 = vsel %vm7800_vm15, %v4153_v52, %v4171_v6  ;;  %v4191_v22 = vrot.slane %v4142_v47, 7 }
 0xa3d   : > { %4170 = vst [vmem:[%s6052_s7 + $0xc] sm:$0x8] %v4169_v37  ;;  %4173 = vst [vmem:[%s6052_s7 + $0x10] sm:$0x8] %v4172_v10  ;;  %v4175_v46 = vsel %vm7800_vm15, %v4154_v60, %v4174_v59  ;;  %v4192_v39 = vrot.slane %v4143_v45, 6  ;;  %v4194_v50 = vrot.slane %v4144_v38, 5 }
 0xa3e   : > { %4176 = vst [vmem:[%s6052_s7 + $0x14] sm:$0x8] %v4175_v46  ;;  %v4178_v3 = vsel %vm7800_vm15, %v4155_v42, %v4177_v56  ;;  %v4181_v53 = vsel %vm7800_vm15, %v4156_v25, %v4180_v27  ;;  %v4196_v63 = vrot.slane %v7795_v57, 4  ;;  %v4198_v12 = vrot.slane %v7804_v7, 3 }
 0xa3f   : > { %4179 = vst [vmem:[%s6052_s7 + $0x18] sm:$0x8] %v4178_v3  ;;  %4182 = vst [vmem:[%s6052_s7 + $0x1c] sm:$0x8] %v4181_v53  ;;  %v4193_v14 = vsel %vm1145_vm4, %v4192_v39, %v4191_v22 }
 0xa40   : > { %v4195_v58 = vsel %vm1148_vm6, %v4194_v50, %v4193_v14 }
 0xa41   : > { %5768 = shalt.err (!%p5765_p11)
}
 0xa42   : > { %s5769_s17 = scalar_lea.hbm %s7832_s10, 512  ;;  %s5773_s15 = scalar_lea.hbm %s7915_s5, 1024 }
 0xa43   : > { %p5770_p12 = scmp.ne.s32.totalorder %s7832_s10, %s5769_s17  ;;  %p5774_p9 = scmp.lt.u32.totalorder %s7832_s10, %s7915_s5 }
 0xa44   : > { %p5775_p13 = scmp.lt.u32.totalorder %s5773_s15, %s5769_s17  ;;  %p5777_p8 = scmp.lt.u32.totalorder %s5769_s17, %s7832_s10 }
 0xa45   : > { %p5771_p4 = pnand %p5770_p12, %p8133_p10 }
 0xa46   : > { %p5776_p7 = por %p5775_p13, %p5774_p9 }
 0xa47   : > { %p5772_p6 = pneg %p5771_p4 }
 0xa48   : > { %p5778_p2 = por %p5777_p8, %p5776_p7 }
 0xa4a   : > { %p5779_p1 = pnand %p5778_p2, %p5772_p6 }
 0xa4c   : > { %5782 = shalt.err (!%p5779_p1)
}
 0xa4d   : > { %s5840_s14 = smov 64   ;;  %s5841_s22 = smov 128   ;;  %v4197_v8 = vsel %vm1151_vm7, %v4196_v63, %v4195_v58  ;;  %v4200_v23 = vrot.slane %v7808_v24, 2  ;;  %v4202_v5 = vrot.slane %v7810_v35, 1 }
 0xa4e   : > { %s5842_s9 = smov 4   ;;  %v4199_v61 = vsel %vm1154_vm8, %v4198_v12, %v4197_v8 }
 0xa4f   : > { %4708 = dma.vmem_to_hbm [thread:$0]  (%p8133_p10), %s7845_s23, 512, %s7832_s10, %s4209_s16, %s5840_s14, %s5841_s22, %s5842_s9   ;;  %v4201_v54 = vsel %vm1157_vm9, %v4200_v23, %v4199_v61 }
 0xa50   : > { %v4203_v11 = vsel %vm1160_vm10, %v4202_v5, %v4201_v54 }
 0xa51   : > { %4207 = vst [vmem:[#allocation2 + $0x1] sm:$0x7f] %v4203_v11 }
 0xa52 PF: > { %s4236_s30 = sand.u32 1, %s5813_s18   ;;  %p8134_p3 = scmp.ne.s32.totalorder %s7993_s6, 0 }
 0xa53   : > { %p8135_p10 = scmp.ge.s32.totalorder %s5825_s21, 2  ;;  %s4237_s11 = scalar_lea.sflag [#allocation5], %s4236_s30 }
 0xa55   : > { %p4722_p0 = pnand %p8135_p10, %p8134_p3 }
 0xa57   : > { %5808 = dma.done.wait (!%p4722_p0), %s4237_s11, 512  }
 0xa58   : > { %5810 = vsyncadd (!%p4722_p0), %s4237_s11, 4294966784  ;;  %p19_p5 = scmp.ge.s32.totalorder %s5898_s24, 4   ;;  %s8136_s18 = smov %s5817_s19 }
 0xa59   : > { %s8137_s19 = smov %s5821_s20  ;;  %s8138_s20 = smov %s5910_s27 }
 0xa5a   : > { %s8139_s21 = smov %s5898_s24  ;;  %21 = sbr.rel (!%p19_p5) target bundleno = 6 (0x6), region = 97 }
 0xa61   :  { %4242 = vsyncpa [#allocation4], 1 }
 0xa62   :  { %4244 = vsyncpa [#allocation4 + $0x1], 1 }
 0xa63   :  { %4245 = vsyncpa [#allocation7], 1 }
 0xa64   :  { %4246 = vsyncpa [#allocation5], 1 }
 0xa65   :  { %4248 = vsyncpa [#allocation5 + $0x1], 1 }

</bundles_post_ra>
